<compile_context>
chip_gen: v5e
topology: v5e:2x2
jax: 0.10.0
libtpu: 0.0.40
codegen_flags: <defaults>
</compile_context>

<pallas_src>
import functools

import jax
import jax.numpy as jnp
from jax.experimental import pallas as pl
from jax.experimental.pallas import tpu as pltpu

INPUT_DIM = 28 * 28    # 784
HIDDEN_DIM = 512
OUTPUT_DIM = 10
OUT_PAD = 128          # lane-dense padded width for the last layer
GROUPS = 10            # the hard-coded `10` in x.view(B, 10, 28*28)


def _round_up(n, m):
    return ((n + m - 1) // m) * m


def _mlp_kernel(x_ref, w1_ref, b1_ref, w2_ref, b2_ref, w3_ref, b3_ref, o_ref):
    # x_ref: (TM, GROUPS, INPUT_DIM) bf16 -- widen and group-sum in f32
    # (keeps the reduction/elementwise math off the (nonexistent) v5e bf16 VPU).
    s = jnp.sum(x_ref[...].astype(jnp.float32), axis=1)            # (TM, 784) f32

    h1 = jnp.dot(s.astype(jnp.bfloat16), w1_ref[...],
                 preferred_element_type=jnp.float32) + b1_ref[...]
    h1 = jnp.maximum(h1, 0.0)                                      # ReLU, f32

    h2 = jnp.dot(h1.astype(jnp.bfloat16), w2_ref[...],
                 preferred_element_type=jnp.float32) + b2_ref[...]
    h2 = jnp.maximum(h2, 0.0)                                      # ReLU, f32

    out = jnp.dot(h2.astype(jnp.bfloat16), w3_ref[...],
                  preferred_element_type=jnp.float32) + b3_ref[...]
    o_ref[...] = out.astype(o_ref.dtype)                           # (TM, 128)


@functools.partial(jax.jit, static_argnames=("block_b",))
def mlp_forward(x, w1, b1, w2, b2, w3, b3, *, block_b=256):
    """x: (B, ...) with prod(...) == GROUPS * INPUT_DIM (like the PyTorch .view).

    Weights are stored transposed, (in_features, out_features), in bf16;
    biases are (1, out_features) f32.
    """
    B = x.shape[0]
    x3 = x.reshape(B, GROUPS, INPUT_DIM).astype(jnp.bfloat16)

    # Batch tile: multiple of 8 (f32 output sublane), capped at block_b.
    # Pad B up to a whole number of tiles; padded rows are sliced away below.
    tm = min(block_b, _round_up(B, 8))
    b_pad = _round_up(B, tm)
    if b_pad != B:
        x3 = jnp.pad(x3, ((0, b_pad - B), (0, 0), (0, 0)))

    # Lane-dense last layer: zero-pad W3/b3 from 10 -> 128 output columns.
    w3p = jnp.pad(w3, ((0, 0), (0, OUT_PAD - OUTPUT_DIM)))
    b3p = jnp.pad(b3, ((0, 0), (0, OUT_PAD - OUTPUT_DIM)))

    grid = (b_pad // tm,)
    out = pl.pallas_call(
        _mlp_kernel,
        out_shape=jax.ShapeDtypeStruct((b_pad, OUT_PAD), jnp.float32),
        grid_spec=pltpu.PrefetchScalarGridSpec(
            num_scalar_prefetch=0,
            grid=grid,
            in_specs=[
                # x: one batch tile per grid step (pipelined / double-buffered).
                pl.BlockSpec((tm, GROUPS, INPUT_DIM), lambda i: (i, 0, 0)),
                # weights & biases: constant index_map -> stay resident in VMEM.
                pl.BlockSpec((INPUT_DIM, HIDDEN_DIM), lambda i: (0, 0)),
                pl.BlockSpec((1, HIDDEN_DIM), lambda i: (0, 0)),
                pl.BlockSpec((HIDDEN_DIM, HIDDEN_DIM), lambda i: (0, 0)),
                pl.BlockSpec((1, HIDDEN_DIM), lambda i: (0, 0)),
                pl.BlockSpec((HIDDEN_DIM, OUT_PAD), lambda i: (0, 0)),
                pl.BlockSpec((1, OUT_PAD), lambda i: (0, 0)),
            ],
            out_specs=pl.BlockSpec((tm, OUT_PAD), lambda i: (i, 0)),
        ),
        compiler_params=pltpu.CompilerParams(
            dimension_semantics=("parallel",),
            vmem_limit_bytes=48 << 20,
        ),
    )(x3, w1, b1, w2, b2, w3p, b3p)

    return out[:B, :OUTPUT_DIM]


def _xavier_uniform(key, fan_in, fan_out):
    # nn.init.xavier_uniform_ on a (fan_out, fan_in) weight; the bound is
    # symmetric in (fan_in, fan_out), so generate the transposed (in, out)
    # layout directly. Stored in bf16 (MXU operand dtype).
    bound = (6.0 / (fan_in + fan_out)) ** 0.5
    w = jax.random.uniform(
        key, (fan_in, fan_out), dtype=jnp.float32, minval=-bound, maxval=bound
    )
    return w.astype(jnp.bfloat16)


def init_params(key):
    k1, k2, k3 = jax.random.split(key, 3)
    w1 = _xavier_uniform(k1, INPUT_DIM, HIDDEN_DIM)
    w2 = _xavier_uniform(k2, HIDDEN_DIM, HIDDEN_DIM)
    w3 = _xavier_uniform(k3, HIDDEN_DIM, OUTPUT_DIM)
    b1 = jnp.zeros((1, HIDDEN_DIM), jnp.float32)
    b2 = jnp.zeros((1, HIDDEN_DIM), jnp.float32)
    b3 = jnp.zeros((1, OUTPUT_DIM), jnp.float32)
    return w1, b1, w2, b2, w3, b3


def _reference(x, w1, b1, w2, b2, w3, b3):
    # Pure-JAX reference with the same mixed precision as the kernel
    # (bf16 operands, f32 accumulation / elementwise).
    B = x.shape[0]
    xb = x.reshape(B, GROUPS, INPUT_DIM).astype(jnp.bfloat16)
    s = jnp.sum(xb.astype(jnp.float32), axis=1)
    h1 = jnp.maximum(
        jnp.dot(s.astype(jnp.bfloat16), w1, preferred_element_type=jnp.float32) + b1, 0.0)
    h2 = jnp.maximum(
        jnp.dot(h1.astype(jnp.bfloat16), w2, preferred_element_type=jnp.float32) + b2, 0.0)
    return jnp.dot(h2.astype(jnp.bfloat16), w3, preferred_element_type=jnp.float32) + b3


if __name__ == "__main__":
    key = jax.random.PRNGKey(0)
    pkey, xkey = jax.random.split(key)

    params = init_params(pkey)

    # Small batch; per-example size must be GROUPS * INPUT_DIM = 7840
    # (the PyTorch forward hard-codes view(B, 10, 28*28)).
    B = 2
    x = jax.random.normal(xkey, (B, GROUPS, 28, 28), dtype=jnp.float32)

    out = jax.block_until_ready(mlp_forward(x, *params))
    ref = _reference(x, *params)

    assert out.shape == (B, OUTPUT_DIM), out.shape
    assert bool(jnp.all(jnp.isfinite(out))), "non-finite output"
    assert jnp.allclose(out, ref, atol=1e-2, rtol=1e-2), "mismatch vs reference"

    print("KERNEL_OK")
</pallas_src>

<mosaic_0001>
module attributes {stable_mosaic.version = 11 : i64} {
  func.func @_mlp_kernel(%arg0: i32, %arg1: memref<8x10x784xbf16, #tpu.memory_space<vmem>>, %arg2: memref<784x512xbf16, #tpu.memory_space<vmem>>, %arg3: memref<1x512xf32, #tpu.memory_space<vmem>>, %arg4: memref<512x512xbf16, #tpu.memory_space<vmem>>, %arg5: memref<1x512xf32, #tpu.memory_space<vmem>>, %arg6: memref<512x128xbf16, #tpu.memory_space<vmem>>, %arg7: memref<1x128xf32, #tpu.memory_space<vmem>>, %arg8: memref<8x128xf32, #tpu.memory_space<vmem>>) attributes {dimension_semantics = [#tpu.dimension_semantics<parallel>], iteration_bounds = array<i64: 1>, scalar_prefetch = 0 : i64, scratch_operands = 0 : i64, tpu.core_type = #tpu.core_type<tc>, window_params = [{transform_indices = @transform_0, window_bounds = array<i64: 8, 10, 784>}, {pipeline_mode = #tpu.pipeline_mode<synchronous>, transform_indices = @transform_1, window_bounds = array<i64: 784, 512>}, {pipeline_mode = #tpu.pipeline_mode<synchronous>, transform_indices = @transform_2, window_bounds = array<i64: 1, 512>}, {pipeline_mode = #tpu.pipeline_mode<synchronous>, transform_indices = @transform_3, window_bounds = array<i64: 512, 512>}, {pipeline_mode = #tpu.pipeline_mode<synchronous>, transform_indices = @transform_4, window_bounds = array<i64: 1, 512>}, {pipeline_mode = #tpu.pipeline_mode<synchronous>, transform_indices = @transform_5, window_bounds = array<i64: 512, 128>}, {pipeline_mode = #tpu.pipeline_mode<synchronous>, transform_indices = @transform_6, window_bounds = array<i64: 1, 128>}, {transform_indices = @transform_7, window_bounds = array<i64: 8, 128>}]} {
    %c0 = arith.constant 0 : index
    %c0_0 = arith.constant 0 : index
    %c0_1 = arith.constant 0 : index
    %0 = vector.load %arg1[%c0, %c0_0, %c0_1] : memref<8x10x784xbf16, #tpu.memory_space<vmem>>, vector<8x10x784xbf16>
    %1 = arith.extf %0 : vector<8x10x784xbf16> to vector<8x10x784xf32>
    %cst = arith.constant dense<0.000000e+00> : vector<8x784xf32>
    %2 = vector.multi_reduction <add>, %1, %cst [1] : vector<8x10x784xf32> to vector<8x784xf32>
    %3 = arith.truncf %2 : vector<8x784xf32> to vector<8x784xbf16>
    %c0_2 = arith.constant 0 : index
    %c0_3 = arith.constant 0 : index
    %4 = vector.load %arg2[%c0_2, %c0_3] : memref<784x512xbf16, #tpu.memory_space<vmem>>, vector<784x512xbf16>
    %cst_4 = arith.constant dense<0.000000e+00> : vector<8x512xf32>
    %5 = tpu.matmul %3, %4, %cst_4 {dimension_numbers = #tpu.dot_dimension_numbers<[1], [0], [0], [1], [0, 0, 1, 1], [], []>} : vector<8x784xbf16>, vector<784x512xbf16>, vector<8x512xf32> -> vector<8x512xf32>
    %c0_5 = arith.constant 0 : index
    %c0_6 = arith.constant 0 : index
    %6 = vector.load %arg3[%c0_5, %c0_6] : memref<1x512xf32, #tpu.memory_space<vmem>>, vector<1x512xf32>
    %7 = vector.broadcast %6 : vector<1x512xf32> to vector<8x512xf32>
    %8 = arith.addf %5, %7 : vector<8x512xf32>
    %cst_7 = arith.constant 0.000000e+00 : f32
    %9 = vector.broadcast %cst_7 : f32 to vector<8x512xf32>
    %10 = arith.maximumf %8, %9 : vector<8x512xf32>
    %11 = arith.truncf %10 : vector<8x512xf32> to vector<8x512xbf16>
    %c0_8 = arith.constant 0 : index
    %c0_9 = arith.constant 0 : index
    %12 = vector.load %arg4[%c0_8, %c0_9] : memref<512x512xbf16, #tpu.memory_space<vmem>>, vector<512x512xbf16>
    %cst_10 = arith.constant dense<0.000000e+00> : vector<8x512xf32>
    %13 = tpu.matmul %11, %12, %cst_10 {dimension_numbers = #tpu.dot_dimension_numbers<[1], [0], [0], [1], [0, 0, 1, 1], [], []>} : vector<8x512xbf16>, vector<512x512xbf16>, vector<8x512xf32> -> vector<8x512xf32>
    %c0_11 = arith.constant 0 : index
    %c0_12 = arith.constant 0 : index
    %14 = vector.load %arg5[%c0_11, %c0_12] : memref<1x512xf32, #tpu.memory_space<vmem>>, vector<1x512xf32>
    %15 = vector.broadcast %14 : vector<1x512xf32> to vector<8x512xf32>
    %16 = arith.addf %13, %15 : vector<8x512xf32>
    %cst_13 = arith.constant 0.000000e+00 : f32
    %17 = vector.broadcast %cst_13 : f32 to vector<8x512xf32>
    %18 = arith.maximumf %16, %17 : vector<8x512xf32>
    %19 = arith.truncf %18 : vector<8x512xf32> to vector<8x512xbf16>
    %c0_14 = arith.constant 0 : index
    %c0_15 = arith.constant 0 : index
    %20 = vector.load %arg6[%c0_14, %c0_15] : memref<512x128xbf16, #tpu.memory_space<vmem>>, vector<512x128xbf16>
    %cst_16 = arith.constant dense<0.000000e+00> : vector<8x128xf32>
    %21 = tpu.matmul %19, %20, %cst_16 {dimension_numbers = #tpu.dot_dimension_numbers<[1], [0], [0], [1], [0, 0, 1, 1], [], []>} : vector<8x512xbf16>, vector<512x128xbf16>, vector<8x128xf32> -> vector<8x128xf32>
    %c0_17 = arith.constant 0 : index
    %c0_18 = arith.constant 0 : index
    %22 = vector.load %arg7[%c0_17, %c0_18] : memref<1x128xf32, #tpu.memory_space<vmem>>, vector<1x128xf32>
    %23 = vector.broadcast %22 : vector<1x128xf32> to vector<8x128xf32>
    %24 = arith.addf %21, %23 : vector<8x128xf32>
    %c0_19 = arith.constant 0 : index
    %c0_20 = arith.constant 0 : index
    %25 = vector.load %arg8[%c0_19, %c0_20] : memref<8x128xf32, #tpu.memory_space<vmem>>, vector<8x128xf32>
    tpu.vector_store %arg8[%c0_19, %c0_20], %24 {strides = array<i32>} : memref<8x128xf32, #tpu.memory_space<vmem>>, vector<8x128xf32>,
    return
  }
  func.func @transform_0(%arg0: i32) -> (i32, i32, i32) {
    %c0_i32 = arith.constant 0 : i32
    %c0_i32_0 = arith.constant 0 : i32
    %c0_i32_1 = arith.constant 0 : i32
    return %arg0, %c0_i32, %c0_i32_0 : i32, i32, i32
  }
  func.func @transform_1(%arg0: i32) -> (i32, i32) {
    %c0_i32 = arith.constant 0 : i32
    %c0_i32_0 = arith.constant 0 : i32
    %c0_i32_1 = arith.constant 0 : i32
    return %c0_i32, %c0_i32_0 : i32, i32
  }
  func.func @transform_2(%arg0: i32) -> (i32, i32) {
    %c0_i32 = arith.constant 0 : i32
    %c0_i32_0 = arith.constant 0 : i32
    %c0_i32_1 = arith.constant 0 : i32
    return %c0_i32, %c0_i32_0 : i32, i32
  }
  func.func @transform_3(%arg0: i32) -> (i32, i32) {
    %c0_i32 = arith.constant 0 : i32
    %c0_i32_0 = arith.constant 0 : i32
    %c0_i32_1 = arith.constant 0 : i32
    return %c0_i32, %c0_i32_0 : i32, i32
  }
  func.func @transform_4(%arg0: i32) -> (i32, i32) {
    %c0_i32 = arith.constant 0 : i32
    %c0_i32_0 = arith.constant 0 : i32
    %c0_i32_1 = arith.constant 0 : i32
    return %c0_i32, %c0_i32_0 : i32, i32
  }
  func.func @transform_5(%arg0: i32) -> (i32, i32) {
    %c0_i32 = arith.constant 0 : i32
    %c0_i32_0 = arith.constant 0 : i32
    %c0_i32_1 = arith.constant 0 : i32
    return %c0_i32, %c0_i32_0 : i32, i32
  }
  func.func @transform_6(%arg0: i32) -> (i32, i32) {
    %c0_i32 = arith.constant 0 : i32
    %c0_i32_0 = arith.constant 0 : i32
    %c0_i32_1 = arith.constant 0 : i32
    return %c0_i32, %c0_i32_0 : i32, i32
  }
  func.func @transform_7(%arg0: i32) -> (i32, i32) {
    %c0_i32 = arith.constant 0 : i32
    %c0_i32_0 = arith.constant 0 : i32
    return %arg0, %c0_i32 : i32, i32
  }
}

</mosaic_0001>

<bundles_post_ra>
// kernel: mlp_forward.1
= control target key start
LH: loop header
LB: loop body
LE: loop exit
PB: predicated region body
PF: predicated region fallthrough
CT: control target
= control target key end

     0   :  { %vm203_vm0 = vcmask 1041408   ;;  %vm1036_vm1 = vcmask 1041409   ;;  %vm1038_vm2 = vcmask 1042434   ;;  %vm1040_vm3 = vcmask 1043459   ;;  %s8465_s1 = inlined_call_operand.vmem [shape: bf16[784,512], index: 1, kind: input, shape index: {}]   ;;  %s8466_s0 = inlined_call_operand.vmem [shape: bf16[8,10,784], index: 0, kind: input, shape index: {}]   ;;  %s8467_s2 = inlined_call_operand.vmem [shape: f32[1,512], index: 2, kind: input, shape index: {}]   ;;  %s8468_s3 = inlined_call_operand.vmem [shape: bf16[512,512], index: 3, kind: input, shape index: {}]   ;;  %s8469_s4 = inlined_call_operand.vmem [shape: f32[1,512], index: 4, kind: input, shape index: {}]   ;;  %s8470_s5 = inlined_call_operand.vmem [shape: bf16[512,128], index: 5, kind: input, shape index: {}]   ;;  %s8471_s6 = inlined_call_operand.vmem [shape: f32[1,128], index: 6, kind: input, shape index: {}]   ;;  %s8472_s7 = inlined_call_operand.vmem [shape: f32[8,128], index: 7, kind: output, shape index: {}]  }
   0x1   :  { %v3885_v0 = vld [vmem:[%s8465_s1 + $0xe0] sm:$0xf]  ;;  %v5229_v1 = vld [vmem:[%s8465_s1 + $0xec] sm:$0xf0]  ;;  %vm1042_vm4 = vcmask 1044484   ;;  %vm1044_vm5 = vcmask 1045509  }
   0x2   :  { %v4013_v2 = vld [vmem:[%s8465_s1 + $0x1e0] sm:$0xf]  ;;  %v3886_v3 = vor.u32 %v5229_v1, %v3885_v0  ;;  %v5261_v4 = vld [vmem:[%s8465_s1 + $0x1ec] sm:$0xf0]  ;;  %vm1046_vm6 = vcmask 1046534   ;;  %vm1048_vm7 = vcmask 1047559  }
   0x3   :  { %v4141_v5 = vld [vmem:[%s8465_s1 + $0x2e0] sm:$0xf]  ;;  %v5293_v6 = vld [vmem:[%s8465_s1 + $0x2ec] sm:$0xf0]  ;;  %v4014_v7 = vor.u32 %v5261_v4, %v4013_v2  ;;  %vm252_vm8 = vcmask 130048   ;;  %vm254_vm9 = vcmask 123904  }
   0x4   :  { %v4142_v8 = vor.u32 %v5293_v6, %v4141_v5  ;;  %v4269_v9 = vld [vmem:[%s8465_s1 + $0x3e0] sm:$0xf]  ;;  %v5325_v10 = vld [vmem:[%s8465_s1 + $0x3ec] sm:$0xf0]  ;;  %2088 = vmatpush.bf16.msra.mxu0 %v3886_v3 }
   0x5   :  { %v3869_v11 = vld [vmem:[%s8465_s1 + $0xc0] sm:$0xf]  ;;  %v4270_v12 = vor.u32 %v5325_v10, %v4269_v9  ;;  %v5225_v13 = vld [vmem:[%s8465_s1 + $0xcc] sm:$0xf0]  ;;  %2101 = vmatpush.bf16.msra.mxu1 %v4014_v7 }
   0x6   :  { %v3997_v14 = vld [vmem:[%s8465_s1 + $0x1c0] sm:$0xf]  ;;  %v5257_v15 = vld [vmem:[%s8465_s1 + $0x1cc] sm:$0xf0]  ;;  %2114 = vmatpush.bf16.msra.mxu2 %v4142_v8  ;;  %v3870_v16 = vor.u32 %v5225_v13, %v3869_v11 }
   0x7   :  { %v3998_v17 = vor.u32 %v5257_v15, %v3997_v14  ;;  %v4125_v18 = vld [vmem:[%s8465_s1 + $0x2c0] sm:$0xf]  ;;  %v5289_v19 = vld [vmem:[%s8465_s1 + $0x2cc] sm:$0xf0]  ;;  %2127 = vmatpush.bf16.msra.mxu3 %v4270_v12 }
   0x8   :  { %v4253_v20 = vld [vmem:[%s8465_s1 + $0x3c0] sm:$0xf]  ;;  %v4126_v21 = vor.u32 %v5289_v19, %v4125_v18  ;;  %v5321_v22 = vld [vmem:[%s8465_s1 + $0x3cc] sm:$0xf0]  ;;  %2089 = vmatpush.bf16.msra.mxu0 %v3870_v16 }
   0x9   :  { %v3853_v23 = vld [vmem:[%s8465_s1 + $0xa0] sm:$0xf]  ;;  %v5221_v24 = vld [vmem:[%s8465_s1 + $0xac] sm:$0xf0]  ;;  %v4254_v25 = vor.u32 %v5321_v22, %v4253_v20  ;;  %2102 = vmatpush.bf16.msra.mxu1 %v3998_v17 }
   0xa   :  { %v3981_v26 = vld [vmem:[%s8465_s1 + $0x1a0] sm:$0xf]  ;;  %v5253_v27 = vld [vmem:[%s8465_s1 + $0x1ac] sm:$0xf0]  ;;  %v3854_v29 = vor.u32 %v5221_v24, %v3853_v23  ;;  %2115 = vmatpush.bf16.msra.mxu2 %v4126_v21 }
   0xb   :  { %v4109_v28 = vld [vmem:[%s8465_s1 + $0x2a0] sm:$0xf]  ;;  %v5285_v30 = vld [vmem:[%s8465_s1 + $0x2ac] sm:$0xf0]  ;;  %v3982_v33 = vor.u32 %v5253_v27, %v3981_v26  ;;  %2128 = vmatpush.bf16.msra.mxu3 %v4254_v25 }
   0xc   :  { %v4237_v31 = vld [vmem:[%s8465_s1 + $0x3a0] sm:$0xf]  ;;  %v5317_v32 = vld [vmem:[%s8465_s1 + $0x3ac] sm:$0xf0]  ;;  %v4110_v34 = vor.u32 %v5285_v30, %v4109_v28  ;;  %2090 = vmatpush.bf16.msra.mxu0 %v3854_v29 }
   0xd   :  { %v3837_v35 = vld [vmem:[%s8465_s1 + $0x80] sm:$0xf]  ;;  %v5217_v36 = vld [vmem:[%s8465_s1 + $0x8c] sm:$0xf0]  ;;  %v4238_v38 = vor.u32 %v5317_v32, %v4237_v31  ;;  %2103 = vmatpush.bf16.msra.mxu1 %v3982_v33  ;;  %v5851_v32 = vld [vmem:[%s8465_s1 + $0xe4] sm:$0xf] }
   0xe   :  { %v3965_v37 = vld [vmem:[%s8465_s1 + $0x180] sm:$0xf]  ;;  %v5249_v39 = vld [vmem:[%s8465_s1 + $0x18c] sm:$0xf0]  ;;  %v3838_v44 = vor.u32 %v5217_v36, %v3837_v35  ;;  %2116 = vmatpush.bf16.msra.mxu2 %v4110_v34 }
   0xf   :  { %v4093_v40 = vld [vmem:[%s8465_s1 + $0x280] sm:$0xf]  ;;  %v5281_v41 = vld [vmem:[%s8465_s1 + $0x28c] sm:$0xf0]  ;;  %v3966_v46 = vor.u32 %v5249_v39, %v3965_v37  ;;  %2129 = vmatpush.bf16.msra.mxu3 %v4238_v38  ;;  %v5864_v37 = vld [vmem:[%s8465_s1 + $0xf0] sm:$0xf0] }
  0x10   :  { %v4221_v42 = vld [vmem:[%s8465_s1 + $0x380] sm:$0xf]  ;;  %v5313_v43 = vld [vmem:[%s8465_s1 + $0x38c] sm:$0xf0]  ;;  %v4094_v47 = vor.u32 %v5281_v41, %v4093_v40  ;;  %2091 = vmatpush.bf16.msra.mxu0 %v3838_v44  ;;  %v5869_v38 = vld [vmem:[%s8466_s0 + $0x8] sm:$0xff] }
  0x11   :  { %v3821_v45 = vld [vmem:[%s8465_s1 + $0x60] sm:$0xf]  ;;  %v5213_v48 = vld [vmem:[%s8465_s1 + $0x6c] sm:$0xf0]  ;;  %v4222_v51 = vor.u32 %v5313_v43, %v4221_v42  ;;  %2104 = vmatpush.bf16.msra.mxu1 %v3966_v46  ;;  %v5874_v39 = vld [vmem:[%s8466_s0 + $0x24] sm:$0x11] }
  0x12   :  { %v3949_v49 = vld [vmem:[%s8465_s1 + $0x160] sm:$0xf]  ;;  %v5245_v50 = vld [vmem:[%s8465_s1 + $0x16c] sm:$0xf0]  ;;  %v3822_v58 = vor.u32 %v5213_v48, %v3821_v45  ;;  %2117 = vmatpush.bf16.msra.mxu2 %v4094_v47  ;;  %v5893_v44 = vld [vmem:[%s8466_s0 + $0x78] sm:$0xff]  ;;  %v93_v45 = vunpack.c.l.bf16 %v5869_v38  ;;  %v100_v46 = vunpack.c.l.bf16 %v5874_v39  ;;  %v3890_v47 = vor.u32 %v5851_v32, %v5864_v37 }
  0x13   :  { %v4077_v52 = vld [vmem:[%s8465_s1 + $0x260] sm:$0xf]  ;;  %v5277_v53 = vld [vmem:[%s8465_s1 + $0x26c] sm:$0xf0]  ;;  %v3950_v62 = vor.u32 %v5245_v50, %v3949_v49  ;;  %2130 = vmatpush.bf16.msra.mxu3 %v4222_v51  ;;  %v5902_v48 = vld [vmem:[%s8466_s0 + $0x94] sm:$0x11] }
  0x14   :  { %v4205_v54 = vld [vmem:[%s8465_s1 + $0x360] sm:$0xf]  ;;  %v5309_v55 = vld [vmem:[%s8465_s1 + $0x36c] sm:$0xf0]  ;;  %v4078_v63 = vor.u32 %v5277_v53, %v4077_v52  ;;  %2092 = vmatpush.bf16.msra.mxu0 %v3822_v58  ;;  %v121_v53 = vunpack.c.l.bf16 %v5893_v44 }
  0x15   :  { %v3805_v56 = vld [vmem:[%s8465_s1 + $0x40] sm:$0xf]  ;;  %v5209_v57 = vld [vmem:[%s8465_s1 + $0x4c] sm:$0xf0]  ;;  %v4206_v3 = vor.u32 %v5309_v55, %v4205_v54  ;;  %2105 = vmatpush.bf16.msra.mxu1 %v3950_v62  ;;  %v5920_v54 = vld [vmem:[%s8466_s0 + $0xe8] sm:$0xff] }
  0x16   :  { %v3933_v59 = vld [vmem:[%s8465_s1 + $0x140] sm:$0xf]  ;;  %v5241_v60 = vld [vmem:[%s8465_s1 + $0x14c] sm:$0xf0]  ;;  %v3806_v13 = vor.u32 %v5209_v57, %v3805_v56  ;;  %2118 = vmatpush.bf16.msra.mxu2 %v4078_v63  ;;  %v5925_v55 = vld [vmem:[%s8466_s0 + $0x104] sm:$0x11]  ;;  %v128_v57 = vunpack.c.l.bf16 %v5902_v48 }
  0x17   :  { %v4061_v61 = vld [vmem:[%s8465_s1 + $0x240] sm:$0xf]  ;;  %v5273_v0 = vld [vmem:[%s8465_s1 + $0x24c] sm:$0xf0]  ;;  %v3934_v17 = vor.u32 %v5241_v60, %v3933_v59  ;;  %2131 = vmatpush.bf16.msra.mxu3 %v4206_v3  ;;  %v220_v60 = vsel %vm203_vm0, %v100_v46, 0.0  ;;  %v5944_v62 = vld [vmem:[%s8466_s0 + $0x158] sm:$0xff] }
  0x18   :  { %v4189_v1 = vld [vmem:[%s8465_s1 + $0x340] sm:$0xf]  ;;  %v5305_v2 = vld [vmem:[%s8465_s1 + $0x34c] sm:$0xf0]  ;;  %v4062_v18 = vor.u32 %v5273_v0, %v4061_v61  ;;  %2093 = vmatpush.bf16.msra.mxu0 %v3806_v13  ;;  %v5949_v63 = vld [vmem:[%s8466_s0 + $0x174] sm:$0x11]  ;;  %v149_v0 = vunpack.c.l.bf16 %v5920_v54  ;;  %v221_v3 = vadd.f32 %v220_v60, %v93_v45 }
  0x19   :  { %v5743_v4 = vld [vmem:[%s8465_s1 + $0x20] sm:$0xf]  ;;  %v5748_v5 = vld [vmem:[%s8465_s1 + $0x2c] sm:$0xf0]  ;;  %v4190_v22 = vor.u32 %v5305_v2, %v4189_v1  ;;  %2106 = vmatpush.bf16.msra.mxu1 %v3934_v17  ;;  %v156_v1 = vunpack.c.l.bf16 %v5925_v55 }
  0x1a   :  { %v5753_v6 = vld [vmem:[%s8465_s1 + $0x120] sm:$0xf]  ;;  %v5758_v7 = vld [vmem:[%s8465_s1 + $0x12c] sm:$0xf0]  ;;  %v3790_v26 = vor.u32 %v5748_v5, %v5743_v4  ;;  %2119 = vmatpush.bf16.msra.mxu2 %v4062_v18 }
  0x1b   :  { %v5763_v8 = vld [vmem:[%s8465_s1 + $0x220] sm:$0xf]  ;;  %v5768_v9 = vld [vmem:[%s8465_s1 + $0x22c] sm:$0xf0]  ;;  %v3918_v27 = vor.u32 %v5758_v7, %v5753_v6  ;;  %2132 = vmatpush.bf16.msra.mxu3 %v4190_v22  ;;  %v177_v7 = vunpack.c.l.bf16 %v5944_v62 }
  0x1c   :  { %v5773_v10 = vld [vmem:[%s8465_s1 + $0x320] sm:$0xf]  ;;  %v5778_v11 = vld [vmem:[%s8465_s1 + $0x32c] sm:$0xf0]  ;;  %v4046_v28 = vor.u32 %v5768_v9, %v5763_v8  ;;  %2094 = vmatpush.bf16.msra.mxu0 %v3790_v26  ;;  %v184_v8 = vunpack.c.l.bf16 %v5949_v63 }
  0x1d   :  { %v5783_v12 = vld [vmem:[%s8465_s1] sm:$0xf]  ;;  %v5788_v14 = vld [vmem:[%s8465_s1 + $0xc] sm:$0xf0]  ;;  %v4174_v29 = vor.u32 %v5778_v11, %v5773_v10  ;;  %2107 = vmatpush.bf16.msra.mxu1 %v3918_v27 }
  0x1e   :  { %v5793_v15 = vld [vmem:[%s8465_s1 + $0x100] sm:$0xf]  ;;  %v5798_v16 = vld [vmem:[%s8465_s1 + $0x10c] sm:$0xf0]  ;;  %v3774_v33 = vor.u32 %v5788_v14, %v5783_v12  ;;  %2120 = vmatpush.bf16.msra.mxu2 %v4046_v28  ;;  %v222_v12 = vrot.slane %v221_v3, 4  ;;  %v336_v14 = vsel %vm203_vm0, %v128_v57, 0.0 }
  0x1f   :  { %v5803_v19 = vld [vmem:[%s8465_s1 + $0x200] sm:$0xf]  ;;  %v5808_v20 = vld [vmem:[%s8465_s1 + $0x20c] sm:$0xf0]  ;;  %v3902_v34 = vor.u32 %v5798_v16, %v5793_v15  ;;  %2133 = vmatpush.bf16.msra.mxu3 %v4174_v29  ;;  %v450_v16 = vsel %vm203_vm0, %v156_v1, 0.0  ;;  %v564_v26 = vsel %vm203_vm0, %v184_v8, 0.0 }
  0x20   :  { %v5813_v21 = vld [vmem:[%s8465_s1 + $0x300] sm:$0xf]  ;;  %v5818_v23 = vld [vmem:[%s8465_s1 + $0x30c] sm:$0xf0]  ;;  %v4030_v35 = vor.u32 %v5808_v20, %v5803_v19  ;;  %2095 = vmatpush.bf16.msra.mxu0 %v3774_v33  ;;  %v223_v18 = vadd.f32 %v222_v12, %v221_v3  ;;  %v337_v20 = vadd.f32 %v336_v14, %v121_v53 }
  0x21   :  { %v5823_v24 = vld [vmem:[%s8465_s1 + $0x4e0] sm:$0xf]  ;;  %v5828_v25 = vld [vmem:[%s8465_s1 + $0x4ec] sm:$0xf0]  ;;  %v4158_v36 = vor.u32 %v5818_v23, %v5813_v21  ;;  %2108 = vmatpush.bf16.msra.mxu1 %v3902_v34  ;;  %v565_v34 = vadd.f32 %v564_v26, %v177_v7 }
  0x22   :  { %v5841_v30 = vld [vmem:[%s8465_s1 + $0x5e0] sm:$0xf]  ;;  %v5846_v31 = vld [vmem:[%s8465_s1 + $0x5ec] sm:$0xf0]  ;;  %v4398_v40 = vor.u32 %v5828_v25, %v5823_v24  ;;  %2121 = vmatpush.bf16.msra.mxu2 %v4030_v35  ;;  %v451_v24 = vadd.f32 %v450_v16, %v149_v0  ;;  %v224_v28 = vrot.slane %v223_v18, 2 }
  0x23   :  { %v4526_v41 = vor.u32 %v5846_v31, %v5841_v30  ;;  %v5883_v42 = vld [vmem:[%s8466_s0 + $0x40] sm:$0xff]  ;;  %v5907_v49 = vld [vmem:[%s8466_s0 + $0xb0] sm:$0xff]  ;;  %2134 = vmatpush.bf16.msra.mxu3 %v4158_v36  ;;  %v338_v30 = vrot.slane %v337_v20, 4  ;;  %v566_v57 = vrot.slane %v565_v34, 4 }
  0x24   :  { %v5888_v43 = vld [vmem:[%s8466_s0 + $0x5c] sm:$0x11]  ;;  %v5912_v50 = vld [vmem:[%s8466_s0 + $0xcc] sm:$0x11]  ;;  %v107_v51 = vunpack.c.l.bf16 %v5883_v42  ;;  %v135_v58 = vunpack.c.l.bf16 %v5907_v49  ;;  %2140 = vmatpush.bf16.msrb.mxu0 %v4398_v40  ;;  %v452_v32 = vrot.slane %v451_v24, 4  ;;  %v225_v37 = vadd.f32 %v224_v28, %v223_v18 }
  0x25   :  { %v114_v52 = vunpack.c.l.bf16 %v5888_v43  ;;  %v5930_v56 = vld [vmem:[%s8466_s0 + $0x120] sm:$0xff]  ;;  %v142_v59 = vunpack.c.l.bf16 %v5912_v50  ;;  %v5957_v4 = vld [vmem:[%s8466_s0 + $0x190] sm:$0xff]  ;;  %2153 = vmatpush.bf16.msrb.mxu1 %v4526_v41  ;;  %v339_v46 = vadd.f32 %v338_v30, %v337_v20  ;;  %v567_v41 = vadd.f32 %v566_v57, %v565_v34 }
  0x26   :  { %v5939_v61 = vld [vmem:[%s8466_s0 + $0x13c] sm:$0x11]  ;;  %v163_v2 = vunpack.c.l.bf16 %v5930_v56  ;;  %v5962_v5 = vld [vmem:[%s8466_s0 + $0x1ac] sm:$0x11]  ;;  %v191_v10 = vunpack.c.l.bf16 %v5957_v4  ;;  %v226_v23 = vrot.slane %v225_v37, 1 }
  0x27   :  { %v170_v6 = vunpack.c.l.bf16 %v5939_v61  ;;  %v279_v9 = vsel %vm203_vm0, %v114_v52, 0.0  ;;  %v198_v11 = vunpack.c.l.bf16 %v5962_v5  ;;  %v393_v15 = vsel %vm203_vm0, %v142_v59, 0.0  ;;  %2179 = vmatpush.bf16.msrb.mxu3 %v3890_v47  ;;  %v4541_v28 = vld [vmem:[%s8465_s1 + $0x600] sm:$0xf]  ;;  %v5993_v34 = vld [vmem:[%s8465_s1 + $0x1f0] sm:$0xf0] }
  0x28   :  { %v280_v13 = vadd.f32 %v279_v9, %v107_v51  ;;  %v394_v22 = vadd.f32 %v393_v15, %v135_v58  ;;  %v453_v52 = vadd.f32 %v452_v32, %v451_v24  ;;  %v340_v40 = vrot.slane %v339_v46, 2 }
  0x29   :  { %v507_v17 = vsel %vm203_vm0, %v170_v6, 0.0  ;;  %v621_v27 = vsel %vm203_vm0, %v198_v11, 0.0  ;;  %v227_v0 = vadd.f32 %v226_v23, %v225_v37  ;;  %v568_v8 = vrot.slane %v567_v41, 2  ;;  %v5385_v23 = vld [vmem:[%s8465_s1 + $0x5cc] sm:$0xf0] }
  0x2a   :  { %v281_v19 = vrot.slane %v280_v13, 4  ;;  %v508_v25 = vadd.f32 %v507_v17, %v163_v2  ;;  %v395_v31 = vrot.slane %v394_v22, 4  ;;  %v622_v35 = vadd.f32 %v621_v27, %v191_v10 }
  0x2b   :  { %v454_v59 = vrot.slane %v453_v52, 2  ;;  %v341_v2 = vadd.f32 %v340_v40, %v339_v46  ;;  %v569_v16 = vadd.f32 %v568_v8, %v567_v41  ;;  %v3871_v41 = vld [vmem:[%s8465_s1 + $0xd0] sm:$0xf0]  ;;  %v6039_v8 = vld [vmem:[%s8466_s0 + $0x38] sm:$0xff] }
  0x2c   :  { %v282_v29 = vadd.f32 %v281_v19, %v280_v13  ;;  %v509_v33 = vrot.slane %v508_v25, 4  ;;  %v396_v51 = vadd.f32 %v395_v31, %v394_v22  ;;  %v623_v21 = vrot.slane %v622_v35, 4 }
  0x2d   :  { %v455_v6 = vadd.f32 %v454_v59, %v453_v52  ;;  %v342_v11 = vrot.slane %v341_v2, 1  ;;  %v664_v13 = vpack.c.bf16 %v227_v0, %v227_v0  ;;  %v570_v26 = vrot.slane %v569_v16, 1  ;;  %v5353_v52 = vld [vmem:[%s8465_s1 + $0x4cc] sm:$0xf0]  ;;  %v6021_v0 = vld [vmem:[%s8465_s1 + $0x1d0] sm:$0xf0] }
  0x2e   :  { %v283_v45 = vrot.slane %v282_v29, 2  ;;  %v510_v53 = vadd.f32 %v509_v33, %v508_v25  ;;  %v397_v58 = vrot.slane %v396_v51, 2  ;;  %v624_v47 = vadd.f32 %v623_v21, %v622_v35  ;;  %v5988_v33 = vld [vmem:[%s8465_s1 + $0x1e4] sm:$0xf] }
  0x2f   :  { %v456_v14 = vrot.slane %v455_v6, 1  ;;  %v343_v18 = vadd.f32 %v342_v11, %v341_v2  ;;  %v982_v22 = vunpack.c.l.b16 %v664_v13  ;;  %v571_v35 = vadd.f32 %v570_v26, %v569_v16  ;;  %v6045_v13 = vld [vmem:[%s8466_s0 + $0x54] sm:$0x11]  ;;  %v6079_v26 = vld [vmem:[%s8466_s0 + $0xfc] sm:$0x11] }
  0x30   :  { %v284_v36 = vadd.f32 %v283_v45, %v282_v29  ;;  %v511_v60 = vrot.slane %v510_v53, 2  ;;  %v398_v3 = vadd.f32 %v397_v58, %v396_v51  ;;  %v625_v9 = vrot.slane %v624_v47, 2  ;;  %v5393_v29 = vld [vmem:[%s8465_s1 + $0x60c] sm:$0xf0]  ;;  %v4381_v51 = vld [vmem:[%s8465_s1 + $0x4c0] sm:$0xf] }
  0x31   :  { %v457_v24 = vadd.f32 %v456_v14, %v455_v6  ;;  %v678_v30 = vpack.c.bf16 %v343_v18, %v343_v18  ;;  %v706_v40 = vpack.c.bf16 %v571_v35, %v571_v35  ;;  %v4542_v2 = vor.u32 %v5393_v29, %v4541_v28  ;;  %v6029_v6 = vld [vmem:[%s8466_s0] sm:$0xff]  ;;  %v6050_v14 = vld [vmem:[%s8466_s0 + $0x70] sm:$0xff]  ;;  %v6108_v35 = vld [vmem:[%s8466_s0 + $0x188] sm:$0xff] }
  0x32   :  { %v285_v1 = vrot.slane %v284_v36, 1  ;;  %v512_v7 = vadd.f32 %v511_v60, %v510_v53  ;;  %v399_v12 = vrot.slane %v398_v3, 1  ;;  %v626_v17 = vadd.f32 %v625_v9, %v624_v47  ;;  %v4509_v53 = vld [vmem:[%s8465_s1 + $0x5c0] sm:$0xf]  ;;  %v6016_v47 = vld [vmem:[%s8465_s1 + $0x1c4] sm:$0xf] }
  0x33   :  { %v692_v45 = vpack.c.bf16 %v457_v24, %v457_v24  ;;  %v996_v57 = vunpack.c.l.b16 %v678_v30  ;;  %v1024_v9 = vunpack.c.l.b16 %v706_v40  ;;  %2173 = vmatpush.bf16.msrb.mxu2 %v4542_v2  ;;  %v6073_v24 = vld [vmem:[%s8466_s0 + $0xe0] sm:$0xff]  ;;  %v6089_v28 = vld [vmem:[%s8466_s0 + $0x134] sm:$0x11]  ;;  %v91_v29 = vunpack.c.l.bf16 %v6029_v6  ;;  %8477 = vst [vmem:[#allocation2_spill] sm:$0xff] %v6108_v35 }
  0x34   :  { %v286_v10 = vadd.f32 %v285_v1, %v284_v36  ;;  %v513_v15 = vrot.slane %v512_v7, 1  ;;  %v400_v19 = vadd.f32 %v399_v12, %v398_v3  ;;  %v627_v27 = vrot.slane %v626_v17, 1  ;;  %v5223_v36 = vld [vmem:[%s8465_s1 + $0xc4] sm:$0xf] }
  0x35   :  { %v1010_v59 = vunpack.c.l.b16 %v692_v45  ;;  %v4018_v3 = vor.u32 %v5988_v33, %v5993_v34  ;;  %v4382_v12 = vor.u32 %v5353_v52, %v4381_v51  ;;  %v3874_v18 = vor.u32 %v5223_v36, %v3871_v41  ;;  %v6098_v33 = vld [vmem:[%s8466_s0 + $0x150] sm:$0xff]  ;;  %v6117_v52 = vld [vmem:[%s8466_s0 + $0x1a4] sm:$0x11] }
  0x36   :  { %v671_v20 = vpack.c.bf16 %v286_v10, %v286_v10  ;;  %v514_v25 = vadd.f32 %v513_v15, %v512_v7  ;;  %v685_v31 = vpack.c.bf16 %v400_v19, %v400_v19  ;;  %v628_v37 = vadd.f32 %v627_v27, %v626_v17  ;;  %v6034_v7 = vld [vmem:[%s8466_s0 + $0x1c] sm:$0x11]  ;;  %v6055_v15 = vld [vmem:[%s8466_s0 + $0x8c] sm:$0x11]  ;;  %8478 = vst [vmem:[#allocation3_spill] sm:$0xff] %v6117_v52 }
  0x37   :  { %v4510_v17 = vor.u32 %v5385_v23, %v4509_v53  ;;  %v4002_v19 = vor.u32 %v6016_v47, %v6021_v0  ;;  %2141 = vmatpush.bf16.msrb.mxu0 %v4382_v12  ;;  %v6084_v27 = vld [vmem:[%s8466_s0 + $0x118] sm:$0xff]  ;;  %v98_v30 = vunpack.c.l.bf16 %v6034_v7  ;;  %2180 = vmatpush.bf16.msrb.mxu3 %v3874_v18  ;;  %v6103_v34 = vld [vmem:[%s8466_s0 + $0x16c] sm:$0x11]  ;;  %v119_v45 = vunpack.c.l.bf16 %v6050_v14 }
  0x38   :  { %v989_v32 = vunpack.c.l.b16 %v671_v20  ;;  %v699_v46 = vpack.c.bf16 %v514_v25, %v514_v25  ;;  %v1003_v21 = vunpack.c.l.b16 %v685_v31  ;;  %v713_v58 = vpack.c.bf16 %v628_v37, %v628_v37  ;;  %v6063_v20 = vld [vmem:[%s8466_s0 + $0xa8] sm:$0xff] }
  0x39   :  { %v105_v31 = vunpack.c.l.bf16 %v6039_v8  ;;  %2154 = vmatpush.bf16.msrb.mxu1 %v4510_v17  ;;  %v112_v37 = vunpack.c.l.bf16 %v6045_v13  ;;  %v133_v53 = vunpack.c.l.bf16 %v6063_v20  ;;  %v154_v36 = vunpack.c.l.bf16 %v6079_v26 }
  0x3a   :  { %v1017_v60 = vunpack.c.l.b16 %v699_v46  ;;  %v1057_v1 = vsel %vm1036_vm1, %v989_v32, %v982_v22  ;;  %v1031_v10 = vunpack.c.l.b16 %v713_v58  ;;  %v6068_v22 = vld [vmem:[%s8466_s0 + $0xc4] sm:$0x11]  ;;  %v126_v46 = vunpack.c.l.bf16 %v6055_v15 }
  0x3b   :  { %v1058_v11 = vsel %vm1038_vm2, %v996_v57, %v1057_v1  ;;  %v140_v57 = vunpack.c.l.bf16 %v6068_v22  ;;  %v161_v40 = vunpack.c.l.bf16 %v6084_v27  ;;  %v168_v58 = vunpack.c.l.bf16 %v6089_v28 }
  0x3c   :  { %v1059_v16 = vsel %vm1040_vm3, %v1003_v21, %v1058_v11  ;;  %v147_v21 = vunpack.c.l.bf16 %v6073_v24  ;;  %v182_v41 = vunpack.c.l.bf16 %v6103_v34  ;;  %v189_v47 = vunpack.c.l.bf16 %v6108_v35 }
  0x3d   :  { %v1060_v25 = vsel %vm1042_vm4, %v1010_v59, %v1059_v16  ;;  %v196_v0 = vunpack.c.l.bf16 %v6117_v52  ;;  %v204_v1 = vsel %vm203_vm0, %v98_v30, 0.0  ;;  %v263_v2 = vsel %vm203_vm0, %v112_v37, 0.0 }
  0x3e   :  { %v1061_v32 = vsel %vm1044_vm5, %v1017_v60, %v1060_v25  ;;  %v175_v60 = vunpack.c.l.bf16 %v6098_v33  ;;  %v264_v11 = vadd.f32 %v263_v2, %v105_v31  ;;  %v377_v16 = vsel %vm203_vm0, %v140_v57, 0.0 }
  0x3f   :  { %v1062_v51 = vsel %vm1046_vm6, %v1024_v9, %v1061_v32  ;;  %v320_v9 = vsel %vm203_vm0, %v126_v46, 0.0  ;;  %v378_v17 = vadd.f32 %v377_v16, %v133_v53  ;;  %v434_v18 = vsel %vm203_vm0, %v154_v36, 0.0 }
  0x40   :  { %v1063_v23 = vsel %vm1048_vm7, %v1031_v10, %v1062_v51  ;;  %v205_v10 = vadd.f32 %v204_v1, %v91_v29  ;;  %v321_v12 = vadd.f32 %v320_v9, %v119_v45  ;;  %v491_v25 = vsel %vm203_vm0, %v168_v58, 0.0 }
  0x41   :  { %v6126_v59 = vpack.c.b16 %v1063_v23, %v1063_v23  ;;  %v548_v32 = vsel %vm203_vm0, %v182_v41, 0.0  ;;  %v265_v51 = vrot.slane %v264_v11, 4  ;;  %v435_v23 = vadd.f32 %v434_v18, %v147_v21 }
  0x42   :  { %v206_v30 = vrot.slane %v205_v10, 4  ;;  %v322_v37 = vrot.slane %v321_v12, 4  ;;  %v379_v46 = vrot.slane %v378_v17, 4  ;;  %v492_v52 = vadd.f32 %v491_v25, %v161_v40 }
  0x43   :  { %8479 = vst [vmem:[#allocation4_spill] sm:$0xff] %v6126_v59  ;;  %2122 = vmatmul.bf16.vlgmr.msra.gmra.mxu2 %v6126_v59  ;;  %v549_v59 = vadd.f32 %v548_v32, %v175_v60  ;;  %v605_v29 = vsel %vm203_vm0, %v196_v0, 0.0  ;;  %v266_v45 = vadd.f32 %v265_v51, %v264_v11 }
  0x44   :  { %2192 = vmatpush.bf16.msra.mxu2 %v4018_v3  ;;  %v207_v31 = vadd.f32 %v206_v30, %v205_v10  ;;  %v323_v57 = vadd.f32 %v322_v37, %v321_v12  ;;  %v436_v3 = vrot.slane %v435_v23, 4  ;;  %v380_v53 = vadd.f32 %v379_v46, %v378_v17 }
  0x45   :  { %v493_v36 = vrot.slane %v492_v52, 4  ;;  %v550_v1 = vrot.slane %v549_v59, 4  ;;  %v606_v58 = vadd.f32 %v605_v29, %v189_v47  ;;  %v267_v41 = vrot.slane %v266_v45, 2 }
  0x46   :  { %v208_v2 = vrot.slane %v207_v31, 2  ;;  %v324_v9 = vrot.slane %v323_v57, 2  ;;  %v437_v16 = vadd.f32 %v436_v3, %v435_v23  ;;  %v381_v35 = vrot.slane %v380_v53, 2 }
  0x47   :  { %v494_v21 = vadd.f32 %v493_v36, %v492_v52  ;;  %v551_v18 = vadd.f32 %v550_v1, %v549_v59  ;;  %v607_v40 = vrot.slane %v606_v58, 4  ;;  %v268_v25 = vadd.f32 %v267_v41, %v266_v45 }
  0x48   :  { %2193 = vmatpush.bf16.msra.mxu2 %v4002_v19  ;;  %v209_v60 = vadd.f32 %v208_v2, %v207_v31  ;;  %v325_v0 = vadd.f32 %v324_v9, %v323_v57  ;;  %v438_v10 = vrot.slane %v437_v16, 2  ;;  %v382_v11 = vadd.f32 %v381_v35, %v380_v53 }
  0x49   :  { %v495_v12 = vrot.slane %v494_v21, 2  ;;  %v552_v32 = vrot.slane %v551_v18, 2  ;;  %v608_v19 = vadd.f32 %v607_v40, %v606_v58  ;;  %v269_v30 = vrot.slane %v268_v25, 1 }
  0x4a   :  { %v210_v17 = vrot.slane %v209_v60, 1  ;;  %v326_v51 = vrot.slane %v325_v0, 1  ;;  %v439_v47 = vadd.f32 %v438_v10, %v437_v16  ;;  %v383_v37 = vrot.slane %v382_v11, 1 }
  0x4b   :  { %v496_v46 = vadd.f32 %v495_v12, %v494_v21  ;;  %v553_v29 = vadd.f32 %v552_v32, %v551_v18  ;;  %v609_v23 = vrot.slane %v608_v19, 2  ;;  %v270_v52 = vadd.f32 %v269_v30, %v268_v25 }
  0x4c   :  { %v211_v3 = vadd.f32 %v210_v17, %v209_v60  ;;  %v327_v59 = vadd.f32 %v326_v51, %v325_v0  ;;  %v440_v36 = vrot.slane %v439_v47, 1  ;;  %v384_v31 = vadd.f32 %v383_v37, %v382_v11 }
  0x4d   :  { %v497_v45 = vrot.slane %v496_v46, 1  ;;  %v554_v57 = vrot.slane %v553_v29, 1  ;;  %v610_v1 = vadd.f32 %v609_v23, %v608_v19  ;;  %v669_v2 = vpack.c.bf16 %v270_v52, %v270_v52 }
  0x4e   :  { %v441_v35 = vadd.f32 %v440_v36, %v439_v47  ;;  %v662_v53 = vpack.c.bf16 %v211_v3, %v211_v3  ;;  %v676_v58 = vpack.c.bf16 %v327_v59, %v327_v59  ;;  %v683_v16 = vpack.c.bf16 %v384_v31, %v384_v31 }
  0x4f   :  { %v498_v41 = vadd.f32 %v497_v45, %v496_v46  ;;  %v555_v9 = vadd.f32 %v554_v57, %v553_v29  ;;  %v611_v40 = vrot.slane %v610_v1, 1  ;;  %v987_v18 = vunpack.c.l.b16 %v669_v2 }
  0x50   :  { %v690_v10 = vpack.c.bf16 %v441_v35, %v441_v35  ;;  %v980_v21 = vunpack.c.l.b16 %v662_v53  ;;  %v994_v12 = vunpack.c.l.b16 %v676_v58  ;;  %v1001_v32 = vunpack.c.l.b16 %v683_v16 }
  0x51   :  { %v612_v60 = vadd.f32 %v611_v40, %v610_v1  ;;  %v697_v25 = vpack.c.bf16 %v498_v41, %v498_v41  ;;  %v704_v0 = vpack.c.bf16 %v555_v9, %v555_v9  ;;  %v94_v19 = vunpack.c.h.bf16 %v5869_v38 }
  0x52   :  { %v1008_v11 = vunpack.c.l.b16 %v690_v10  ;;  %v1037_v17 = vsel %vm1036_vm1, %v987_v18, %v980_v21  ;;  %v101_v30 = vunpack.c.h.bf16 %v5874_v39  ;;  %v108_v23 = vunpack.c.h.bf16 %v5883_v42 }
  0x53   :  { %v711_v51 = vpack.c.bf16 %v612_v60, %v612_v60  ;;  %v1015_v47 = vunpack.c.l.b16 %v697_v25  ;;  %v1022_v37 = vunpack.c.l.b16 %v704_v0  ;;  %v1039_v46 = vsel %vm1038_vm2, %v994_v12, %v1037_v17 }
  0x54   :  { %v1041_v29 = vsel %vm1040_vm3, %v1001_v32, %v1039_v46  ;;  %v115_v3 = vunpack.c.h.bf16 %v5888_v43  ;;  %v122_v52 = vunpack.c.h.bf16 %v5893_v44  ;;  %v129_v38 = vunpack.c.h.bf16 %v5902_v48 }
  0x55   :  { %v1029_v59 = vunpack.c.l.b16 %v711_v51  ;;  %v1043_v36 = vsel %vm1042_vm4, %v1008_v11, %v1041_v29  ;;  %v136_v39 = vunpack.c.h.bf16 %v5907_v49  ;;  %v143_v45 = vunpack.c.h.bf16 %v5912_v50 }
  0x56   :  { %v1045_v31 = vsel %vm1044_vm5, %v1015_v47, %v1043_v36  ;;  %v150_v57 = vunpack.c.h.bf16 %v5920_v54  ;;  %v157_v1 = vunpack.c.h.bf16 %v5925_v55  ;;  %v164_v43 = vunpack.c.h.bf16 %v5930_v56 }
  0x57   :  { %v1047_v42 = vsel %vm1046_vm6, %v1022_v37, %v1045_v31  ;;  %v171_v44 = vunpack.c.h.bf16 %v5939_v61  ;;  %v178_v35 = vunpack.c.h.bf16 %v5944_v62  ;;  %v185_v49 = vunpack.c.h.bf16 %v5949_v63 }
  0x58   :  { %v1049_v48 = vsel %vm1048_vm7, %v1029_v59, %v1047_v42  ;;  %v192_v53 = vunpack.c.h.bf16 %v5957_v4  ;;  %v199_v50 = vunpack.c.h.bf16 %v5962_v5  ;;  %v228_v54 = vsel %vm203_vm0, %v101_v30, 0.0 }
  0x59   :  { %v6164_v2 = vpack.c.b16 %v1049_v48, %v1049_v48  ;;  %v287_v55 = vsel %vm203_vm0, %v115_v3, 0.0  ;;  %v344_v56 = vsel %vm203_vm0, %v129_v38, 0.0  ;;  %v229_v58 = vadd.f32 %v228_v54, %v94_v19 }
  0x5a   :  { %v288_v61 = vadd.f32 %v287_v55, %v108_v23  ;;  %v345_v41 = vadd.f32 %v344_v56, %v122_v52  ;;  %v401_v62 = vsel %vm203_vm0, %v143_v45, 0.0  ;;  %v458_v4 = vsel %vm203_vm0, %v157_v1, 0.0 }
  0x5b   :  { %2096 = vmatmul.bf16.vlgmr.msra.gmra.mxu0 %v6164_v2  ;;  %v402_v63 = vadd.f32 %v401_v62, %v136_v39  ;;  %v515_v5 = vsel %vm203_vm0, %v171_v44, 0.0  ;;  %v572_v9 = vsel %vm203_vm0, %v185_v49, 0.0  ;;  %v230_v40 = vrot.slane %v229_v58, 4 }
  0x5c   :  { %v289_v16 = vrot.slane %v288_v61, 4  ;;  %v346_v10 = vrot.slane %v345_v41, 4  ;;  %v459_v21 = vadd.f32 %v458_v4, %v150_v57  ;;  %v516_v12 = vadd.f32 %v515_v5, %v164_v43 }
  0x5d   :  { %v403_v18 = vrot.slane %v402_v63, 4  ;;  %v573_v60 = vadd.f32 %v572_v9, %v178_v35  ;;  %v629_v25 = vsel %vm203_vm0, %v199_v50, 0.0  ;;  %v231_v0 = vadd.f32 %v230_v40, %v229_v58 }
  0x5e   :  { %v290_v32 = vadd.f32 %v289_v16, %v288_v61  ;;  %v347_v11 = vadd.f32 %v346_v10, %v345_v41  ;;  %v460_v17 = vrot.slane %v459_v21, 4  ;;  %v517_v30 = vrot.slane %v516_v12, 4 }
  0x5f   :  { %v404_v19 = vadd.f32 %v403_v18, %v402_v63  ;;  %v574_v51 = vrot.slane %v573_v60, 4  ;;  %v630_v47 = vadd.f32 %v629_v25, %v192_v53  ;;  %v232_v37 = vrot.slane %v231_v0, 2  ;;  %v5349_v18 = vld [vmem:[%s8465_s1 + $0x4ac] sm:$0xf0] }
  0x60   :  { %v291_v46 = vrot.slane %v290_v32, 2  ;;  %v348_v29 = vrot.slane %v347_v11, 2  ;;  %v461_v23 = vadd.f32 %v460_v17, %v459_v21  ;;  %v518_v52 = vadd.f32 %v517_v30, %v516_v12  ;;  %v4365_v21 = vld [vmem:[%s8465_s1 + $0x4a0] sm:$0xf] }
  0x61   :  { %v405_v3 = vrot.slane %v404_v19, 2  ;;  %v575_v59 = vadd.f32 %v574_v51, %v573_v60  ;;  %v631_v36 = vrot.slane %v630_v47, 4  ;;  %v233_v38 = vadd.f32 %v232_v37, %v231_v0 }
  0x62   :  { %v292_v39 = vadd.f32 %v291_v46, %v290_v32  ;;  %v349_v31 = vadd.f32 %v348_v29, %v347_v11  ;;  %v462_v45 = vrot.slane %v461_v23, 2  ;;  %v519_v1 = vrot.slane %v518_v52, 2  ;;  %v4493_v32 = vld [vmem:[%s8465_s1 + $0x5a0] sm:$0xf]  ;;  %v5381_v11 = vld [vmem:[%s8465_s1 + $0x5ac] sm:$0xf0] }
  0x63   :  { %v406_v57 = vadd.f32 %v405_v3, %v404_v19  ;;  %v576_v42 = vrot.slane %v575_v59, 2  ;;  %v632_v43 = vadd.f32 %v631_v36, %v630_v47  ;;  %v234_v44 = vrot.slane %v233_v38, 1  ;;  %v3855_v3 = vld [vmem:[%s8465_s1 + $0xb0] sm:$0xf0] }
  0x64   :  { %v293_v35 = vrot.slane %v292_v39, 1  ;;  %v350_v48 = vrot.slane %v349_v31, 1  ;;  %v463_v49 = vadd.f32 %v462_v45, %v461_v23  ;;  %v520_v50 = vadd.f32 %v519_v1, %v518_v52  ;;  %v5219_v23 = vld [vmem:[%s8465_s1 + $0xa4] sm:$0xf] }
  0x65   :  { %v407_v53 = vrot.slane %v406_v57, 1  ;;  %v577_v54 = vadd.f32 %v576_v42, %v575_v59  ;;  %v633_v55 = vrot.slane %v632_v43, 2  ;;  %v235_v56 = vadd.f32 %v234_v44, %v233_v38 }
  0x66   :  { %v294_v58 = vadd.f32 %v293_v35, %v292_v39  ;;  %v351_v61 = vadd.f32 %v350_v48, %v349_v31  ;;  %v464_v41 = vrot.slane %v463_v49, 1  ;;  %v521_v63 = vrot.slane %v520_v50, 1 }
  0x67   :  { %v408_v62 = vadd.f32 %v407_v53, %v406_v57  ;;  %v578_v4 = vrot.slane %v577_v54, 1  ;;  %v634_v5 = vadd.f32 %v633_v55, %v632_v43  ;;  %v665_v40 = vpack.c.bf16 %v235_v56, %v235_v56 }
  0x68   :  { %v465_v9 = vadd.f32 %v464_v41, %v463_v49  ;;  %v672_v16 = vpack.c.bf16 %v294_v58, %v294_v58  ;;  %v679_v10 = vpack.c.bf16 %v351_v61, %v351_v61  ;;  %v522_v12 = vadd.f32 %v521_v63, %v520_v50 }
  0x69   :  { %v579_v60 = vadd.f32 %v578_v4, %v577_v54  ;;  %v635_v25 = vrot.slane %v634_v5, 1  ;;  %v686_v0 = vpack.c.bf16 %v408_v62, %v408_v62  ;;  %v983_v19 = vunpack.c.l.b16 %v665_v40  ;;  %v8481_v4 = vld [vmem:[#allocation3_spill] sm:$0xff] }
  0x6a   :  { %v693_v17 = vpack.c.bf16 %v465_v9, %v465_v9  ;;  %v990_v30 = vunpack.c.l.b16 %v672_v16  ;;  %v997_v51 = vunpack.c.l.b16 %v679_v10  ;;  %v700_v37 = vpack.c.bf16 %v522_v12, %v522_v12 }
  0x6b   :  { %v636_v47 = vadd.f32 %v635_v25, %v634_v5  ;;  %v707_v46 = vpack.c.bf16 %v579_v60, %v579_v60  ;;  %v1004_v29 = vunpack.c.l.b16 %v686_v0  ;;  %v4366_v36 = vor.u32 %v5349_v18, %v4365_v21 }
  0x6c   :  { %v1011_v52 = vunpack.c.l.b16 %v693_v17  ;;  %v1064_v59 = vsel %vm1036_vm1, %v990_v30, %v983_v19  ;;  %v4494_v38 = vor.u32 %v5381_v11, %v4493_v32  ;;  %v1018_v31 = vunpack.c.l.b16 %v700_v37 }
  0x6d   :  { %v714_v39 = vpack.c.bf16 %v636_v47, %v636_v47  ;;  %v1025_v45 = vunpack.c.l.b16 %v707_v46  ;;  %v1065_v57 = vsel %vm1038_vm2, %v997_v51, %v1064_v59  ;;  %2142 = vmatpush.bf16.msrb.mxu0 %v4366_v36  ;;  %v3858_v42 = vor.u32 %v5219_v23, %v3855_v3 }
  0x6e   :  { %v1066_v1 = vsel %vm1040_vm3, %v1004_v29, %v1065_v57  ;;  %2155 = vmatpush.bf16.msrb.mxu1 %v4494_v38  ;;  %v92_v43 = vunpack.c.h.bf16 %v6029_v6  ;;  %v99_v44 = vunpack.c.h.bf16 %v6034_v7  ;;  %v106_v49 = vunpack.c.h.bf16 %v6039_v8 }
  0x6f   :  { %v1032_v35 = vunpack.c.l.b16 %v714_v39  ;;  %v1067_v48 = vsel %vm1042_vm4, %v1011_v52, %v1066_v1  ;;  %v113_v53 = vunpack.c.h.bf16 %v6045_v13  ;;  %2181 = vmatpush.bf16.msrb.mxu3 %v3858_v42  ;;  %v120_v54 = vunpack.c.h.bf16 %v6050_v14 }
  0x70   :  { %v1068_v50 = vsel %vm1044_vm5, %v1018_v31, %v1067_v48  ;;  %v127_v55 = vunpack.c.h.bf16 %v6055_v15  ;;  %v134_v56 = vunpack.c.h.bf16 %v6063_v20  ;;  %v141_v7 = vunpack.c.h.bf16 %v6068_v22  ;;  %v8480_v20 = vld [vmem:[#allocation2_spill] sm:$0xff] }
  0x71   :  { %v1069_v6 = vsel %vm1046_vm6, %v1025_v45, %v1068_v50  ;;  %v148_v58 = vunpack.c.h.bf16 %v6073_v24  ;;  %v155_v61 = vunpack.c.h.bf16 %v6079_v26  ;;  %v162_v13 = vunpack.c.h.bf16 %v6084_v27 }
  0x72   :  { %v1070_v8 = vsel %vm1048_vm7, %v1032_v35, %v1069_v6  ;;  %v169_v41 = vunpack.c.h.bf16 %v6089_v28  ;;  %v176_v14 = vunpack.c.h.bf16 %v6098_v33  ;;  %v183_v15 = vunpack.c.h.bf16 %v6103_v34 }
  0x73   :  { %v6213_v62 = vpack.c.b16 %v1070_v8, %v1070_v8  ;;  %v190_v63 = vunpack.c.h.bf16 %v8480_v20  ;;  %v197_v22 = vunpack.c.h.bf16 %v8481_v4  ;;  %v212_v24 = vsel %vm203_vm0, %v99_v44, 0.0  ;;  %v5251_v4 = vld [vmem:[%s8465_s1 + $0x1a4] sm:$0xf] }
  0x74   :  { %v271_v26 = vsel %vm203_vm0, %v113_v53, 0.0  ;;  %v328_v5 = vsel %vm203_vm0, %v127_v55, 0.0  ;;  %v385_v27 = vsel %vm203_vm0, %v141_v7, 0.0  ;;  %v213_v28 = vadd.f32 %v212_v24, %v92_v43  ;;  %v4349_v24 = vld [vmem:[%s8465_s1 + $0x480] sm:$0xf] }
  0x75   :  { %2135 = vmatmul.bf16.vlgmr.msra.gmra.mxu3 %v6213_v62  ;;  %v272_v33 = vadd.f32 %v271_v26, %v106_v49  ;;  %v329_v9 = vadd.f32 %v328_v5, %v120_v54  ;;  %v386_v40 = vadd.f32 %v385_v27, %v134_v56  ;;  %v442_v34 = vsel %vm203_vm0, %v155_v61, 0.0 }
  0x76   :  { %v499_v16 = vsel %vm203_vm0, %v169_v41, 0.0  ;;  %v556_v10 = vsel %vm203_vm0, %v183_v15, 0.0  ;;  %v613_v21 = vsel %vm203_vm0, %v197_v22, 0.0  ;;  %v214_v18 = vrot.slane %v213_v28, 4  ;;  %v3983_v22 = vld [vmem:[%s8465_s1 + $0x1b0] sm:$0xf0] }
  0x77   :  { %v273_v12 = vrot.slane %v272_v33, 4  ;;  %v330_v60 = vrot.slane %v329_v9, 4  ;;  %v387_v25 = vrot.slane %v386_v40, 4  ;;  %v443_v0 = vadd.f32 %v442_v34, %v148_v58 }
  0x78   :  { %v500_v32 = vadd.f32 %v499_v16, %v162_v13  ;;  %v557_v11 = vadd.f32 %v556_v10, %v176_v14  ;;  %v614_v17 = vadd.f32 %v613_v21, %v190_v63  ;;  %v215_v19 = vadd.f32 %v214_v18, %v213_v28  ;;  %v5215_v18 = vld [vmem:[%s8465_s1 + $0x84] sm:$0xf] }
  0x79   :  { %v274_v30 = vadd.f32 %v273_v12, %v272_v33  ;;  %v331_v51 = vadd.f32 %v330_v60, %v329_v9  ;;  %v388_v47 = vadd.f32 %v387_v25, %v386_v40  ;;  %v444_v37 = vrot.slane %v443_v0, 4  ;;  %v5345_v33 = vld [vmem:[%s8465_s1 + $0x48c] sm:$0xf0]  ;;  %v4477_v9 = vld [vmem:[%s8465_s1 + $0x580] sm:$0xf] }
  0x7a   :  { %v501_v46 = vrot.slane %v500_v32, 4  ;;  %v558_v29 = vrot.slane %v557_v11, 4  ;;  %v615_v23 = vrot.slane %v614_v17, 4  ;;  %v216_v3 = vrot.slane %v215_v19, 2  ;;  %v5377_v40 = vld [vmem:[%s8465_s1 + $0x58c] sm:$0xf0] }
  0x7b   :  { %v275_v52 = vrot.slane %v274_v30, 2  ;;  %v332_v59 = vrot.slane %v331_v51, 2  ;;  %v389_v36 = vrot.slane %v388_v47, 2  ;;  %v445_v38 = vadd.f32 %v444_v37, %v443_v0  ;;  %v3839_v12 = vld [vmem:[%s8465_s1 + $0x90] sm:$0xf0] }
  0x7c   :  { %v502_v39 = vadd.f32 %v501_v46, %v500_v32  ;;  %v559_v31 = vadd.f32 %v558_v29, %v557_v11  ;;  %v616_v45 = vadd.f32 %v615_v23, %v614_v17  ;;  %v217_v57 = vadd.f32 %v216_v3, %v215_v19  ;;  %v6254_v60 = vld [vmem:[%s8465_s1 + $0x184] sm:$0xf]  ;;  %v6259_v25 = vld [vmem:[%s8465_s1 + $0x190] sm:$0xf0]  ;;  %v6264_v0 = vld [vmem:[%s8466_s0 + $0x18] sm:$0xf] }
  0x7d   :  { %v276_v1 = vadd.f32 %v275_v52, %v274_v30  ;;  %v333_v42 = vadd.f32 %v332_v59, %v331_v51  ;;  %v390_v43 = vadd.f32 %v389_v36, %v388_v47  ;;  %v446_v44 = vrot.slane %v445_v38, 2  ;;  %v6269_v30 = vld [vmem:[%s8465_s1 + $0x460] sm:$0xf]  ;;  %v6274_v51 = vld [vmem:[%s8465_s1 + $0x46c] sm:$0xf0] }
  0x7e   :  { %v503_v35 = vrot.slane %v502_v39, 2  ;;  %v560_v48 = vrot.slane %v559_v31, 2  ;;  %v617_v49 = vrot.slane %v616_v45, 2  ;;  %v218_v53 = vrot.slane %v217_v57, 1  ;;  %v6279_v47 = vld [vmem:[%s8465_s1 + $0x560] sm:$0xf] }
  0x7f   :  { %v277_v50 = vrot.slane %v276_v1, 1  ;;  %v334_v54 = vrot.slane %v333_v42, 1  ;;  %v391_v55 = vrot.slane %v390_v43, 1  ;;  %v447_v56 = vadd.f32 %v446_v44, %v445_v38  ;;  %v6284_v37 = vld [vmem:[%s8465_s1 + $0x56c] sm:$0xf0] }
  0x80   :  { %v504_v6 = vadd.f32 %v503_v35, %v502_v39  ;;  %v561_v7 = vadd.f32 %v560_v48, %v559_v31  ;;  %v618_v58 = vadd.f32 %v617_v49, %v616_v45  ;;  %v219_v61 = vadd.f32 %v218_v53, %v217_v57  ;;  %v6289_v46 = vld [vmem:[%s8465_s1 + $0x64] sm:$0xf]  ;;  %v6294_v29 = vld [vmem:[%s8465_s1 + $0x70] sm:$0xf0]  ;;  %v6309_v39 = vld [vmem:[%s8465_s1 + $0x440] sm:$0xf] }
  0x81   :  { %v278_v8 = vadd.f32 %v277_v50, %v276_v1  ;;  %v335_v13 = vadd.f32 %v334_v54, %v333_v42  ;;  %v392_v41 = vadd.f32 %v391_v55, %v390_v43  ;;  %v448_v14 = vrot.slane %v447_v56, 1  ;;  %v6299_v36 = vld [vmem:[%s8465_s1 + $0x164] sm:$0xf]  ;;  %v6304_v38 = vld [vmem:[%s8465_s1 + $0x170] sm:$0xf0] }
  0x82   :  { %v505_v15 = vrot.slane %v504_v6, 1  ;;  %v562_v20 = vrot.slane %v561_v7, 1  ;;  %v619_v63 = vrot.slane %v618_v58, 1  ;;  %v663_v26 = vpack.c.bf16 %v219_v61, %v219_v61  ;;  %v6314_v31 = vld [vmem:[%s8465_s1 + $0x44c] sm:$0xf0] }
  0x83   :  { %v670_v5 = vpack.c.bf16 %v278_v8, %v278_v8  ;;  %v677_v27 = vpack.c.bf16 %v335_v13, %v335_v13  ;;  %v684_v28 = vpack.c.bf16 %v392_v41, %v392_v41  ;;  %v449_v34 = vadd.f32 %v448_v14, %v447_v56  ;;  %v6320_v43 = vld [vmem:[%s8465_s1 + $0x540] sm:$0xf]  ;;  %v6325_v44 = vld [vmem:[%s8465_s1 + $0x54c] sm:$0xf0]  ;;  %v6330_v35 = vld [vmem:[%s8465_s1 + $0x44] sm:$0xf] }
  0x84   :  { %v506_v16 = vadd.f32 %v505_v15, %v504_v6  ;;  %v563_v10 = vadd.f32 %v562_v20, %v561_v7  ;;  %v620_v21 = vadd.f32 %v619_v63, %v618_v58  ;;  %v981_v32 = vunpack.c.l.b16 %v663_v26  ;;  %v6335_v54 = vld [vmem:[%s8465_s1 + $0x50] sm:$0xf0]  ;;  %v6340_v55 = vld [vmem:[%s8465_s1 + $0x144] sm:$0xf]  ;;  %v6358_v8 = vld [vmem:[%s8465_s1 + $0x420] sm:$0xf] }
  0x85   :  { %v988_v11 = vunpack.c.l.b16 %v670_v5  ;;  %v995_v17 = vunpack.c.l.b16 %v677_v27  ;;  %v1002_v19 = vunpack.c.l.b16 %v684_v28  ;;  %v691_v23 = vpack.c.bf16 %v449_v34, %v449_v34  ;;  %v6345_v56 = vld [vmem:[%s8465_s1 + $0x150] sm:$0xf0]  ;;  %v6363_v13 = vld [vmem:[%s8465_s1 + $0x42c] sm:$0xf0]  ;;  %v6368_v41 = vld [vmem:[%s8465_s1 + $0x520] sm:$0xf] }
  0x86   :  { %v698_v3 = vpack.c.bf16 %v506_v16, %v506_v16  ;;  %v705_v52 = vpack.c.bf16 %v563_v10, %v563_v10  ;;  %v712_v59 = vpack.c.bf16 %v620_v21, %v620_v21  ;;  %v3986_v57 = vor.u32 %v5251_v4, %v3983_v22  ;;  %v6350_v6 = vld [vmem:[%s8466_s0 + $0x34] sm:$0x1]  ;;  %v6373_v14 = vld [vmem:[%s8466_s0 + $0x50] sm:$0xf]  ;;  %v6378_v15 = vld [vmem:[%s8466_s0 + $0x6c] sm:$0x1] }
  0x87   :  { %v1050_v45 = vsel %vm1036_vm1, %v988_v11, %v981_v32  ;;  %v4350_v1 = vor.u32 %v5345_v33, %v4349_v24  ;;  %v4478_v42 = vor.u32 %v5377_v40, %v4477_v9  ;;  %v1009_v48 = vunpack.c.l.b16 %v691_v23  ;;  %v6391_v26 = vld [vmem:[%s8465_s1 + $0x52c] sm:$0xf0]  ;;  %v6396_v5 = vld [vmem:[%s8465_s1 + $0x24] sm:$0xf]  ;;  %v6401_v27 = vld [vmem:[%s8465_s1 + $0x30] sm:$0xf0] }
  0x88   :  { %v1016_v49 = vunpack.c.l.b16 %v698_v3  ;;  %v1023_v53 = vunpack.c.l.b16 %v705_v52  ;;  %v1030_v50 = vunpack.c.l.b16 %v712_v59  ;;  %v1051_v7 = vsel %vm1038_vm2, %v995_v17, %v1050_v45  ;;  %2194 = vmatpush.bf16.msra.mxu2 %v3986_v57  ;;  %v46_v34 = vld [vmem:[%s8466_s0 + $0x88] sm:$0xf]  ;;  %v50_v16 = vld [vmem:[%s8466_s0 + $0xa4] sm:$0x1]  ;;  %v54_v10 = vld [vmem:[%s8466_s0 + $0xc0] sm:$0xf] }
  0x89   :  { %2143 = vmatpush.bf16.msrb.mxu0 %v4350_v1  ;;  %v3842_v58 = vor.u32 %v5215_v18, %v3839_v12  ;;  %v3970_v61 = vor.u32 %v6254_v60, %v6259_v25  ;;  %v97_v20 = vunpack.c.l.bf16 %v6264_v0  ;;  %v1052_v63 = vsel %vm1040_vm3, %v1002_v19, %v1051_v7  ;;  %2156 = vmatpush.bf16.msrb.mxu1 %v4478_v42  ;;  %v58_v25 = vld [vmem:[%s8466_s0 + $0xdc] sm:$0x1]  ;;  %v62_v32 = vld [vmem:[%s8466_s0 + $0xf8] sm:$0xf]  ;;  %v66_v11 = vld [vmem:[%s8466_s0 + $0x114] sm:$0x1] }
  0x8a   :  { %v4334_v4 = vor.u32 %v6274_v51, %v6269_v30  ;;  %v4462_v22 = vor.u32 %v6284_v37, %v6279_v47  ;;  %v3826_v24 = vor.u32 %v6289_v46, %v6294_v29  ;;  %v1053_v28 = vsel %vm1042_vm4, %v1009_v48, %v1052_v63  ;;  %v70_v51 = vld [vmem:[%s8466_s0 + $0x130] sm:$0xf]  ;;  %v74_v47 = vld [vmem:[%s8466_s0 + $0x14c] sm:$0x1]  ;;  %v6449_v37 = vld [vmem:[%s8466_s0 + $0x168] sm:$0xf] }
  0x8b   :  { %2182 = vmatpush.bf16.msrb.mxu3 %v3842_v58  ;;  %v3954_v33 = vor.u32 %v6299_v36, %v6304_v38  ;;  %v4318_v9 = vor.u32 %v6314_v31, %v6309_v39  ;;  %v4446_v40 = vor.u32 %v6325_v44, %v6320_v43  ;;  %v1054_v21 = vsel %vm1044_vm5, %v1016_v49, %v1053_v28  ;;  %v6456_v23 = vld [vmem:[%s8466_s0 + $0x184] sm:$0x1]  ;;  %v6461_v3 = vld [vmem:[%s8466_s0 + $0x1a0] sm:$0xf]  ;;  %v6466_v52 = vld [vmem:[%s8466_s0 + $0x1bc] sm:$0x1] }
  0x8c   :  { %v3810_v18 = vor.u32 %v6330_v35, %v6335_v54  ;;  %v3938_v12 = vor.u32 %v6340_v55, %v6345_v56  ;;  %v4302_v60 = vor.u32 %v6363_v13, %v6358_v8  ;;  %v1055_v17 = vsel %vm1046_vm6, %v1023_v53, %v1054_v21  ;;  %2195 = vmatpush.bf16.msra.mxu2 %v3970_v61  ;;  %v6475_v1 = vld [vmem:[%s8466_s0 + $0x10] sm:$0xff]  ;;  %v5235_v54 = vld [vmem:[%s8465_s1 + $0x124] sm:$0xf] }
  0x8d   :  { %2144 = vmatpush.bf16.msrb.mxu0 %v4334_v4  ;;  %v4430_v19 = vor.u32 %v6391_v26, %v6368_v41  ;;  %v3794_v30 = vor.u32 %v6396_v5, %v6401_v27  ;;  %v104_v46 = vunpack.c.l.bf16 %v6350_v6  ;;  %v1056_v29 = vsel %vm1048_vm7, %v1030_v50, %v1055_v17  ;;  %2157 = vmatpush.bf16.msrb.mxu1 %v4462_v22  ;;  %v3919_v55 = vld [vmem:[%s8465_s1 + $0x130] sm:$0xf0] }
  0x8e   :  { %v111_v59 = vunpack.c.l.bf16 %v6373_v14  ;;  %v118_v36 = vunpack.c.l.bf16 %v6378_v15  ;;  %v125_v38 = vunpack.c.l.bf16 %v46_v34  ;;  %v6470_v39 = vpack.c.b16 %v1056_v29, %v1056_v29 }
  0x8f   :  { %2183 = vmatpush.bf16.msrb.mxu3 %v3826_v24  ;;  %v132_v31 = vunpack.c.l.bf16 %v50_v16  ;;  %v139_v45 = vunpack.c.l.bf16 %v54_v10  ;;  %v146_v57 = vunpack.c.l.bf16 %v58_v25  ;;  %v153_v42 = vunpack.c.l.bf16 %v62_v32 }
  0x90   :  { %v160_v43 = vunpack.c.l.bf16 %v66_v11  ;;  %v167_v44 = vunpack.c.l.bf16 %v70_v51  ;;  %v174_v35 = vunpack.c.l.bf16 %v74_v47  ;;  %2109 = vmatmul.bf16.vlgmr.msra.gmra.mxu1 %v6470_v39  ;;  %2196 = vmatpush.bf16.msra.mxu2 %v3954_v33  ;;  %v181_v48 = vunpack.c.l.bf16 %v6449_v37 }
  0x91   :  { %v188_v49 = vunpack.c.l.bf16 %v6456_v23  ;;  %v195_v53 = vunpack.c.l.bf16 %v6461_v3  ;;  %v202_v50 = vunpack.c.l.bf16 %v6466_v52  ;;  %2145 = vmatpush.bf16.msrb.mxu0 %v4318_v9  ;;  %2158 = vmatpush.bf16.msrb.mxu1 %v4446_v40  ;;  %v3922_v56 = vor.u32 %v5235_v54, %v3919_v55 }
  0x92   :  { %v95_v6 = vunpack.c.l.bf16 %v6475_v1  ;;  %v253_v7 = vsel %vm252_vm8, %v97_v20, 0.0  ;;  %v255_v58 = vsel %vm254_vm9, %v104_v46, 0.0  ;;  %v311_v61 = vsel %vm252_vm8, %v111_v59, 0.0 }
  0x93   :  { %2184 = vmatpush.bf16.msrb.mxu3 %v3810_v18  ;;  %v312_v8 = vsel %vm254_vm9, %v118_v36, 0.0  ;;  %v256_v13 = vadd.f32 %v255_v58, %v253_v7  ;;  %v368_v14 = vsel %vm252_vm8, %v125_v38, 0.0  ;;  %v369_v15 = vsel %vm254_vm9, %v132_v31, 0.0 }
  0x94   :  { %v313_v41 = vadd.f32 %v312_v8, %v311_v61  ;;  %2197 = vmatpush.bf16.msra.mxu2 %v3938_v12  ;;  %v370_v63 = vadd.f32 %v369_v15, %v368_v14  ;;  %v425_v4 = vsel %vm252_vm8, %v139_v45, 0.0  ;;  %v426_v0 = vsel %vm254_vm9, %v146_v57, 0.0 }
  0x95   :  { %v482_v20 = vsel %vm252_vm8, %v153_v42, 0.0  ;;  %2146 = vmatpush.bf16.msrb.mxu0 %v4302_v60  ;;  %2159 = vmatpush.bf16.msrb.mxu1 %v4430_v19  ;;  %v257_v22 = vrot.slane %v256_v13, 4  ;;  %v427_v26 = vadd.f32 %v426_v0, %v425_v4  ;;  %v483_v5 = vsel %vm254_vm9, %v160_v43, 0.0  ;;  %v4285_v4 = vld [vmem:[%s8465_s1 + $0x400] sm:$0xf] }
  0x96   :  { %v314_v24 = vrot.slane %v313_v41, 4  ;;  %v371_v27 = vrot.slane %v370_v63, 4  ;;  %v484_v28 = vadd.f32 %v483_v5, %v482_v20  ;;  %v539_v33 = vsel %vm252_vm8, %v167_v44, 0.0  ;;  %v5329_v0 = vld [vmem:[%s8465_s1 + $0x40c] sm:$0xf0] }
  0x97   :  { %2185 = vmatpush.bf16.msrb.mxu3 %v3794_v30  ;;  %v540_v9 = vsel %vm254_vm9, %v174_v35, 0.0  ;;  %v258_v40 = vadd.f32 %v257_v22, %v256_v13  ;;  %v428_v16 = vrot.slane %v427_v26, 4  ;;  %v596_v12 = vsel %vm252_vm8, %v181_v48, 0.0  ;;  %v4413_v5 = vld [vmem:[%s8465_s1 + $0x500] sm:$0xf] }
  0x98   :  { %v315_v34 = vadd.f32 %v314_v24, %v313_v41  ;;  %v541_v10 = vadd.f32 %v540_v9, %v539_v33  ;;  %v372_v21 = vadd.f32 %v371_v27, %v370_v63  ;;  %v485_v18 = vrot.slane %v484_v28, 4  ;;  %2198 = vmatpush.bf16.msra.mxu2 %v3922_v56  ;;  %v5361_v27 = vld [vmem:[%s8465_s1 + $0x50c] sm:$0xf0] }
  0x99   :  { %v597_v60 = vsel %vm254_vm9, %v188_v49, 0.0  ;;  %v259_v25 = vrot.slane %v258_v40, 2  ;;  %v429_v11 = vadd.f32 %v428_v16, %v427_v26  ;;  %v653_v47 = vsel %vm252_vm8, %v195_v53, 0.0  ;;  %v3775_v16 = vld [vmem:[%s8465_s1 + $0x10] sm:$0xf0] }
  0x9a   :  { %v316_v32 = vrot.slane %v315_v34, 2  ;;  %v542_v17 = vrot.slane %v541_v10, 4  ;;  %v373_v19 = vrot.slane %v372_v21, 2  ;;  %v486_v30 = vadd.f32 %v485_v18, %v484_v28 }
  0x9b   :  { %v598_v51 = vadd.f32 %v597_v60, %v596_v12  ;;  %v260_v37 = vadd.f32 %v259_v25, %v258_v40  ;;  %v430_v29 = vrot.slane %v429_v11, 2  ;;  %v654_v36 = vsel %vm254_vm9, %v202_v50, 0.0  ;;  %v5291_v25 = vld [vmem:[%s8465_s1 + $0x2e4] sm:$0xf] }
  0x9c   :  { %v317_v46 = vadd.f32 %v316_v32, %v315_v34  ;;  %v543_v23 = vadd.f32 %v542_v17, %v541_v10  ;;  %v374_v3 = vadd.f32 %v373_v19, %v372_v21  ;;  %v487_v52 = vrot.slane %v486_v30, 2  ;;  %v5199_v34 = vld [vmem:[%s8465_s1 + $0x4] sm:$0xf]  ;;  %v6528_v10 = vld [vmem:[%s8466_s0 + $0x2c] sm:$0x11] }
  0x9d   :  { %v599_v59 = vrot.slane %v598_v51, 4  ;;  %v261_v38 = vrot.slane %v260_v37, 1  ;;  %v431_v45 = vadd.f32 %v430_v29, %v429_v11  ;;  %v655_v35 = vadd.f32 %v654_v36, %v653_v47  ;;  %v4143_v32 = vld [vmem:[%s8465_s1 + $0x2f0] sm:$0xf0]  ;;  %v5323_v11 = vld [vmem:[%s8465_s1 + $0x3e4] sm:$0xf] }
  0x9e   :  { %v318_v31 = vrot.slane %v317_v46, 1  ;;  %v544_v57 = vrot.slane %v543_v23, 2  ;;  %v375_v42 = vrot.slane %v374_v3, 1  ;;  %v488_v43 = vadd.f32 %v487_v52, %v486_v30  ;;  %v4271_v47 = vld [vmem:[%s8465_s1 + $0x3f0] sm:$0xf0] }
  0x9f   :  { %v600_v44 = vadd.f32 %v599_v59, %v598_v51  ;;  %v262_v48 = vadd.f32 %v261_v38, %v260_v37  ;;  %v432_v53 = vrot.slane %v431_v45, 1  ;;  %v656_v58 = vrot.slane %v655_v35, 4  ;;  %v5355_v37 = vld [vmem:[%s8465_s1 + $0x4e4] sm:$0xf]  ;;  %v6554_v59 = vld [vmem:[%s8466_s0 + $0x48] sm:$0xff] }
  0xa0   :  { %v319_v49 = vadd.f32 %v318_v31, %v317_v46  ;;  %v545_v54 = vadd.f32 %v544_v57, %v543_v23  ;;  %v376_v55 = vadd.f32 %v375_v42, %v374_v3  ;;  %v489_v56 = vrot.slane %v488_v43, 1  ;;  %v4399_v46 = vld [vmem:[%s8465_s1 + $0x4f0] sm:$0xf0]  ;;  %v6559_v36 = vld [vmem:[%s8466_s0 + $0x64] sm:$0x11] }
  0xa1   :  { %v601_v7 = vrot.slane %v600_v44, 2  ;;  %v433_v61 = vadd.f32 %v432_v53, %v431_v45  ;;  %v668_v13 = vpack.c.bf16 %v262_v48, %v262_v48  ;;  %v657_v15 = vadd.f32 %v656_v58, %v655_v35  ;;  %v6564_v38 = vld [vmem:[%s8466_s0 + $0x80] sm:$0xff]  ;;  %v6580_v35 = vld [vmem:[%s8466_s0 + $0xd4] sm:$0x11] }
  0xa2   :  { %v546_v8 = vrot.slane %v545_v54, 1  ;;  %v675_v50 = vpack.c.bf16 %v319_v49, %v319_v49  ;;  %v490_v41 = vadd.f32 %v489_v56, %v488_v43  ;;  %v682_v63 = vpack.c.bf16 %v376_v55, %v376_v55  ;;  %v6570_v43 = vld [vmem:[%s8466_s0 + $0x9c] sm:$0x11]  ;;  %v6591_v55 = vld [vmem:[%s8466_s0 + $0x10c] sm:$0x11] }
  0xa3   :  { %v602_v14 = vadd.f32 %v601_v7, %v600_v44  ;;  %v689_v22 = vpack.c.bf16 %v433_v61, %v433_v61  ;;  %v986_v24 = vunpack.c.l.b16 %v668_v13  ;;  %v658_v33 = vrot.slane %v657_v15, 2  ;;  %v6575_v44 = vld [vmem:[%s8466_s0 + $0xb8] sm:$0xff]  ;;  %v6596_v56 = vld [vmem:[%s8466_s0 + $0x128] sm:$0xff]  ;;  %v6607_v13 = vld [vmem:[%s8466_s0 + $0x160] sm:$0xff] }
  0xa4   :  { %v547_v20 = vadd.f32 %v546_v8, %v545_v54  ;;  %v993_v26 = vunpack.c.l.b16 %v675_v50  ;;  %v696_v9 = vpack.c.bf16 %v490_v41, %v490_v41  ;;  %v1000_v40 = vunpack.c.l.b16 %v682_v63  ;;  %v6586_v54 = vld [vmem:[%s8466_s0 + $0xf0] sm:$0xff]  ;;  %v6602_v8 = vld [vmem:[%s8466_s0 + $0x144] sm:$0x11]  ;;  %v6612_v50 = vld [vmem:[%s8466_s0 + $0x17c] sm:$0x11] }
  0xa5   :  { %v603_v28 = vrot.slane %v602_v14, 1  ;;  %v1007_v18 = vunpack.c.l.b16 %v689_v22  ;;  %v4286_v60 = vor.u32 %v5329_v0, %v4285_v4  ;;  %v659_v19 = vadd.f32 %v658_v33, %v657_v15  ;;  %v6619_v15 = vld [vmem:[%s8466_s0 + $0x198] sm:$0xff] }
  0xa6   :  { %v703_v21 = vpack.c.bf16 %v547_v20, %v547_v20  ;;  %v1085_v12 = vsel %vm1036_vm1, %v993_v26, %v986_v24  ;;  %v1014_v30 = vunpack.c.l.b16 %v696_v9  ;;  %v4414_v3 = vor.u32 %v5361_v27, %v4413_v5  ;;  %v6624_v63 = vld [vmem:[%s8466_s0 + $0x1b4] sm:$0x11] }
  0xa7   :  { %v604_v17 = vadd.f32 %v603_v28, %v602_v14  ;;  %v1086_v51 = vsel %vm1038_vm2, %v1000_v40, %v1085_v12  ;;  %2147 = vmatpush.bf16.msrb.mxu0 %v4286_v60  ;;  %v3778_v52 = vor.u32 %v5199_v34, %v3775_v16  ;;  %v660_v31 = vrot.slane %v659_v19, 1 }
  0xa8   :  { %v1021_v29 = vunpack.c.l.b16 %v703_v21  ;;  %v1087_v23 = vsel %vm1040_vm3, %v1007_v18, %v1086_v51  ;;  %v4146_v42 = vor.u32 %v5291_v25, %v4143_v32  ;;  %2160 = vmatpush.bf16.msrb.mxu1 %v4414_v3  ;;  %v4274_v49 = vor.u32 %v5323_v11, %v4271_v47 }
  0xa9   :  { %v710_v45 = vpack.c.bf16 %v604_v17, %v604_v17  ;;  %v1088_v57 = vsel %vm1042_vm4, %v1014_v30, %v1087_v23  ;;  %2186 = vmatpush.bf16.msrb.mxu3 %v3778_v52  ;;  %v4402_v53 = vor.u32 %v5355_v37, %v4399_v46  ;;  %v102_v7 = vunpack.c.l.bf16 %v6528_v10 }
  0xaa   :  { %v1089_v48 = vsel %vm1044_vm5, %v1021_v29, %v1088_v57  ;;  %v661_v58 = vadd.f32 %v660_v31, %v659_v19  ;;  %v109_v41 = vunpack.c.l.bf16 %v6554_v59  ;;  %v116_v14 = vunpack.c.l.bf16 %v6559_v36 }
  0xab   :  { %v1028_v61 = vunpack.c.l.b16 %v710_v45  ;;  %2205 = vmatpush.bf16.msra.mxu0 %v4146_v42  ;;  %v123_v4 = vunpack.c.l.bf16 %v6564_v38  ;;  %v130_v0 = vunpack.c.l.bf16 %v6570_v43  ;;  %v137_v20 = vunpack.c.l.bf16 %v6575_v44 }
  0xac   :  { %2218 = vmatpush.bf16.msra.mxu1 %v4274_v49  ;;  %v144_v22 = vunpack.c.l.bf16 %v6580_v35  ;;  %v717_v24 = vpack.c.bf16 %v661_v58, %v661_v58  ;;  %v151_v5 = vunpack.c.l.bf16 %v6586_v54  ;;  %v158_v27 = vunpack.c.l.bf16 %v6591_v55  ;;  %2187 = vmatmul.bf16.vlgmr.msrb.gmra.mxu3 %v6164_v2 }
  0xad   :  { %2231 = vmatpush.bf16.msra.mxu3 %v4402_v53  ;;  %v1090_v26 = vsel %vm1046_vm6, %v1028_v61, %v1089_v48  ;;  %v165_v28 = vunpack.c.l.bf16 %v6596_v56  ;;  %v172_v33 = vunpack.c.l.bf16 %v6602_v8  ;;  %v179_v9 = vunpack.c.l.bf16 %v6607_v13 }
  0xae   :  { %v186_v40 = vunpack.c.l.bf16 %v6612_v50  ;;  %v1035_v34 = vunpack.c.l.b16 %v717_v24  ;;  %v193_v16 = vunpack.c.l.bf16 %v6619_v15  ;;  %v200_v21 = vunpack.c.l.bf16 %v6624_v63 }
  0xaf   :  { %v236_v18 = vsel %vm203_vm0, %v102_v7, 0.0  ;;  %v295_v60 = vsel %vm203_vm0, %v116_v14, 0.0  ;;  %v352_v25 = vsel %vm203_vm0, %v130_v0, 0.0  ;;  %v409_v32 = vsel %vm203_vm0, %v144_v22, 0.0 }
  0xb0   :  { %v237_v12 = vadd.f32 %v236_v18, %v95_v6  ;;  %v1091_v11 = vsel %vm1048_vm7, %v1035_v34, %v1090_v26  ;;  %v296_v17 = vadd.f32 %v295_v60, %v109_v41  ;;  %v353_v19 = vadd.f32 %v352_v25, %v123_v4 }
  0xb1   :  { %v410_v30 = vadd.f32 %v409_v32, %v137_v20  ;;  %v6647_v51 = vpack.c.b16 %v1091_v11, %v1091_v11  ;;  %v466_v37 = vsel %vm203_vm0, %v158_v27, 0.0  ;;  %v523_v46 = vsel %vm203_vm0, %v172_v33, 0.0 }
  0xb2   :  { %v238_v47 = vrot.slane %v237_v12, 4  ;;  %v297_v29 = vrot.slane %v296_v17, 4  ;;  %v354_v6 = vrot.slane %v353_v19, 4  ;;  %v467_v3 = vadd.f32 %v466_v37, %v151_v5 }
  0xb3   :  { %v411_v23 = vrot.slane %v410_v30, 4  ;;  %4555 = vmatmul.msk.bf16.vlgmr.msrb.gmra.mxu2 %vm252_vm8, %v6647_v51  ;;  %v524_v31 = vadd.f32 %v523_v46, %v165_v28  ;;  %v580_v45 = vsel %vm203_vm0, %v186_v40, 0.0  ;;  %v637_v57 = vsel %vm203_vm0, %v200_v21, 0.0 }
  0xb4   :  { %v239_v52 = vadd.f32 %v238_v47, %v237_v12  ;;  %v298_v42 = vadd.f32 %v297_v29, %v296_v17  ;;  %v355_v48 = vadd.f32 %v354_v6, %v353_v19  ;;  %v468_v53 = vrot.slane %v467_v3, 4 }
  0xb5   :  { %v412_v49 = vadd.f32 %v411_v23, %v410_v30  ;;  %v525_v58 = vrot.slane %v524_v31, 4  ;;  %v581_v61 = vadd.f32 %v580_v45, %v179_v9  ;;  %v638_v41 = vadd.f32 %v637_v57, %v193_v16 }
  0xb6   :  { %v240_v7 = vrot.slane %v239_v52, 2  ;;  %v299_v14 = vrot.slane %v298_v42, 2  ;;  %v356_v4 = vrot.slane %v355_v48, 2  ;;  %v469_v20 = vadd.f32 %v468_v53, %v467_v3 }
  0xb7   :  { %v413_v0 = vrot.slane %v412_v49, 2  ;;  %v526_v24 = vadd.f32 %v525_v58, %v524_v31  ;;  %v582_v26 = vrot.slane %v581_v61, 4  ;;  %v639_v5 = vrot.slane %v638_v41, 4 }
  0xb8   :  { %v241_v22 = vadd.f32 %v240_v7, %v239_v52  ;;  %v300_v27 = vadd.f32 %v299_v14, %v298_v42  ;;  %v357_v28 = vadd.f32 %v356_v4, %v355_v48  ;;  %v470_v40 = vrot.slane %v469_v20, 2  ;;  %v5231_v42 = vld [vmem:[%s8465_s1 + $0x104] sm:$0xf]  ;;  %v3903_v48 = vld [vmem:[%s8465_s1 + $0x110] sm:$0xf0] }
  0xb9   :  { %v414_v33 = vadd.f32 %v413_v0, %v412_v49  ;;  %v527_v21 = vrot.slane %v526_v24, 2  ;;  %v583_v18 = vadd.f32 %v582_v26, %v581_v61  ;;  %v640_v12 = vadd.f32 %v639_v5, %v638_v41  ;;  %v5387_v61 = vld [vmem:[%s8465_s1 + $0x5e4] sm:$0xf]  ;;  %v4527_v41 = vld [vmem:[%s8465_s1 + $0x5f0] sm:$0xf0] }
  0xba   :  { %v242_v34 = vrot.slane %v241_v22, 1  ;;  %v301_v60 = vrot.slane %v300_v27, 1  ;;  %v358_v25 = vrot.slane %v357_v28, 1  ;;  %v471_v16 = vadd.f32 %v470_v40, %v469_v20 }
  0xbb   :  { %v415_v9 = vrot.slane %v414_v33, 1  ;;  %v528_v11 = vadd.f32 %v527_v21, %v526_v24  ;;  %v584_v17 = vrot.slane %v583_v18, 2  ;;  %v641_v19 = vrot.slane %v640_v12, 2 }
  0xbc   :  { %v243_v32 = vadd.f32 %v242_v34, %v241_v22  ;;  %v302_v30 = vadd.f32 %v301_v60, %v300_v27  ;;  %v359_v47 = vadd.f32 %v358_v25, %v357_v28  ;;  %v472_v46 = vrot.slane %v471_v16, 1 }
  0xbd   :  { %v416_v37 = vadd.f32 %v415_v9, %v414_v33  ;;  %v529_v29 = vrot.slane %v528_v11, 1  ;;  %v585_v6 = vadd.f32 %v584_v17, %v583_v18  ;;  %v642_v23 = vadd.f32 %v641_v19, %v640_v12 }
  0xbe   :  { %v666_v3 = vpack.c.bf16 %v243_v32, %v243_v32  ;;  %v473_v52 = vadd.f32 %v472_v46, %v471_v16  ;;  %v673_v31 = vpack.c.bf16 %v302_v30, %v302_v30  ;;  %v680_v45 = vpack.c.bf16 %v359_v47, %v359_v47 }
  0xbf   :  { %v687_v57 = vpack.c.bf16 %v416_v37, %v416_v37  ;;  %v530_v49 = vadd.f32 %v529_v29, %v528_v11  ;;  %v586_v53 = vrot.slane %v585_v6, 1  ;;  %v643_v7 = vrot.slane %v642_v23, 1 }
  0xc0   :  { %v984_v58 = vunpack.c.l.b16 %v666_v3  ;;  %v694_v14 = vpack.c.bf16 %v473_v52, %v473_v52  ;;  %v991_v4 = vunpack.c.l.b16 %v673_v31  ;;  %v998_v0 = vunpack.c.l.b16 %v680_v45 }
  0xc1   :  { %v1005_v20 = vunpack.c.l.b16 %v687_v57  ;;  %v587_v22 = vadd.f32 %v586_v53, %v585_v6  ;;  %v644_v24 = vadd.f32 %v643_v7, %v642_v23  ;;  %v701_v26 = vpack.c.bf16 %v530_v49, %v530_v49 }
  0xc2   :  { %v3906_v5 = vor.u32 %v5231_v42, %v3903_v48  ;;  %v1012_v27 = vunpack.c.l.b16 %v694_v14  ;;  %v1071_v28 = vsel %vm1036_vm1, %v991_v4, %v984_v58  ;;  %v4530_v33 = vor.u32 %v5387_v61, %v4527_v41 }
  0xc3   :  { %v96_v40 = vunpack.c.h.bf16 %v6475_v1  ;;  %v708_v34 = vpack.c.bf16 %v587_v22, %v587_v22  ;;  %v715_v21 = vpack.c.bf16 %v644_v24, %v644_v24  ;;  %v1019_v18 = vunpack.c.l.b16 %v701_v26 }
  0xc4   :  { %v1072_v12 = vsel %vm1038_vm2, %v998_v0, %v1071_v28  ;;  %2199 = vmatpush.bf16.msra.mxu2 %v3906_v5  ;;  %v103_v25 = vunpack.c.h.bf16 %v6528_v10  ;;  %v110_v9 = vunpack.c.h.bf16 %v6554_v59  ;;  %v117_v16 = vunpack.c.h.bf16 %v6559_v36 }
  0xc5   :  { %v1073_v60 = vsel %vm1040_vm3, %v1005_v20, %v1072_v12  ;;  %v1026_v32 = vunpack.c.l.b16 %v708_v34  ;;  %v1033_v11 = vunpack.c.l.b16 %v715_v21  ;;  %v124_v1 = vunpack.c.h.bf16 %v6564_v38 }
  0xc6   :  { %v1074_v17 = vsel %vm1042_vm4, %v1012_v27, %v1073_v60  ;;  %v131_v30 = vunpack.c.h.bf16 %v6570_v43  ;;  %v138_v47 = vunpack.c.h.bf16 %v6575_v44  ;;  %v145_v37 = vunpack.c.h.bf16 %v6580_v35 }
  0xc7   :  { %v1075_v19 = vsel %vm1044_vm5, %v1019_v18, %v1074_v17  ;;  %2200 = vmatmul.bf16.vlgmr.msra.gmra.mxu2 %v6470_v39  ;;  %v152_v59 = vunpack.c.h.bf16 %v6586_v54  ;;  %v159_v36 = vunpack.c.h.bf16 %v6591_v55  ;;  %v166_v46 = vunpack.c.h.bf16 %v6596_v56 }
  0xc8   :  { %2244 = vmatpush.bf16.msrb.mxu2 %v4530_v33  ;;  %v1076_v10 = vsel %vm1046_vm6, %v1026_v32, %v1075_v19  ;;  %v173_v29 = vunpack.c.h.bf16 %v6602_v8  ;;  %v180_v43 = vunpack.c.h.bf16 %v6607_v13  ;;  %v187_v44 = vunpack.c.h.bf16 %v6612_v50 }
  0xc9   :  { %v1077_v38 = vsel %vm1048_vm7, %v1033_v11, %v1076_v10  ;;  %v194_v35 = vunpack.c.h.bf16 %v6619_v15  ;;  %v201_v23 = vunpack.c.h.bf16 %v6624_v63  ;;  %v244_v54 = vsel %vm203_vm0, %v103_v25, 0.0 }
  0xca   :  { %v6689_v6 = vpack.c.b16 %v1077_v38, %v1077_v38  ;;  %v245_v3 = vadd.f32 %v244_v54, %v96_v40  ;;  %v303_v55 = vsel %vm203_vm0, %v117_v16, 0.0  ;;  %v360_v56 = vsel %vm203_vm0, %v131_v30, 0.0 }
  0xcb   :  { %v417_v52 = vsel %vm203_vm0, %v145_v37, 0.0  ;;  %v304_v8 = vadd.f32 %v303_v55, %v110_v9  ;;  %v361_v13 = vadd.f32 %v360_v56, %v124_v1  ;;  %v474_v31 = vsel %vm203_vm0, %v159_v36, 0.0  ;;  %v5287_v55 = vld [vmem:[%s8465_s1 + $0x2c4] sm:$0xf]  ;;  %v4127_v56 = vld [vmem:[%s8465_s1 + $0x2d0] sm:$0xf0] }
  0xcc   :  { %2148 = vmatmul.bf16.vlgmr.msrb.gmra.mxu0 %v6689_v6  ;;  %v418_v50 = vadd.f32 %v417_v52, %v138_v47  ;;  %v246_v45 = vrot.slane %v245_v3, 4  ;;  %v475_v15 = vadd.f32 %v474_v31, %v152_v59  ;;  %v531_v63 = vsel %vm203_vm0, %v173_v29, 0.0  ;;  %v5319_v31 = vld [vmem:[%s8465_s1 + $0x3c4] sm:$0xf] }
  0xcd   :  { %v588_v57 = vsel %vm203_vm0, %v187_v44, 0.0  ;;  %v305_v42 = vrot.slane %v304_v8, 4  ;;  %v362_v48 = vrot.slane %v361_v13, 4  ;;  %v532_v53 = vadd.f32 %v531_v63, %v166_v46 }
  0xce   :  { %v419_v49 = vrot.slane %v418_v50, 4  ;;  %v247_v7 = vadd.f32 %v246_v45, %v245_v3  ;;  %v476_v58 = vrot.slane %v475_v15, 4  ;;  %v589_v61 = vadd.f32 %v588_v57, %v180_v43  ;;  %v4255_v45 = vld [vmem:[%s8465_s1 + $0x3d0] sm:$0xf0] }
  0xcf   :  { %v645_v41 = vsel %vm203_vm0, %v201_v23, 0.0  ;;  %v306_v14 = vadd.f32 %v305_v42, %v304_v8  ;;  %v363_v4 = vadd.f32 %v362_v48, %v361_v13  ;;  %v533_v20 = vrot.slane %v532_v53, 4 }
  0xd0   :  { %v420_v0 = vadd.f32 %v419_v49, %v418_v50  ;;  %v248_v22 = vrot.slane %v247_v7, 2  ;;  %v477_v24 = vadd.f32 %v476_v58, %v475_v15  ;;  %v590_v26 = vrot.slane %v589_v61, 4  ;;  %v5351_v15 = vld [vmem:[%s8465_s1 + $0x4c4] sm:$0xf]  ;;  %v4383_v49 = vld [vmem:[%s8465_s1 + $0x4d0] sm:$0xf0] }
  0xd1   :  { %v646_v5 = vadd.f32 %v645_v41, %v194_v35  ;;  %v307_v27 = vrot.slane %v306_v14, 2  ;;  %v364_v28 = vrot.slane %v363_v4, 2  ;;  %v534_v40 = vadd.f32 %v533_v20, %v532_v53  ;;  %v5383_v53 = vld [vmem:[%s8465_s1 + $0x5c4] sm:$0xf] }
  0xd2   :  { %v421_v33 = vrot.slane %v420_v0, 2  ;;  %v249_v34 = vadd.f32 %v248_v22, %v247_v7  ;;  %v478_v21 = vrot.slane %v477_v24, 2  ;;  %v591_v18 = vadd.f32 %v590_v26, %v589_v61 }
  0xd3   :  { %v647_v12 = vrot.slane %v646_v5, 4  ;;  %v308_v60 = vadd.f32 %v307_v27, %v306_v14  ;;  %v365_v25 = vadd.f32 %v364_v28, %v363_v4  ;;  %v535_v16 = vrot.slane %v534_v40, 2  ;;  %v4511_v14 = vld [vmem:[%s8465_s1 + $0x5d0] sm:$0xf0]  ;;  %v5283_v4 = vld [vmem:[%s8465_s1 + $0x2a4] sm:$0xf] }
  0xd4   :  { %v422_v9 = vadd.f32 %v421_v33, %v420_v0  ;;  %v250_v32 = vrot.slane %v249_v34, 1  ;;  %v479_v11 = vadd.f32 %v478_v21, %v477_v24  ;;  %v592_v17 = vrot.slane %v591_v18, 2  ;;  %v4111_v0 = vld [vmem:[%s8465_s1 + $0x2b0] sm:$0xf0]  ;;  %v5347_v28 = vld [vmem:[%s8465_s1 + $0x4a4] sm:$0xf] }
  0xd5   :  { %v648_v1 = vadd.f32 %v647_v12, %v646_v5  ;;  %v309_v19 = vrot.slane %v308_v60, 1  ;;  %v366_v30 = vrot.slane %v365_v25, 1  ;;  %v536_v37 = vadd.f32 %v535_v16, %v534_v40  ;;  %v5315_v5 = vld [vmem:[%s8465_s1 + $0x3a4] sm:$0xf]  ;;  %v4239_v27 = vld [vmem:[%s8465_s1 + $0x3b0] sm:$0xf0] }
  0xd6   :  { %v423_v47 = vrot.slane %v422_v9, 1  ;;  %v251_v10 = vadd.f32 %v250_v32, %v249_v34  ;;  %v480_v59 = vrot.slane %v479_v11, 1  ;;  %v593_v36 = vadd.f32 %v592_v17, %v591_v18  ;;  %v4367_v18 = vld [vmem:[%s8465_s1 + $0x4b0] sm:$0xf0]  ;;  %v5379_v12 = vld [vmem:[%s8465_s1 + $0x5a4] sm:$0xf] }
  0xd7   :  { %v649_v46 = vrot.slane %v648_v1, 2  ;;  %v310_v38 = vadd.f32 %v309_v19, %v308_v60  ;;  %v367_v29 = vadd.f32 %v366_v30, %v365_v25  ;;  %v537_v44 = vrot.slane %v536_v37, 1  ;;  %v4495_v60 = vld [vmem:[%s8465_s1 + $0x5b0] sm:$0xf0]  ;;  %v5279_v19 = vld [vmem:[%s8465_s1 + $0x284] sm:$0xf] }
  0xd8   :  { %v424_v43 = vadd.f32 %v423_v47, %v422_v9  ;;  %v481_v35 = vadd.f32 %v480_v59, %v479_v11  ;;  %v594_v23 = vrot.slane %v593_v36, 1  ;;  %v667_v3 = vpack.c.bf16 %v251_v10, %v251_v10  ;;  %v4095_v30 = vld [vmem:[%s8465_s1 + $0x290] sm:$0xf0]  ;;  %v5311_v47 = vld [vmem:[%s8465_s1 + $0x384] sm:$0xf] }
  0xd9   :  { %v650_v54 = vadd.f32 %v649_v46, %v648_v1  ;;  %v538_v52 = vadd.f32 %v537_v44, %v536_v37  ;;  %v674_v8 = vpack.c.bf16 %v310_v38, %v310_v38  ;;  %v681_v13 = vpack.c.bf16 %v367_v29, %v367_v29  ;;  %v4223_v46 = vld [vmem:[%s8465_s1 + $0x390] sm:$0xf0]  ;;  %v5343_v38 = vld [vmem:[%s8465_s1 + $0x484] sm:$0xf] }
  0xda   :  { %v688_v50 = vpack.c.bf16 %v424_v43, %v424_v43  ;;  %v595_v63 = vadd.f32 %v594_v23, %v593_v36  ;;  %v695_v42 = vpack.c.bf16 %v481_v35, %v481_v35  ;;  %v985_v48 = vunpack.c.l.b16 %v667_v3  ;;  %v4351_v29 = vld [vmem:[%s8465_s1 + $0x490] sm:$0xf0]  ;;  %v5375_v44 = vld [vmem:[%s8465_s1 + $0x584] sm:$0xf] }
  0xdb   :  { %v651_v57 = vrot.slane %v650_v54, 1  ;;  %v702_v7 = vpack.c.bf16 %v538_v52, %v538_v52  ;;  %v992_v58 = vunpack.c.l.b16 %v674_v8  ;;  %v999_v61 = vunpack.c.l.b16 %v681_v13  ;;  %v4479_v35 = vld [vmem:[%s8465_s1 + $0x590] sm:$0xf0]  ;;  %v5275_v52 = vld [vmem:[%s8465_s1 + $0x264] sm:$0xf] }
  0xdc   :  { %v1006_v41 = vunpack.c.l.b16 %v688_v50  ;;  %v709_v22 = vpack.c.bf16 %v595_v63, %v595_v63  ;;  %v1013_v24 = vunpack.c.l.b16 %v695_v42  ;;  %v4130_v26 = vor.u32 %v5287_v55, %v4127_v56  ;;  %v4079_v8 = vld [vmem:[%s8465_s1 + $0x270] sm:$0xf0]  ;;  %v5307_v13 = vld [vmem:[%s8465_s1 + $0x364] sm:$0xf] }
  0xdd   :  { %v652_v20 = vadd.f32 %v651_v57, %v650_v54  ;;  %v1020_v33 = vunpack.c.l.b16 %v702_v7  ;;  %v1078_v40 = vsel %vm1036_vm1, %v992_v58, %v985_v48  ;;  %v4258_v34 = vor.u32 %v5319_v31, %v4255_v45  ;;  %v4207_v45 = vld [vmem:[%s8465_s1 + $0x370] sm:$0xf0]  ;;  %v5371_v57 = vld [vmem:[%s8465_s1 + $0x564] sm:$0xf] }
  0xde   :  { %v4386_v21 = vor.u32 %v5351_v15, %v4383_v49  ;;  %v1027_v9 = vunpack.c.l.b16 %v709_v22  ;;  %v1079_v16 = vsel %vm1038_vm2, %v999_v61, %v1078_v40  ;;  %2206 = vmatpush.bf16.msra.mxu0 %v4130_v26  ;;  %v4514_v32 = vor.u32 %v5383_v53, %v4511_v14  ;;  %v5339_v15 = vld [vmem:[%s8465_s1 + $0x464] sm:$0xf]  ;;  %v4335_v63 = vld [vmem:[%s8465_s1 + $0x470] sm:$0xf0] }
  0xdf   :  { %v716_v25 = vpack.c.bf16 %v652_v20, %v652_v20  ;;  %v1080_v11 = vsel %vm1040_vm3, %v1006_v41, %v1079_v16  ;;  %2219 = vmatpush.bf16.msra.mxu1 %v4258_v34  ;;  %v4114_v17 = vor.u32 %v5283_v4, %v4111_v0  ;;  %v4242_v1 = vor.u32 %v5315_v5, %v4239_v27  ;;  %v4463_v42 = vld [vmem:[%s8465_s1 + $0x570] sm:$0xf0]  ;;  %v5271_v7 = vld [vmem:[%s8465_s1 + $0x244] sm:$0xf] }
  0xe0   :  { %2232 = vmatpush.bf16.msra.mxu3 %v4386_v21  ;;  %v1081_v10 = vsel %vm1042_vm4, %v1013_v24, %v1080_v11  ;;  %2245 = vmatpush.bf16.msrb.mxu2 %v4514_v32  ;;  %v4370_v59 = vor.u32 %v5347_v28, %v4367_v18  ;;  %v4498_v36 = vor.u32 %v5379_v12, %v4495_v60  ;;  %v4063_v58 = vld [vmem:[%s8465_s1 + $0x250] sm:$0xf0]  ;;  %v5303_v61 = vld [vmem:[%s8465_s1 + $0x344] sm:$0xf] }
  0xe1   :  { %v1034_v37 = vunpack.c.l.b16 %v716_v25  ;;  %v1082_v43 = vsel %vm1044_vm5, %v1020_v33, %v1081_v10  ;;  %v4098_v54 = vor.u32 %v5279_v19, %v4095_v30  ;;  %v4226_v55 = vor.u32 %v5311_v47, %v4223_v46  ;;  %v4191_v14 = vld [vmem:[%s8465_s1 + $0x350] sm:$0xf0]  ;;  %v5335_v4 = vld [vmem:[%s8465_s1 + $0x444] sm:$0xf]  ;;  %v5230_v10 = vld [vmem:[%s8465_s1 + $0xf4] sm:$0xf0] }
  0xe2   :  { %v1083_v23 = vsel %vm1046_vm6, %v1027_v9, %v1082_v43  ;;  %2207 = vmatpush.bf16.msra.mxu0 %v4114_v17  ;;  %v4354_v56 = vor.u32 %v5343_v38, %v4351_v29  ;;  %v4482_v31 = vor.u32 %v5375_v44, %v4479_v35  ;;  %v4082_v48 = vor.u32 %v5275_v52, %v4079_v8  ;;  %v4319_v0 = vld [vmem:[%s8465_s1 + $0x450] sm:$0xf0]  ;;  %v5367_v20 = vld [vmem:[%s8465_s1 + $0x544] sm:$0xf]  ;;  %v4021_v35 = vld [vmem:[%s8465_s1 + $0x1e8] sm:$0xf] }
  0xe3   :  { %v1084_v3 = vsel %vm1048_vm7, %v1034_v37, %v1083_v23  ;;  %2220 = vmatpush.bf16.msra.mxu1 %v4242_v1  ;;  %v4210_v49 = vor.u32 %v5307_v13, %v4207_v45  ;;  %v4338_v53 = vor.u32 %v5339_v15, %v4335_v63  ;;  %v4466_v41 = vor.u32 %v5371_v57, %v4463_v42  ;;  %v4447_v22 = vld [vmem:[%s8465_s1 + $0x550] sm:$0xf0]  ;;  %v5267_v27 = vld [vmem:[%s8465_s1 + $0x224] sm:$0xf]  ;;  %v3893_v37 = vld [vmem:[%s8465_s1 + $0xe8] sm:$0xf] }
  0xe4   :  { %2233 = vmatpush.bf16.msra.mxu3 %v4370_v59  ;;  %v6790_v50 = vpack.c.b16 %v1084_v3, %v1084_v3  ;;  %2246 = vmatpush.bf16.msrb.mxu2 %v4498_v36  ;;  %v4066_v24 = vor.u32 %v5271_v7, %v4063_v58  ;;  %v4194_v26 = vor.u32 %v5303_v61, %v4191_v14  ;;  %v4047_v28 = vld [vmem:[%s8465_s1 + $0x230] sm:$0xf0]  ;;  %v5299_v33 = vld [vmem:[%s8465_s1 + $0x324] sm:$0xf]  ;;  %v4149_v23 = vld [vmem:[%s8465_s1 + $0x2e8] sm:$0xf] }
  0xe5   :  { %v4322_v5 = vor.u32 %v5335_v4, %v4319_v0  ;;  %v4450_v40 = vor.u32 %v5367_v20, %v4447_v22  ;;  %v4175_v34 = vld [vmem:[%s8465_s1 + $0x330] sm:$0xf0]  ;;  %v5331_v21 = vld [vmem:[%s8465_s1 + $0x424] sm:$0xf]  ;;  %v4050_v25 = vor.u32 %v5267_v27, %v4047_v28  ;;  %v3894_v3 = vor.u32 %v5230_v10, %v3893_v37  ;;  %v4277_v52 = vld [vmem:[%s8465_s1 + $0x3e8] sm:$0xf] }
  0xe6   :  { %2161 = vmatmul.bf16.vlgmr.msrb.gmra.mxu1 %v6790_v50  ;;  %2208 = vmatpush.bf16.msra.mxu0 %v4098_v54  ;;  %v4303_v18 = vld [vmem:[%s8465_s1 + $0x430] sm:$0xf0]  ;;  %v5363_v12 = vld [vmem:[%s8465_s1 + $0x524] sm:$0xf]  ;;  %v4178_v16 = vor.u32 %v5299_v33, %v4175_v34  ;;  %v5294_v54 = vld [vmem:[%s8465_s1 + $0x2f4] sm:$0xf0] }
  0xe7   :  { %2221 = vmatpush.bf16.msra.mxu1 %v4226_v55  ;;  %v4431_v60 = vld [vmem:[%s8465_s1 + $0x530] sm:$0xf0]  ;;  %v5263_v9 = vld [vmem:[%s8465_s1 + $0x204] sm:$0xf]  ;;  %v4306_v32 = vor.u32 %v5331_v21, %v4303_v18  ;;  %v5326_v8 = vld [vmem:[%s8465_s1 + $0x3f4] sm:$0xf0] }
  0xe8   :  { %2234 = vmatpush.bf16.msra.mxu3 %v4354_v56  ;;  %2247 = vmatpush.bf16.msrb.mxu2 %v4482_v31  ;;  %v4031_v11 = vld [vmem:[%s8465_s1 + $0x210] sm:$0xf0]  ;;  %v5295_v17 = vld [vmem:[%s8465_s1 + $0x304] sm:$0xf]  ;;  %v4434_v19 = vor.u32 %v5363_v12, %v4431_v60  ;;  %v5262_v56 = vld [vmem:[%s8465_s1 + $0x1f4] sm:$0xf0]  ;;  %v4150_v31 = vor.u32 %v5294_v54, %v4149_v23  ;;  %v4278_v57 = vor.u32 %v5326_v8, %v4277_v52 }
  0xe9   :  { %v4159_v1 = vld [vmem:[%s8465_s1 + $0x310] sm:$0xf0]  ;;  %v5327_v30 = vld [vmem:[%s8465_s1 + $0x404] sm:$0xf]  ;;  %v4034_v46 = vor.u32 %v5263_v9, %v4031_v11  ;;  %v3877_v45 = vld [vmem:[%s8465_s1 + $0xc8] sm:$0xf]  ;;  %v4022_v63 = vor.u32 %v5262_v56, %v4021_v35 }
  0xea   :  { %2209 = vmatpush.bf16.msra.mxu0 %v4082_v48  ;;  %v4287_v47 = vld [vmem:[%s8465_s1 + $0x410] sm:$0xf0]  ;;  %v5359_v59 = vld [vmem:[%s8465_s1 + $0x504] sm:$0xf]  ;;  %v4162_v43 = vor.u32 %v5295_v17, %v4159_v1  ;;  %v5226_v15 = vld [vmem:[%s8465_s1 + $0xd4] sm:$0xf0] }
  0xeb   :  { %2222 = vmatpush.bf16.msra.mxu1 %v4210_v49  ;;  %v4415_v36 = vld [vmem:[%s8465_s1 + $0x510] sm:$0xf0]  ;;  %v5391_v38 = vld [vmem:[%s8465_s1 + $0x604] sm:$0xf]  ;;  %v4290_v44 = vor.u32 %v5327_v30, %v4287_v47  ;;  %v4005_v42 = vld [vmem:[%s8465_s1 + $0x1c8] sm:$0xf] }
  0xec   :  { %2235 = vmatpush.bf16.msra.mxu3 %v4338_v53  ;;  %2248 = vmatpush.bf16.msrb.mxu2 %v4466_v41  ;;  %v4543_v29 = vld [vmem:[%s8465_s1 + $0x610] sm:$0xf0]  ;;  %v4418_v55 = vor.u32 %v5359_v59, %v4415_v36  ;;  %v4133_v48 = vld [vmem:[%s8465_s1 + $0x2c8] sm:$0xf]  ;;  %v5290_v49 = vld [vmem:[%s8465_s1 + $0x2d4] sm:$0xf0]  ;;  %v3878_v41 = vor.u32 %v5226_v15, %v3877_v45 }
  0xed   :  { %v4546_v13 = vor.u32 %v5391_v38, %v4543_v29  ;;  %v5258_v53 = vld [vmem:[%s8465_s1 + $0x1d4] sm:$0xf0]  ;;  %v4261_v7 = vld [vmem:[%s8465_s1 + $0x3c8] sm:$0xf]  ;;  %v8482_v61 = vld [vmem:[#allocation4_spill] sm:$0xff]  ;;  %v4134_v14 = vor.u32 %v5290_v49, %v4133_v48 }
  0xee   :  { %2210 = vmatpush.bf16.msra.mxu0 %v4066_v24  ;;  %v5322_v58 = vld [vmem:[%s8465_s1 + $0x3d4] sm:$0xf0]  ;;  %v3861_v4 = vld [vmem:[%s8465_s1 + $0xa8] sm:$0xf]  ;;  %v4006_v20 = vor.u32 %v5258_v53, %v4005_v42 }
  0xef   :  { %2223 = vmatpush.bf16.msra.mxu1 %v4194_v26  ;;  %v5222_v0 = vld [vmem:[%s8465_s1 + $0xb4] sm:$0xf0]  ;;  %v4262_v22 = vor.u32 %v5322_v58, %v4261_v7  ;;  %v3989_v24 = vld [vmem:[%s8465_s1 + $0x1a8] sm:$0xf] }
  0xf0   :  { %2236 = vmatpush.bf16.msra.mxu3 %v4322_v5  ;;  %2249 = vmatpush.bf16.msrb.mxu2 %v4450_v40  ;;  %v4117_v26 = vld [vmem:[%s8465_s1 + $0x2a8] sm:$0xf]  ;;  %v5286_v5 = vld [vmem:[%s8465_s1 + $0x2b4] sm:$0xf0]  ;;  %v3862_v40 = vor.u32 %v5222_v0, %v3861_v4 }
  0xf1   :  { %v5254_v27 = vld [vmem:[%s8465_s1 + $0x1b4] sm:$0xf0]  ;;  %v4245_v28 = vld [vmem:[%s8465_s1 + $0x3a8] sm:$0xf]  ;;  %v4118_v34 = vor.u32 %v5286_v5, %v4117_v26 }
  0xf2   :  { %2211 = vmatpush.bf16.msra.mxu0 %v4050_v25  ;;  %v5318_v33 = vld [vmem:[%s8465_s1 + $0x3b4] sm:$0xf0]  ;;  %v3845_v21 = vld [vmem:[%s8465_s1 + $0x88] sm:$0xf]  ;;  %v3990_v12 = vor.u32 %v5254_v27, %v3989_v24 }
  0xf3   :  { %2224 = vmatpush.bf16.msra.mxu1 %v4178_v16  ;;  %v5218_v18 = vld [vmem:[%s8465_s1 + $0x94] sm:$0xf0]  ;;  %v4246_v60 = vor.u32 %v5318_v33, %v4245_v28  ;;  %v3973_v25 = vld [vmem:[%s8465_s1 + $0x188] sm:$0xf] }
  0xf4   :  { %2237 = vmatpush.bf16.msra.mxu3 %v4306_v32  ;;  %2250 = vmatpush.bf16.msrb.mxu2 %v4434_v19  ;;  %v4101_v9 = vld [vmem:[%s8465_s1 + $0x288] sm:$0xf]  ;;  %v5282_v16 = vld [vmem:[%s8465_s1 + $0x294] sm:$0xf0]  ;;  %v3846_v1 = vor.u32 %v5218_v18, %v3845_v21 }
  0xf5   :  { %v5250_v32 = vld [vmem:[%s8465_s1 + $0x194] sm:$0xf0]  ;;  %v4229_v11 = vld [vmem:[%s8465_s1 + $0x388] sm:$0xf]  ;;  %v4102_v19 = vor.u32 %v5282_v16, %v4101_v9  ;;  %v5228_v16 = vld [vmem:[%s8465_s1 + $0xec] sm:$0xf] }
  0xf6   :  { %2212 = vmatpush.bf16.msra.mxu0 %v4034_v46  ;;  %v5314_v17 = vld [vmem:[%s8465_s1 + $0x394] sm:$0xf0]  ;;  %v3829_v30 = vld [vmem:[%s8465_s1 + $0x68] sm:$0xf]  ;;  %v3974_v37 = vor.u32 %v5250_v32, %v3973_v25  ;;  %v3895_v32 = vld [vmem:[%s8465_s1 + $0xf8] sm:$0xf0] }
  0xf7   :  { %2225 = vmatpush.bf16.msra.mxu1 %v4162_v43  ;;  %v5214_v47 = vld [vmem:[%s8465_s1 + $0x74] sm:$0xf0]  ;;  %v4230_v10 = vor.u32 %v5314_v17, %v4229_v11  ;;  %v3957_v59 = vld [vmem:[%s8465_s1 + $0x168] sm:$0xf] }
  0xf8   :  { %2238 = vmatpush.bf16.msra.mxu3 %v4290_v44  ;;  %2251 = vmatpush.bf16.msrb.mxu2 %v4418_v55  ;;  %v4085_v36 = vld [vmem:[%s8465_s1 + $0x268] sm:$0xf]  ;;  %v5278_v46 = vld [vmem:[%s8465_s1 + $0x274] sm:$0xf0]  ;;  %v3830_v44 = vor.u32 %v5214_v47, %v3829_v30 }
  0xf9   :  { %2213 = vmatmul.bf16.vlgmr.msra.gmra.mxu0 %v8482_v61  ;;  %v5246_v38 = vld [vmem:[%s8465_s1 + $0x174] sm:$0xf0]  ;;  %v4213_v29 = vld [vmem:[%s8465_s1 + $0x368] sm:$0xf]  ;;  %v4086_v35 = vor.u32 %v5278_v46, %v4085_v36  ;;  %v3898_v36 = vor.u32 %v5228_v16, %v3895_v32  ;;  %v5260_v46 = vld [vmem:[%s8465_s1 + $0x1ec] sm:$0xf]  ;;  %v7214_v32 = vpop.f32.mrf.mxu0 }
  0xfa   :  { %2296 = vmatpush.bf16.msrb.mxu0 %v4150_v31  ;;  %2226 = vmatmul.bf16.vlgmr.msra.gmra.mxu1 %v6213_v62  ;;  %v5310_v43 = vld [vmem:[%s8465_s1 + $0x374] sm:$0xf0]  ;;  %v3813_v23 = vld [vmem:[%s8465_s1 + $0x48] sm:$0xf] }
  0xfb   :  { %2270 = vmatpush.bf16.msrb.mxu1 %v3894_v3  ;;  %2239 = vmatmul.bf16.vlgmr.msra.gmra.mxu3 %v6689_v6  ;;  %v5210_v54 = vld [vmem:[%s8465_s1 + $0x54] sm:$0xf0]  ;;  %v3958_v3 = vor.u32 %v5246_v38, %v3957_v59  ;;  %v4214_v55 = vor.u32 %v5310_v43, %v4213_v29  ;;  %v3941_v56 = vld [vmem:[%s8465_s1 + $0x148] sm:$0xf]  ;;  %v4023_v29 = vld [vmem:[%s8465_s1 + $0x1f8] sm:$0xf0] }
  0xfc   :  { %2264 = vmatpush.bf16.msrb.mxu3 %v4546_v13  ;;  %2309 = vmatpush.bf16.msra.mxu2 %v4278_v57  ;;  %v4069_v52 = vld [vmem:[%s8465_s1 + $0x248] sm:$0xf]  ;;  %v5274_v8 = vld [vmem:[%s8465_s1 + $0x254] sm:$0xf0]  ;;  %v3814_v15 = vor.u32 %v5210_v54, %v3813_v23  ;;  %v5224_v23 = vld [vmem:[%s8465_s1 + $0xcc] sm:$0xf] }
  0xfd   :  { %2252 = vmatmul.bf16.vlgmr.msrb.gmra.mxu2 %v6790_v50  ;;  %v5242_v13 = vld [vmem:[%s8465_s1 + $0x154] sm:$0xf0]  ;;  %v4197_v31 = vld [vmem:[%s8465_s1 + $0x348] sm:$0xf]  ;;  %v3879_v54 = vld [vmem:[%s8465_s1 + $0xd8] sm:$0xf0] }
  0xfe   :  { %2297 = vmatpush.bf16.msrb.mxu0 %v4134_v14  ;;  %v5306_v45 = vld [vmem:[%s8465_s1 + $0x354] sm:$0xf0]  ;;  %v3797_v57 = vld [vmem:[%s8465_s1 + $0x28] sm:$0xf]  ;;  %v3942_v48 = vor.u32 %v5242_v13, %v3941_v56  ;;  %v4026_v56 = vor.u32 %v5260_v46, %v4023_v29  ;;  %v3882_v13 = vor.u32 %v5224_v23, %v3879_v54  ;;  %v5208_v46 = vld [vmem:[%s8465_s1 + $0x4c] sm:$0xf] }
  0xff   :  { %2271 = vmatpush.bf16.msrb.mxu1 %v3878_v41  ;;  %v5206_v42 = vld [vmem:[%s8465_s1 + $0x34] sm:$0xf0]  ;;  %v4198_v49 = vor.u32 %v5306_v45, %v4197_v31  ;;  %v3925_v53 = vld [vmem:[%s8465_s1 + $0x128] sm:$0xf]  ;;  %v4007_v31 = vld [vmem:[%s8465_s1 + $0x1d8] sm:$0xf0] }
 0x100   :  { %2283 = vmatpush.bf16.msra.mxu3 %v4022_v63  ;;  %2310 = vmatpush.bf16.msra.mxu2 %v4262_v22  ;;  %v4070_v63 = vor.u32 %v5274_v8, %v4069_v52  ;;  %v4053_v7 = vld [vmem:[%s8465_s1 + $0x228] sm:$0xf]  ;;  %v5270_v58 = vld [vmem:[%s8465_s1 + $0x234] sm:$0xf0]  ;;  %v3798_v0 = vor.u32 %v5206_v42, %v3797_v57  ;;  %v5256_v8 = vld [vmem:[%s8465_s1 + $0x1cc] sm:$0xf] }
 0x101   :  { %v5238_v41 = vld [vmem:[%s8465_s1 + $0x134] sm:$0xf0]  ;;  %v4181_v14 = vld [vmem:[%s8465_s1 + $0x328] sm:$0xf]  ;;  %v4054_v24 = vor.u32 %v5270_v58, %v4053_v7  ;;  %v5220_v57 = vld [vmem:[%s8465_s1 + $0xac] sm:$0xf] }
 0x102   :  { %2298 = vmatpush.bf16.msrb.mxu0 %v4118_v34  ;;  %v5302_v4 = vld [vmem:[%s8465_s1 + $0x334] sm:$0xf0]  ;;  %v4405_v26 = vld [vmem:[%s8465_s1 + $0x4e8] sm:$0xf]  ;;  %v3926_v28 = vor.u32 %v5238_v41, %v3925_v53  ;;  %v3863_v42 = vld [vmem:[%s8465_s1 + $0xb8] sm:$0xf0]  ;;  %v4010_v53 = vor.u32 %v5256_v8, %v4007_v31 }
 0x103   :  { %2272 = vmatpush.bf16.msrb.mxu1 %v3862_v40  ;;  %v5202_v22 = vld [vmem:[%s8465_s1 + $0x14] sm:$0xf0]  ;;  %v3909_v27 = vld [vmem:[%s8465_s1 + $0x108] sm:$0xf]  ;;  %v4182_v33 = vor.u32 %v5302_v4, %v4181_v14  ;;  %v5252_v58 = vld [vmem:[%s8465_s1 + $0x1ac] sm:$0xf]  ;;  %v3866_v41 = vor.u32 %v5220_v57, %v3863_v42  ;;  %v2099_v57 = vpop.f32.mrf.mxu0 }
 0x104   :  { %2284 = vmatpush.bf16.msra.mxu3 %v4006_v20  ;;  %2311 = vmatpush.bf16.msra.mxu2 %v4246_v60  ;;  %v3781_v20 = vld [vmem:[%s8465_s1 + $0x8] sm:$0xf]  ;;  %v5358_v5 = vld [vmem:[%s8465_s1 + $0x4f4] sm:$0xf0]  ;;  %v3991_v14 = vld [vmem:[%s8465_s1 + $0x1b8] sm:$0xf0] }
 0x105   :  { %v5234_v40 = vld [vmem:[%s8465_s1 + $0x114] sm:$0xf0]  ;;  %v4037_v34 = vld [vmem:[%s8465_s1 + $0x208] sm:$0xf]  ;;  %v3782_v25 = vor.u32 %v5202_v22, %v3781_v20  ;;  %v4406_v11 = vor.u32 %v5358_v5, %v4405_v26  ;;  %v5216_v22 = vld [vmem:[%s8465_s1 + $0x8c] sm:$0xf] }
 0x106   :  { %2299 = vmatpush.bf16.msrb.mxu0 %v4102_v19  ;;  %v5266_v21 = vld [vmem:[%s8465_s1 + $0x214] sm:$0xf0]  ;;  %v4165_v18 = vld [vmem:[%s8465_s1 + $0x308] sm:$0xf]  ;;  %v3910_v30 = vor.u32 %v5234_v40, %v3909_v27  ;;  %v3994_v27 = vor.u32 %v5252_v58, %v3991_v14  ;;  %v5240_v23 = vld [vmem:[%s8465_s1 + $0x14c] sm:$0xf] }
 0x107   :  { %2273 = vmatpush.bf16.msrb.mxu1 %v3846_v1  ;;  %v4533_v60 = vld [vmem:[%s8465_s1 + $0x5e8] sm:$0xf]  ;;  %v5390_v9 = vld [vmem:[%s8465_s1 + $0x5f4] sm:$0xf0]  ;;  %v4038_v17 = vor.u32 %v5266_v21, %v4037_v34  ;;  %v3975_v34 = vld [vmem:[%s8465_s1 + $0x198] sm:$0xf0] }
 0x108   :  { %2285 = vmatpush.bf16.msra.mxu3 %v3990_v12  ;;  %2312 = vmatpush.bf16.msra.mxu2 %v4230_v10  ;;  %v5298_v12 = vld [vmem:[%s8465_s1 + $0x314] sm:$0xf0]  ;;  %v4549_v1 = vld [vmem:[%s8465_s1 + $0x608] sm:$0xf]  ;;  %v4534_v59 = vor.u32 %v5390_v9, %v4533_v60  ;;  %v5212_v60 = vld [vmem:[%s8465_s1 + $0x6c] sm:$0xf] }
 0x109   :  { %v5394_v19 = vld [vmem:[%s8465_s1 + $0x614] sm:$0xf0]  ;;  %v4166_v47 = vor.u32 %v5298_v12, %v4165_v18  ;;  %v4517_v43 = vld [vmem:[%s8465_s1 + $0x5c8] sm:$0xf]  ;;  %v3799_v31 = vld [vmem:[%s8465_s1 + $0x38] sm:$0xf0] }
 0x10a   :  { %2300 = vmatpush.bf16.msrb.mxu0 %v4086_v35  ;;  %v5354_v10 = vld [vmem:[%s8465_s1 + $0x4d4] sm:$0xf0]  ;;  %v4550_v38 = vor.u32 %v5394_v19, %v4549_v1  ;;  %v4501_v45 = vld [vmem:[%s8465_s1 + $0x5a8] sm:$0xf]  ;;  %v5244_v19 = vld [vmem:[%s8465_s1 + $0x16c] sm:$0xf] }
 0x10b   :  { %2274 = vmatpush.bf16.msrb.mxu1 %v3830_v44  ;;  %4556 = vmatmul.msk.bf16.vlgmr.msrb.gmra.mxu3 %vm252_vm8, %v6647_v51  ;;  %v5386_v44 = vld [vmem:[%s8465_s1 + $0x5d4] sm:$0xf0]  ;;  %v4485_v4 = vld [vmem:[%s8465_s1 + $0x588] sm:$0xf] }
 0x10c   :  { %2286 = vmatpush.bf16.msra.mxu3 %v3974_v37  ;;  %2313 = vmatpush.bf16.msra.mxu2 %v4214_v55  ;;  %v4389_v37 = vld [vmem:[%s8465_s1 + $0x4c8] sm:$0xf]  ;;  %v5350_v55 = vld [vmem:[%s8465_s1 + $0x4b4] sm:$0xf0]  ;;  %v4518_v52 = vor.u32 %v5386_v44, %v4517_v43 }
 0x10d   :  { %v4390_v35 = vor.u32 %v5354_v10, %v4389_v37  ;;  %v4341_v26 = vld [vmem:[%s8465_s1 + $0x468] sm:$0xf]  ;;  %v5342_v5 = vld [vmem:[%s8465_s1 + $0x474] sm:$0xf0] }
 0x10e   :  { %2301 = vmatpush.bf16.msrb.mxu0 %v4070_v63  ;;  %v4469_v21 = vld [vmem:[%s8465_s1 + $0x568] sm:$0xf]  ;;  %v5374_v18 = vld [vmem:[%s8465_s1 + $0x574] sm:$0xf0]  ;;  %v4342_v12 = vor.u32 %v5342_v5, %v4341_v26  ;;  %v5324_v26 = vld [vmem:[%s8465_s1 + $0x3ec] sm:$0xf] }
 0x10f   :  { %2275 = vmatpush.bf16.msrb.mxu1 %v3814_v15  ;;  %v5382_v15 = vld [vmem:[%s8465_s1 + $0x5b4] sm:$0xf0]  ;;  %v4325_v9 = vld [vmem:[%s8465_s1 + $0x448] sm:$0xf]  ;;  %v4470_v1 = vor.u32 %v5374_v18, %v4469_v21  ;;  %v5288_v21 = vld [vmem:[%s8465_s1 + $0x2cc] sm:$0xf] }
 0x110   :  { %2287 = vmatpush.bf16.msra.mxu3 %v3958_v3  ;;  %2314 = vmatpush.bf16.msra.mxu2 %v4198_v49  ;;  %v4373_v3 = vld [vmem:[%s8465_s1 + $0x4a8] sm:$0xf]  ;;  %v5346_v49 = vld [vmem:[%s8465_s1 + $0x494] sm:$0xf0]  ;;  %v4502_v7 = vor.u32 %v5382_v15, %v4501_v45  ;;  %v4135_v18 = vld [vmem:[%s8465_s1 + $0x2d8] sm:$0xf0] }
 0x111   :  { %v4374_v63 = vor.u32 %v5350_v55, %v4373_v3  ;;  %v5338_v16 = vld [vmem:[%s8465_s1 + $0x454] sm:$0xf0]  ;;  %v4453_v37 = vld [vmem:[%s8465_s1 + $0x548] sm:$0xf]  ;;  %v3943_v3 = vld [vmem:[%s8465_s1 + $0x158] sm:$0xf0] }
 0x112   :  { %2302 = vmatpush.bf16.msrb.mxu0 %v4054_v24  ;;  %v3847_v24 = vld [vmem:[%s8465_s1 + $0x98] sm:$0xf0]  ;;  %v5370_v10 = vld [vmem:[%s8465_s1 + $0x554] sm:$0xf0]  ;;  %v4309_v29 = vld [vmem:[%s8465_s1 + $0x428] sm:$0xf]  ;;  %v3946_v42 = vor.u32 %v5240_v23, %v3943_v3 }
 0x113   :  { %2276 = vmatpush.bf16.msrb.mxu1 %v3798_v0  ;;  %v5378_v0 = vld [vmem:[%s8465_s1 + $0x594] sm:$0xf0]  ;;  %v3850_v40 = vor.u32 %v5216_v22, %v3847_v24  ;;  %v4437_v55 = vld [vmem:[%s8465_s1 + $0x528] sm:$0xf]  ;;  %v5200_v22 = vld [vmem:[%s8465_s1 + $0xc] sm:$0xf] }
 0x114   :  { %2288 = vmatpush.bf16.msra.mxu3 %v3942_v48  ;;  %2315 = vmatpush.bf16.msra.mxu2 %v4182_v33  ;;  %v4357_v48 = vld [vmem:[%s8465_s1 + $0x488] sm:$0xf]  ;;  %v5248_v33 = vld [vmem:[%s8465_s1 + $0x18c] sm:$0xf]  ;;  %v5334_v43 = vld [vmem:[%s8465_s1 + $0x434] sm:$0xf0] }
 0x115   :  { %v4358_v20 = vor.u32 %v5346_v49, %v4357_v48  ;;  %v4310_v8 = vor.u32 %v5334_v43, %v4309_v29  ;;  %v4293_v45 = vld [vmem:[%s8465_s1 + $0x408] sm:$0xf]  ;;  %v5330_v15 = vld [vmem:[%s8465_s1 + $0x414] sm:$0xf0]  ;;  %v5292_v49 = vld [vmem:[%s8465_s1 + $0x2ec] sm:$0xf] }
 0x116   :  { %2303 = vmatpush.bf16.msrb.mxu0 %v4038_v17  ;;  %v3978_v17 = vor.u32 %v5248_v33, %v3975_v34  ;;  %v4421_v14 = vld [vmem:[%s8465_s1 + $0x508] sm:$0xf]  ;;  %v3783_v24 = vld [vmem:[%s8465_s1 + $0x18] sm:$0xf0]  ;;  %v5384_v23 = vld [vmem:[%s8465_s1 + $0x5cc] sm:$0xf] }
 0x117   :  { %2277 = vmatpush.bf16.msrb.mxu1 %v3782_v25  ;;  %v3831_v25 = vld [vmem:[%s8465_s1 + $0x78] sm:$0xf0]  ;;  %v5316_v3 = vld [vmem:[%s8465_s1 + $0x3ac] sm:$0xf] }
 0x118   :  { %2289 = vmatpush.bf16.msra.mxu3 %v3926_v28  ;;  %2316 = vmatpush.bf16.msra.mxu2 %v4166_v47  ;;  %v4486_v28 = vor.u32 %v5378_v0, %v4485_v4  ;;  %v3959_v47 = vld [vmem:[%s8465_s1 + $0x178] sm:$0xf0]  ;;  %v5362_v4 = vld [vmem:[%s8465_s1 + $0x514] sm:$0xf0] }
 0x119   :  { %2304 = vmatmul.bf16.vlgmr.msrb.gmra.mxu0 %v8482_v61  ;;  %v3962_v44 = vor.u32 %v5244_v19, %v3959_v47  ;;  %v4407_v33 = vld [vmem:[%s8465_s1 + $0x4f8] sm:$0xf0]  ;;  %v4422_v34 = vor.u32 %v5362_v4, %v4421_v14  ;;  %v4138_v47 = vor.u32 %v5288_v21, %v4135_v18 }
 0x11a   :  { %2355 = vmatpush.bf16.msra.mxu0 %v4550_v38  ;;  %2278 = vmatmul.bf16.vlgmr.msrb.gmra.mxu1 %v6164_v2  ;;  %v3815_v38 = vld [vmem:[%s8465_s1 + $0x58] sm:$0xf0] }
 0x11b   :  { %2322 = vmatpush.bf16.msra.mxu1 %v4406_v11  ;;  %2317 = vmatmul.bf16.vlgmr.msra.gmra.mxu2 %v6213_v62  ;;  %v7216_v11 = vpop.f32.mrf.mxu2  ;;  %v3818_v54 = vor.u32 %v5208_v46, %v3815_v38  ;;  %v4535_v19 = vld [vmem:[%s8465_s1 + $0x5f8] sm:$0xf0]  ;;  %v5284_v38 = vld [vmem:[%s8465_s1 + $0x2ac] sm:$0xf] }
 0x11c   :  { %2290 = vmatpush.bf16.msra.mxu3 %v3910_v30  ;;  %2361 = vmatpush.bf16.msrb.mxu2 %v3898_v36  ;;  %v3834_v30 = vor.u32 %v5212_v60, %v3831_v25  ;;  %v4326_v36 = vor.u32 %v5338_v16, %v4325_v9  ;;  %v5232_v60 = vld [vmem:[%s8465_s1 + $0x10c] sm:$0xf]  ;;  %v3911_v25 = vld [vmem:[%s8465_s1 + $0x118] sm:$0xf0] }
 0x11d   :  { %v3914_v46 = vor.u32 %v5232_v60, %v3911_v25  ;;  %v4119_v29 = vld [vmem:[%s8465_s1 + $0x2b8] sm:$0xf0]  ;;  %v5304_v25 = vld [vmem:[%s8465_s1 + $0x34c] sm:$0xf] }
 0x11e   :  { %2374 = vmatpush.bf16.msrb.mxu0 %v4026_v56  ;;  %v5366_v56 = vld [vmem:[%s8465_s1 + $0x534] sm:$0xf0]  ;;  %v4087_v14 = vld [vmem:[%s8465_s1 + $0x278] sm:$0xf0] }
 0x11f   :  { %2323 = vmatpush.bf16.msra.mxu1 %v4390_v35  ;;  %2291 = vmatmul.bf16.vlgmr.msra.gmra.mxu3 %v6470_v39  ;;  %v4454_v35 = vor.u32 %v5370_v10, %v4453_v37  ;;  %v4438_v48 = vor.u32 %v5366_v56, %v4437_v55  ;;  %v4263_v37 = vld [vmem:[%s8465_s1 + $0x3d8] sm:$0xf0]  ;;  %v5352_v10 = vld [vmem:[%s8465_s1 + $0x4cc] sm:$0xf]  ;;  %v4122_v55 = vor.u32 %v5284_v38, %v4119_v29 }
 0x120   :  { %2335 = vmatpush.bf16.msrb.mxu3 %v4534_v59  ;;  %2362 = vmatpush.bf16.msrb.mxu2 %v3882_v13  ;;  %v7230_v59 = vpop.f32.mrf.mxu1  ;;  %v5204_v13 = vld [vmem:[%s8465_s1 + $0x2c] sm:$0xf]  ;;  %v4247_v56 = vld [vmem:[%s8465_s1 + $0x3b8] sm:$0xf0] }
 0x121   :  { %v3802_v58 = vor.u32 %v5204_v13, %v3799_v31  ;;  %v4375_v13 = vld [vmem:[%s8465_s1 + $0x4b8] sm:$0xf0]  ;;  %v5280_v31 = vld [vmem:[%s8465_s1 + $0x28c] sm:$0xf] }
 0x122   :  { %2375 = vmatpush.bf16.msrb.mxu0 %v4010_v53  ;;  %v4151_v53 = vld [vmem:[%s8465_s1 + $0x2f8] sm:$0xf0]  ;;  %v5300_v29 = vld [vmem:[%s8465_s1 + $0x32c] sm:$0xf] }
 0x123   :  { %2324 = vmatpush.bf16.msra.mxu1 %v4374_v63  ;;  %v2125_v63 = vpop.f32.mrf.mxu2  ;;  %v4154_v5 = vor.u32 %v5292_v49, %v4151_v53  ;;  %v5312_v49 = vld [vmem:[%s8465_s1 + $0x38c] sm:$0xf]  ;;  %v4231_v53 = vld [vmem:[%s8465_s1 + $0x398] sm:$0xf0] }
 0x124   :  { %2336 = vmatpush.bf16.msrb.mxu3 %v4518_v52  ;;  %2363 = vmatpush.bf16.msrb.mxu2 %v3866_v41  ;;  %v7256_v52 = vpop.f32.mrf.mxu3  ;;  %v3927_v41 = vld [vmem:[%s8465_s1 + $0x138] sm:$0xf0]  ;;  %v4250_v63 = vor.u32 %v5316_v3, %v4247_v56 }
 0x125   :  { %v4471_v60 = vld [vmem:[%s8465_s1 + $0x578] sm:$0xf0] }
 0x126   :  { %2376 = vmatpush.bf16.msrb.mxu0 %v3994_v27  ;;  %v4279_v27 = vld [vmem:[%s8465_s1 + $0x3f8] sm:$0xf0] }
 0x127   :  { %2325 = vmatpush.bf16.msra.mxu1 %v4358_v20  ;;  %v4294_v20 = vor.u32 %v5330_v15, %v4293_v45  ;;  %v4282_v16 = vor.u32 %v5324_v26, %v4279_v27  ;;  %v4103_v45 = vld [vmem:[%s8465_s1 + $0x298] sm:$0xf0]  ;;  %v5340_v27 = vld [vmem:[%s8465_s1 + $0x46c] sm:$0xf] }
 0x128   :  { %2337 = vmatpush.bf16.msrb.mxu3 %v4502_v7  ;;  %2364 = vmatpush.bf16.msrb.mxu2 %v3850_v40  ;;  %v5236_v7 = vld [vmem:[%s8465_s1 + $0x12c] sm:$0xf]  ;;  %v2112_v0 = vpop.f32.mrf.mxu1  ;;  %v4455_v38 = vld [vmem:[%s8465_s1 + $0x558] sm:$0xf0] }
 0x129   :  { %4557 = vmatmul.msk.bf16.vlgmr.msra.gmra.mxu0 %vm252_vm8, %v6647_v51  ;;  %v3930_v40 = vor.u32 %v5236_v7, %v3927_v41  ;;  %v5344_v7 = vld [vmem:[%s8465_s1 + $0x48c] sm:$0xf]  ;;  %v4234_v0 = vor.u32 %v5312_v49, %v4231_v53  ;;  %v4039_v3 = vld [vmem:[%s8465_s1 + $0x218] sm:$0xf0] }
 0x12a   :  { %2377 = vmatpush.bf16.msrb.mxu0 %v3978_v17  ;;  %v5276_v41 = vld [vmem:[%s8465_s1 + $0x26c] sm:$0xf] }
 0x12b   :  { %2326 = vmatpush.bf16.msra.mxu1 %v4342_v12  ;;  %v3786_v12 = vor.u32 %v5200_v22, %v3783_v24  ;;  %v5376_v22 = vld [vmem:[%s8465_s1 + $0x58c] sm:$0xf]  ;;  %v4090_v26 = vor.u32 %v5276_v41, %v4087_v14  ;;  %v4673_v41 = vld [vmem:[%s8468_s3 + $0xe0] sm:$0xf]  ;;  %v5425_v14 = vld [vmem:[%s8468_s3 + $0xec] sm:$0xf0] }
 0x12c   :  { %2338 = vmatpush.bf16.msrb.mxu3 %v4486_v28  ;;  %2365 = vmatpush.bf16.msrb.mxu2 %v3834_v30  ;;  %v5356_v28 = vld [vmem:[%s8465_s1 + $0x4ec] sm:$0xf]  ;;  %v2138_v9 = vpop.f32.mrf.mxu3 }
 0x12d   :  { %v4410_v17 = vor.u32 %v5356_v28, %v4407_v33  ;;  %v5320_v30 = vld [vmem:[%s8465_s1 + $0x3cc] sm:$0xf]  ;;  %v4343_v28 = vld [vmem:[%s8465_s1 + $0x478] sm:$0xf0] }
 0x12e   :  { %2378 = vmatpush.bf16.msrb.mxu0 %v3962_v44  ;;  %v4266_v44 = vor.u32 %v5320_v30, %v4263_v37  ;;  %v5308_v24 = vld [vmem:[%s8465_s1 + $0x36c] sm:$0xf]  ;;  %v4346_v18 = vor.u32 %v5340_v27, %v4343_v28  ;;  %v4674_v28 = vor.u32 %v5425_v14, %v4673_v41  ;;  %v5397_v41 = vld [vmem:[%s8468_s3 + $0xc] sm:$0xf0] }
 0x12f   :  { %2327 = vmatpush.bf16.msra.mxu1 %v4326_v36  ;;  %v4391_v36 = vld [vmem:[%s8465_s1 + $0x4d8] sm:$0xf0]  ;;  %v5272_v33 = vld [vmem:[%s8465_s1 + $0x24c] sm:$0xf] }
 0x130   :  { %2339 = vmatpush.bf16.msrb.mxu3 %v4470_v1  ;;  %2366 = vmatpush.bf16.msrb.mxu2 %v3818_v54  ;;  %v5388_v1 = vld [vmem:[%s8465_s1 + $0x5ec] sm:$0xf]  ;;  %v4519_v54 = vld [vmem:[%s8465_s1 + $0x5d8] sm:$0xf0] }
 0x131   :  { %v4538_v43 = vor.u32 %v5388_v1, %v4535_v19  ;;  %v4522_v15 = vor.u32 %v5384_v23, %v4519_v54  ;;  %v4327_v1 = vld [vmem:[%s8465_s1 + $0x458] sm:$0xf0]  ;;  %v5268_v30 = vld [vmem:[%s8465_s1 + $0x22c] sm:$0xf] }
 0x132   :  { %2379 = vmatpush.bf16.msrb.mxu0 %v3946_v42  ;;  %v5380_v42 = vld [vmem:[%s8465_s1 + $0x5ac] sm:$0xf]  ;;  %v4311_v23 = vld [vmem:[%s8465_s1 + $0x438] sm:$0xf0] }
 0x133   :  { %2328 = vmatpush.bf16.msra.mxu1 %v4310_v8  ;;  %v5348_v8 = vld [vmem:[%s8465_s1 + $0x4ac] sm:$0xf] }
 0x134   :  { %2340 = vmatpush.bf16.msrb.mxu3 %v4454_v35  ;;  %2367 = vmatpush.bf16.msrb.mxu2 %v3802_v58  ;;  %v4394_v35 = vor.u32 %v5352_v10, %v4391_v36  ;;  %v4378_v57 = vor.u32 %v5348_v8, %v4375_v13  ;;  %v4359_v58 = vld [vmem:[%s8465_s1 + $0x498] sm:$0xf0]  ;;  %v5264_v54 = vld [vmem:[%s8465_s1 + $0x20c] sm:$0xf] }
 0x135   :  { %v5392_v8 = vld [vmem:[%s8465_s1 + $0x60c] sm:$0xf]  ;;  %v4551_v13 = vld [vmem:[%s8465_s1 + $0x618] sm:$0xf0] }
 0x136   :  { %2380 = vmatpush.bf16.msrb.mxu0 %v3930_v40  ;;  %v4071_v40 = vld [vmem:[%s8465_s1 + $0x258] sm:$0xf0]  ;;  %v7438_v19 = vpop.f32.mrf.mxu2  ;;  %v5296_v49 = vld [vmem:[%s8465_s1 + $0x30c] sm:$0xf] }
 0x137   :  { %2329 = vmatpush.bf16.msra.mxu1 %v4294_v20  ;;  %v4362_v20 = vor.u32 %v5344_v7, %v4359_v58  ;;  %v4074_v9 = vor.u32 %v5272_v33, %v4071_v40  ;;  %v5328_v53 = vld [vmem:[%s8465_s1 + $0x40c] sm:$0xf]  ;;  %v4295_v58 = vld [vmem:[%s8465_s1 + $0x418] sm:$0xf0]  ;;  %v4657_v33 = vld [vmem:[%s8468_s3 + $0xc0] sm:$0xf] }
 0x138   :  { %2341 = vmatpush.bf16.msrb.mxu3 %v4438_v48  ;;  %2368 = vmatpush.bf16.msrb.mxu2 %v3786_v12  ;;  %v4503_v48 = vld [vmem:[%s8465_s1 + $0x5b8] sm:$0xf0]  ;;  %v5372_v12 = vld [vmem:[%s8465_s1 + $0x56c] sm:$0xf]  ;;  %v4298_v27 = vor.u32 %v5328_v53, %v4295_v58  ;;  %v5421_v40 = vld [vmem:[%s8468_s3 + $0xcc] sm:$0xf0] }
 0x139   :  { %v4506_v4 = vor.u32 %v5380_v42, %v4503_v48  ;;  %v4474_v37 = vor.u32 %v5372_v12, %v4471_v60  ;;  %v7489_v42 = vpop.f32.mrf.mxu3  ;;  %v4042_v48 = vor.u32 %v5264_v54, %v4039_v3  ;;  %v4785_v12 = vld [vmem:[%s8468_s3 + $0x1c0] sm:$0xf]  ;;  %v5453_v60 = vld [vmem:[%s8468_s3 + $0x1cc] sm:$0xf0] }
 0x13a   :  { %2330 = vmatmul.bf16.vlgmr.msra.gmra.mxu1 %v6689_v6  ;;  %2381 = vmatpush.bf16.msrb.mxu0 %v3914_v46  ;;  %v5368_v46 = vld [vmem:[%s8465_s1 + $0x54c] sm:$0xf]  ;;  %v4705_v53 = vld [vmem:[%s8468_s3 + $0x120] sm:$0xf] }
 0x13b   :  { %2387 = vmatpush.bf16.msrb.mxu1 %v4154_v5  ;;  %2369 = vmatmul.bf16.vlgmr.msrb.gmra.mxu2 %v6164_v2  ;;  %v4106_v2 = vor.u32 %v5280_v31, %v4103_v45  ;;  %v4215_v5 = vld [vmem:[%s8465_s1 + $0x378] sm:$0xf0]  ;;  %v4458_v56 = vor.u32 %v5368_v46, %v4455_v38  ;;  %v7481_v31 = vld [vmem:[%s8467_s2] sm:$0xf] }
 0x13c   :  { %2342 = vmatpush.bf16.msrb.mxu3 %v4422_v34  ;;  %2413 = vmatpush.bf16.msra.mxu2 %v4410_v17  ;;  %v4218_v21 = vor.u32 %v5308_v24, %v4215_v5  ;;  %v5336_v17 = vld [vmem:[%s8465_s1 + $0x44c] sm:$0xf]  ;;  %v4423_v5 = vld [vmem:[%s8465_s1 + $0x518] sm:$0xf0]  ;;  %v4561_v58 = vld [vmem:[%s8468_s3] sm:$0xf] }
 0x13d   :  { %2382 = vmatmul.bf16.vlgmr.msrb.gmra.mxu0 %v6470_v39  ;;  %v4487_v39 = vld [vmem:[%s8465_s1 + $0x598] sm:$0xf0]  ;;  %v4330_v36 = vor.u32 %v5336_v17, %v4327_v1  ;;  %v4641_v1 = vld [vmem:[%s8468_s3 + $0xa0] sm:$0xf] }
 0x13e   :  { %2426 = vmatpush.bf16.msra.mxu0 %v4538_v43  ;;  %v4490_v34 = vor.u32 %v5376_v22, %v4487_v39  ;;  %v2177_v7 = vpop.f32.mrf.mxu2  ;;  %v5457_v22 = vld [vmem:[%s8468_s3 + $0x1ec] sm:$0xf0]  ;;  %v916_v39 = vperm.slane %v7481_v31, 0 }
 0x13f   :  { %2388 = vmatpush.bf16.msrb.mxu1 %v4138_v47  ;;  %2343 = vmatmul.bf16.vlgmr.msrb.gmra.mxu3 %v6790_v50  ;;  %v4055_v47 = vld [vmem:[%s8465_s1 + $0x238] sm:$0xf0] }
 0x140   :  { %2400 = vmatpush.bf16.msra.mxu3 %v4282_v16  ;;  %2414 = vmatpush.bf16.msra.mxu2 %v4394_v35  ;;  %v4199_v16 = vld [vmem:[%s8465_s1 + $0x358] sm:$0xf0]  ;;  %v4058_v43 = vor.u32 %v5268_v30, %v4055_v47  ;;  %v5332_v35 = vld [vmem:[%s8465_s1 + $0x42c] sm:$0xf]  ;;  %v5417_v30 = vld [vmem:[%s8468_s3 + $0xac] sm:$0xf0]  ;;  %v4786_v47 = vor.u32 %v5453_v60, %v4785_v12 }
 0x141   :  { %v4202_v10 = vor.u32 %v5304_v25, %v4199_v16  ;;  %v2098_v25 = vadd.f32 %v7214_v32, %v916_v39  ;;  %v4658_v16 = vor.u32 %v5421_v40, %v4657_v33  ;;  %v5449_v32 = vld [vmem:[%s8468_s3 + $0x1ac] sm:$0xf0]  ;;  %v4659_v12 = vld [vmem:[%s8468_s3 + $0xd0] sm:$0xf0] }
 0x142   :  { %2427 = vmatpush.bf16.msra.mxu0 %v4522_v15  ;;  %v4314_v15 = vor.u32 %v5332_v35, %v4311_v23  ;;  %v4737_v23 = vld [vmem:[%s8468_s3 + $0x160] sm:$0xf]  ;;  %v5429_v39 = vld [vmem:[%s8468_s3 + $0x10c] sm:$0xf0] }
 0x143   :  { %2389 = vmatpush.bf16.msrb.mxu1 %v4122_v55 }
 0x144   :  { %2401 = vmatpush.bf16.msra.mxu3 %v4266_v44  ;;  %2415 = vmatpush.bf16.msra.mxu2 %v4378_v57  ;;  %v4183_v44 = vld [vmem:[%s8465_s1 + $0x338] sm:$0xf0] }
 0x145   :  { %v4186_v45 = vor.u32 %v5300_v29, %v4183_v44  ;;  %v4439_v57 = vld [vmem:[%s8465_s1 + $0x538] sm:$0xf0]  ;;  %v5409_v44 = vld [vmem:[%s8468_s3 + $0x6c] sm:$0xf0] }
 0x146   :  { %2428 = vmatpush.bf16.msra.mxu0 %v4506_v4  ;;  %v4554_v4 = vor.u32 %v5392_v8, %v4551_v13  ;;  %v4593_v8 = vld [vmem:[%s8468_s3 + $0x40] sm:$0xf]  ;;  %v5405_v13 = vld [vmem:[%s8468_s3 + $0x4c] sm:$0xf0] }
 0x147   :  { %2390 = vmatpush.bf16.msrb.mxu1 %v4106_v2  ;;  %v4167_v2 = vld [vmem:[%s8465_s1 + $0x318] sm:$0xf0] }
 0x148   :  { %2402 = vmatpush.bf16.msra.mxu3 %v4250_v63  ;;  %2416 = vmatpush.bf16.msra.mxu2 %v4362_v20  ;;  %v5364_v63 = vld [vmem:[%s8465_s1 + $0x52c] sm:$0xf]  ;;  %v4801_v20 = vld [vmem:[%s8468_s3 + $0x1e0] sm:$0xf]  ;;  %v4170_v24 = vor.u32 %v5296_v49, %v4167_v2  ;;  %v5401_v49 = vld [vmem:[%s8468_s3 + $0x2c] sm:$0xf0] }
 0x149   :  { %v7470_v55 = vpop.f32.mrf.mxu0 }
 0x14a   :  { %2429 = vmatpush.bf16.msra.mxu0 %v4490_v34  ;;  %v4802_v34 = vor.u32 %v5457_v22, %v4801_v20  ;;  %v7536_v17 = vpop.f32.mrf.mxu2  ;;  %v4689_v22 = vld [vmem:[%s8468_s3 + $0x100] sm:$0xf] }
 0x14b   :  { %2391 = vmatpush.bf16.msrb.mxu1 %v4090_v26  ;;  %v5360_v26 = vld [vmem:[%s8465_s1 + $0x50c] sm:$0xf] }
 0x14c   :  { %2403 = vmatpush.bf16.msra.mxu3 %v4234_v0  ;;  %2417 = vmatpush.bf16.msra.mxu2 %v4346_v18  ;;  %v4442_v0 = vor.u32 %v5364_v63, %v4439_v57  ;;  %v4426_v18 = vor.u32 %v5360_v26, %v4423_v5  ;;  %v4594_v63 = vor.u32 %v5405_v13, %v4593_v8  ;;  %v5455_v26 = vld [vmem:[%s8468_s3 + $0x1e4] sm:$0xf]  ;;  %v4803_v5 = vld [vmem:[%s8468_s3 + $0x1f0] sm:$0xf0] }
 0x14d   :  { %v4806_v60 = vor.u32 %v5455_v26, %v4803_v5  ;;  %v5399_v26 = vld [vmem:[%s8468_s3 + $0x24] sm:$0xf]  ;;  %v4579_v5 = vld [vmem:[%s8468_s3 + $0x30] sm:$0xf0] }
 0x14e   :  { %2430 = vmatpush.bf16.msra.mxu0 %v4474_v37  ;;  %v2111_v37 = vadd.f32 %v7230_v59, %v2098_v25  ;;  %v4753_v59 = vld [vmem:[%s8468_s3 + $0x180] sm:$0xf]  ;;  %v5451_v25 = vld [vmem:[%s8468_s3 + $0x1c4] sm:$0xf] }
 0x14f   :  { %2392 = vmatpush.bf16.msrb.mxu1 %v4074_v9  ;;  %v2190_v9 = vpop.f32.mrf.mxu3 }
 0x150   :  { %2404 = vmatpush.bf16.msra.mxu3 %v4218_v21  ;;  %2418 = vmatpush.bf16.msra.mxu2 %v4330_v36  ;;  %v5413_v36 = vld [vmem:[%s8468_s3 + $0x8c] sm:$0xf0]  ;;  %v4787_v9 = vld [vmem:[%s8468_s3 + $0x1d0] sm:$0xf0] }
 0x151   :  { %v2151_v21 = vpop.f32.mrf.mxu0 }
 0x152   :  { %2431 = vmatpush.bf16.msra.mxu0 %v4458_v56  ;;  %v2203_v29 = vpop.f32.mrf.mxu2  ;;  %v4690_v21 = vor.u32 %v5429_v39, %v4689_v22 }
 0x153   :  { %2393 = vmatpush.bf16.msrb.mxu1 %v4058_v43  ;;  %v4609_v43 = vld [vmem:[%s8468_s3 + $0x60] sm:$0xf]  ;;  %v4627_v29 = vld [vmem:[%s8468_s3 + $0x90] sm:$0xf0] }
 0x154   :  { %2405 = vmatpush.bf16.msra.mxu3 %v4202_v10  ;;  %2419 = vmatpush.bf16.msra.mxu2 %v4314_v15  ;;  %v4642_v10 = vor.u32 %v5417_v30, %v4641_v1  ;;  %v4610_v3 = vor.u32 %v5409_v44, %v4609_v43  ;;  %v4721_v15 = vld [vmem:[%s8468_s3 + $0x140] sm:$0xf]  ;;  %v5415_v30 = vld [vmem:[%s8468_s3 + $0xa4] sm:$0xf] }
 0x155   :  { %v5443_v44 = vld [vmem:[%s8468_s3 + $0x184] sm:$0xf] }
 0x156   :  { %2432 = vmatpush.bf16.msra.mxu0 %v4442_v0  ;;  %v4675_v0 = vld [vmem:[%s8468_s3 + $0xf0] sm:$0xf0] }
 0x157   :  { %2394 = vmatpush.bf16.msrb.mxu1 %v4042_v48  ;;  %v4577_v48 = vld [vmem:[%s8468_s3 + $0x20] sm:$0xf] }
 0x158   :  { %2406 = vmatpush.bf16.msra.mxu3 %v4186_v45  ;;  %2420 = vmatpush.bf16.msra.mxu2 %v4298_v27  ;;  %v4578_v7 = vor.u32 %v5401_v49, %v4577_v48  ;;  %v5473_v48 = vld [vmem:[%s8468_s3 + $0x26c] sm:$0xf0] }
 0x15a   :  { %2395 = vmatmul.bf16.vlgmr.msrb.gmra.mxu1 %v8482_v61  ;;  %2433 = vmatpush.bf16.msra.mxu0 %v4426_v18  ;;  %v4769_v61 = vld [vmem:[%s8468_s3 + $0x1a0] sm:$0xf]  ;;  %v5419_v18 = vld [vmem:[%s8468_s3 + $0xc4] sm:$0xf] }
 0x15b   :  { %2446 = vmatpush.bf16.msra.mxu1 %v4554_v4  ;;  %2421 = vmatmul.bf16.vlgmr.msra.gmra.mxu2 %v6689_v6  ;;  %v4770_v46 = vor.u32 %v5449_v32, %v4769_v61  ;;  %v5445_v6 = vld [vmem:[%s8468_s3 + $0x18c] sm:$0xf0]  ;;  %v5423_v4 = vld [vmem:[%s8468_s3 + $0xe4] sm:$0xf]  ;;  %v4662_v1 = vor.u32 %v5419_v18, %v4659_v12  ;;  %v4790_v61 = vor.u32 %v5451_v25, %v4787_v9  ;;  %v4913_v32 = vld [vmem:[%s8468_s3 + $0x2c0] sm:$0xf] }
 0x15c   :  { %2407 = vmatpush.bf16.msra.mxu3 %v4170_v24  ;;  %v4754_v35 = vor.u32 %v5445_v6, %v4753_v59  ;;  %v5489_v24 = vld [vmem:[%s8468_s3 + $0x2ec] sm:$0xf0]  ;;  %v4582_v18 = vor.u32 %v5399_v26, %v4579_v5  ;;  %v5395_v12 = vld [vmem:[%s8468_s3 + $0x4] sm:$0xf]  ;;  %v4883_v26 = vld [vmem:[%s8468_s3 + $0x290] sm:$0xf0] }
 0x15d   :  { %2434 = vmatmul.bf16.vlgmr.msra.gmra.mxu0 %v6790_v50  ;;  %v2124_v50 = vadd.f32 %v7216_v11, %v2111_v37  ;;  %v5441_v11 = vld [vmem:[%s8468_s3 + $0x16c] sm:$0xf0] }
 0x15e   :  { %v4738_v45 = vor.u32 %v5441_v11, %v4737_v23  ;;  %v5485_v37 = vld [vmem:[%s8468_s3 + $0x2cc] sm:$0xf0]  ;;  %v4755_v23 = vld [vmem:[%s8468_s3 + $0x190] sm:$0xf0]  ;;  %v4881_v11 = vld [vmem:[%s8468_s3 + $0x280] sm:$0xf] }
 0x15f   :  { %3251 = vmatpush.bf16.msrb.mxu1 %v4802_v34  ;;  %2408 = vmatmul.bf16.vlgmr.msra.gmra.mxu3 %v6213_v62  ;;  %v4625_v62 = vld [vmem:[%s8468_s3 + $0x80] sm:$0xf]  ;;  %v2137_v54 = vadd.f32 %v7256_v52, %v2124_v50  ;;  %v5437_v52 = vld [vmem:[%s8468_s3 + $0x14c] sm:$0xf0]  ;;  %v4678_v34 = vor.u32 %v5423_v4, %v4675_v0  ;;  %v4723_v4 = vld [vmem:[%s8468_s3 + $0x150] sm:$0xf0] }
 0x160   :  { %3238 = vmatpush.bf16.msrb.mxu3 %v4674_v28  ;;  %v4626_v38 = vor.u32 %v5413_v36, %v4625_v62  ;;  %v4722_v2 = vor.u32 %v5437_v52, %v4721_v15  ;;  %v4562_v28 = vor.u32 %v5397_v41, %v4561_v58  ;;  %v4771_v62 = vld [vmem:[%s8468_s3 + $0x1b0] sm:$0xf0]  ;;  %v4914_v36 = vor.u32 %v5485_v37, %v4913_v32  ;;  %v5481_v59 = vld [vmem:[%s8468_s3 + $0x2ac] sm:$0xf0]  ;;  %v5427_v37 = vld [vmem:[%s8468_s3 + $0x104] sm:$0xf] }
 0x161   :  { %v2150_v56 = vadd.f32 %v7470_v55, %v2137_v54  ;;  %v5477_v54 = vld [vmem:[%s8468_s3 + $0x28c] sm:$0xf0]  ;;  %v4611_v15 = vld [vmem:[%s8468_s3 + $0x70] sm:$0xf0]  ;;  %v4758_v52 = vor.u32 %v5443_v44, %v4755_v23  ;;  %v4665_v44 = vld [vmem:[%s8468_s3 + $0xc8] sm:$0xf] }
 0x162   :  { %v4882_v8 = vor.u32 %v5477_v54, %v4881_v11  ;;  %v4595_v58 = vld [vmem:[%s8468_s3 + $0x50] sm:$0xf0]  ;;  %v5483_v11 = vld [vmem:[%s8468_s3 + $0x2c4] sm:$0xf] }
 0x163   :  { %3252 = vmatpush.bf16.msrb.mxu1 %v4786_v47  ;;  %v2162_v55 = vpop.f32.mrf.mxu1  ;;  %v4643_v47 = vld [vmem:[%s8468_s3 + $0xb0] sm:$0xf0] }
 0x164   :  { %3239 = vmatpush.bf16.msrb.mxu3 %v4658_v16  ;;  %v2163_v57 = vadd.f32 %v2162_v55, %v2150_v56  ;;  %v4646_v6 = vor.u32 %v5415_v30, %v4643_v47  ;;  %v4865_v55 = vld [vmem:[%s8468_s3 + $0x260] sm:$0xf]  ;;  %v5426_v30 = vld [vmem:[%s8468_s3 + $0xf4] sm:$0xf0]  ;;  %v4915_v54 = vld [vmem:[%s8468_s3 + $0x2d0] sm:$0xf0] }
 0x166   :  { %v2176_v14 = vadd.f32 %v7438_v19, %v2163_v57  ;;  %v4929_v19 = vld [vmem:[%s8468_s3 + $0x2e0] sm:$0xf]  ;;  %v4739_v57 = vld [vmem:[%s8468_s3 + $0x170] sm:$0xf0] }
 0x167   :  { %3253 = vmatpush.bf16.msrb.mxu1 %v4770_v46  ;;  %v4930_v27 = vor.u32 %v5489_v24, %v4929_v19  ;;  %v4897_v46 = vld [vmem:[%s8468_s3 + $0x2a0] sm:$0xf] }
 0x168   :  { %3240 = vmatpush.bf16.msrb.mxu3 %v4642_v10  ;;  %v2452_v40 = vmax.f32 %v2176_v14, 0.0  ;;  %v5447_v10 = vld [vmem:[%s8468_s3 + $0x1a4] sm:$0xf]  ;;  %v4898_v50 = vor.u32 %v5481_v59, %v4897_v46  ;;  %v4849_v14 = vld [vmem:[%s8468_s3 + $0x240] sm:$0xf] }
 0x169   :  { %3264 = vmatpush.bf16.msrb.mxu2 %v4930_v27  ;;  %v4774_v43 = vor.u32 %v5447_v10, %v4771_v62  ;;  %v4691_v10 = vld [vmem:[%s8468_s3 + $0x110] sm:$0xf0]  ;;  %v5461_v62 = vld [vmem:[%s8468_s3 + $0x20c] sm:$0xf0]  ;;  %v5487_v46 = vld [vmem:[%s8468_s3 + $0x2e4] sm:$0xf] }
 0x16a   :  { %4558 = vmatmul.msk.bf16.vlgmr.msra.gmra.mxu1 %vm252_vm8, %v6647_v51  ;;  %v5433_v51 = vld [vmem:[%s8468_s3 + $0x12c] sm:$0xf0]  ;;  %v7650_v16 = vpack.c.bf16 %v2452_v40, %v2452_v40  ;;  %v5431_v40 = vld [vmem:[%s8468_s3 + $0x124] sm:$0xf]  ;;  %v4931_v59 = vld [vmem:[%s8468_s3 + $0x2f0] sm:$0xf0] }
 0x16b   :  { %3254 = vmatpush.bf16.msrb.mxu1 %v4754_v35  ;;  %v4706_v20 = vor.u32 %v5433_v51, %v4705_v53  ;;  %v2164_v33 = vpop.f32.mrf.mxu1  ;;  %v4866_v53 = vor.u32 %v5473_v48, %v4865_v55  ;;  %v4934_v23 = vor.u32 %v5487_v46, %v4931_v59  ;;  %v5418_v55 = vld [vmem:[%s8468_s3 + $0xb4] sm:$0xf0]  ;;  %v4761_v46 = vld [vmem:[%s8468_s3 + $0x188] sm:$0xf] }
 0x16c   :  { %3241 = vmatpush.bf16.msrb.mxu3 %v4626_v38  ;;  %v5411_v38 = vld [vmem:[%s8468_s3 + $0x84] sm:$0xf]  ;;  %v4833_v33 = vld [vmem:[%s8468_s3 + $0x220] sm:$0xf]  ;;  %v5458_v48 = vld [vmem:[%s8468_s3 + $0x1f4] sm:$0xf0] }
 0x16d   :  { %3265 = vmatpush.bf16.msrb.mxu2 %v4914_v36  ;;  %v4630_v56 = vor.u32 %v5411_v38, %v4627_v29  ;;  %v5446_v59 = vld [vmem:[%s8468_s3 + $0x194] sm:$0xf0] }
 0x16f   :  { %3255 = vmatpush.bf16.msrb.mxu1 %v4738_v45  ;;  %v5407_v45 = vld [vmem:[%s8468_s3 + $0x64] sm:$0xf] }
 0x170   :  { %3242 = vmatpush.bf16.msrb.mxu3 %v4610_v3  ;;  %v917_v3 = vperm.slane %v7481_v31, 1 }
 0x171   :  { %3266 = vmatpush.bf16.msrb.mxu2 %v4898_v50 }
 0x172   :  { %v2189_v49 = vadd.f32 %v7489_v42, %v917_v3  ;;  %v5435_v42 = vld [vmem:[%s8468_s3 + $0x144] sm:$0xf]  ;;  %v5057_v3 = vld [vmem:[%s8468_s3 + $0x3e0] sm:$0xf] }
 0x173   :  { %3256 = vmatpush.bf16.msrb.mxu1 %v4722_v2  ;;  %v4614_v2 = vor.u32 %v5407_v45, %v4611_v15  ;;  %v4726_v27 = vor.u32 %v5435_v42, %v4723_v4  ;;  %v4633_v4 = vld [vmem:[%s8468_s3 + $0x88] sm:$0xf] }
 0x174   :  { %3243 = vmatpush.bf16.msrb.mxu3 %v4594_v63  ;;  %v5439_v63 = vld [vmem:[%s8468_s3 + $0x164] sm:$0xf]  ;;  %v2202_v39 = vadd.f32 %v7536_v17, %v2189_v49  ;;  %v4918_v49 = vor.u32 %v5483_v11, %v4915_v54  ;;  %v5442_v11 = vld [vmem:[%s8468_s3 + $0x174] sm:$0xf0] }
 0x175   :  { %3267 = vmatpush.bf16.msrb.mxu2 %v4882_v8  ;;  %v4742_v41 = vor.u32 %v5439_v63, %v4739_v57  ;;  %v4809_v57 = vld [vmem:[%s8468_s3 + $0x1e8] sm:$0xf] }
 0x176   :  { %v2214_v35 = vpop.f32.mrf.mxu0  ;;  %v4810_v42 = vor.u32 %v5458_v48, %v4809_v57  ;;  %v5398_v48 = vld [vmem:[%s8468_s3 + $0x14] sm:$0xf0] }
 0x177   :  { %3257 = vmatpush.bf16.msrb.mxu1 %v4706_v20  ;;  %v2227_v13 = vpop.f32.mrf.mxu1  ;;  %v5469_v20 = vld [vmem:[%s8468_s3 + $0x24c] sm:$0xf0]  ;;  %v2215_v17 = vadd.f32 %v2214_v35, %v2202_v39  ;;  %v5422_v35 = vld [vmem:[%s8468_s3 + $0xd4] sm:$0xf0] }
 0x178   :  { %3244 = vmatpush.bf16.msrb.mxu3 %v4578_v7  ;;  %v5403_v7 = vld [vmem:[%s8468_s3 + $0x44] sm:$0xf]  ;;  %v4850_v24 = vor.u32 %v5469_v20, %v4849_v14  ;;  %v4666_v15 = vor.u32 %v5422_v35, %v4665_v44  ;;  %v5414_v20 = vld [vmem:[%s8468_s3 + $0x94] sm:$0xf0]  ;;  %v4745_v35 = vld [vmem:[%s8468_s3 + $0x168] sm:$0xf] }
 0x179   :  { %v4598_v19 = vor.u32 %v5403_v7, %v4595_v58  ;;  %3268 = vmatpush.bf16.msrb.mxu2 %v4866_v53  ;;  %v2228_v32 = vadd.f32 %v2227_v13, %v2215_v17  ;;  %v5479_v53 = vld [vmem:[%s8468_s3 + $0x2a4] sm:$0xf]  ;;  %v5517_v7 = vld [vmem:[%s8468_s3 + $0x3cc] sm:$0xf0]  ;;  %v5454_v39 = vld [vmem:[%s8468_s3 + $0x1d4] sm:$0xf0]  ;;  %v4746_v57 = vor.u32 %v5442_v11, %v4745_v35 }
 0x17a   :  { %v5025_v17 = vld [vmem:[%s8468_s3 + $0x3a0] sm:$0xf]  ;;  %v5402_v44 = vld [vmem:[%s8468_s3 + $0x34] sm:$0xf0]  ;;  %v5043_v35 = vld [vmem:[%s8468_s3 + $0x3d0] sm:$0xf0] }
 0x17b   :  { %3258 = vmatpush.bf16.msrb.mxu1 %v4690_v21  ;;  %v5465_v21 = vld [vmem:[%s8468_s3 + $0x22c] sm:$0xf0] }
 0x17c   :  { %3245 = vmatpush.bf16.msrb.mxu3 %v4562_v28  ;;  %v4834_v25 = vor.u32 %v5465_v21, %v4833_v33  ;;  %v4617_v33 = vld [vmem:[%s8468_s3 + $0x68] sm:$0xf]  ;;  %v5410_v21 = vld [vmem:[%s8468_s3 + $0x74] sm:$0xf0] }
 0x17d   :  { %3269 = vmatpush.bf16.msrb.mxu2 %v4850_v24  ;;  %v5475_v24 = vld [vmem:[%s8468_s3 + $0x284] sm:$0xf] }
 0x17e   :  { %v2240_v51 = vpop.f32.mrf.mxu3  ;;  %v2216_v0 = vpop.f32.mrf.mxu0 }
 0x17f   :  { %3303 = vmatpush.bf16.msra.mxu1 %v4806_v60  ;;  %3246 = vmatmul.bf16.vlgmr.msrb.gmra.mxu3 %v7650_v16  ;;  %v2229_v28 = vpop.f32.mrf.mxu1  ;;  %v4563_v60 = vld [vmem:[%s8468_s3 + $0x10] sm:$0xf0] }
 0x180   :  { %3290 = vmatpush.bf16.msra.mxu3 %v4678_v34  ;;  %v2253_v22 = vpop.f32.mrf.mxu2  ;;  %v4707_v34 = vld [vmem:[%s8468_s3 + $0x130] sm:$0xf0]  ;;  %v4566_v50 = vor.u32 %v5395_v12, %v4563_v60  ;;  %v5450_v12 = vld [vmem:[%s8468_s3 + $0x1b4] sm:$0xf0]  ;;  %v4886_v60 = vor.u32 %v5475_v24, %v4883_v26  ;;  %v5459_v24 = vld [vmem:[%s8468_s3 + $0x204] sm:$0xf] }
 0x181   :  { %v4710_v47 = vor.u32 %v5431_v40, %v4707_v34  ;;  %3270 = vmatpush.bf16.msrb.mxu2 %v4834_v25  ;;  %v5513_v40 = vld [vmem:[%s8468_s3 + $0x3ac] sm:$0xf0]  ;;  %v4819_v26 = vld [vmem:[%s8468_s3 + $0x210] sm:$0xf0] }
 0x182   :  { %v5026_v25 = vor.u32 %v5513_v40, %v5025_v17  ;;  %v4961_v17 = vld [vmem:[%s8468_s3 + $0x320] sm:$0xf]  ;;  %v5497_v40 = vld [vmem:[%s8468_s3 + $0x32c] sm:$0xf0] }
 0x183   :  { %3304 = vmatpush.bf16.msra.mxu1 %v4790_v61  ;;  %v4817_v61 = vld [vmem:[%s8468_s3 + $0x200] sm:$0xf] }
 0x184   :  { %3291 = vmatpush.bf16.msra.mxu3 %v4662_v1  ;;  %v4681_v1 = vld [vmem:[%s8468_s3 + $0xe8] sm:$0xf]  ;;  %v4818_v38 = vor.u32 %v5461_v62, %v4817_v61  ;;  %v5509_v61 = vld [vmem:[%s8468_s3 + $0x38c] sm:$0xf0] }
 0x185   :  { %v4682_v29 = vor.u32 %v5426_v30, %v4681_v1  ;;  %v4867_v1 = vld [vmem:[%s8468_s3 + $0x270] sm:$0xf0]  ;;  %v5009_v30 = vld [vmem:[%s8468_s3 + $0x380] sm:$0xf] }
 0x186   :  { %v2242_v9 = vpop.f32.mrf.mxu3  ;;  %3271 = vmatpush.bf16.msrb.mxu2 %v4818_v38  ;;  %v5010_v62 = vor.u32 %v5509_v61, %v5009_v30  ;;  %v4697_v30 = vld [vmem:[%s8468_s3 + $0x108] sm:$0xf]  ;;  %v5430_v61 = vld [vmem:[%s8468_s3 + $0x114] sm:$0xf0] }
 0x187   :  { %3305 = vmatpush.bf16.msra.mxu1 %v4774_v43  ;;  %v4694_v43 = vor.u32 %v5427_v37, %v4691_v10  ;;  %v5471_v9 = vld [vmem:[%s8468_s3 + $0x264] sm:$0xf]  ;;  %v4601_v10 = vld [vmem:[%s8468_s3 + $0x48] sm:$0xf] }
 0x188   :  { %3292 = vmatpush.bf16.msra.mxu3 %v4646_v6  ;;  %v2255_v36 = vpop.f32.mrf.mxu2  ;;  %v2241_v6 = vadd.f32 %v2240_v51, %v2228_v32  ;;  %v4899_v51 = vld [vmem:[%s8468_s3 + $0x2b0] sm:$0xf0]  ;;  %v4618_v32 = vor.u32 %v5410_v21, %v4617_v33  ;;  %v4822_v33 = vor.u32 %v5459_v24, %v4819_v26  ;;  %v918_v21 = vperm.slane %v7481_v31, 2 }
 0x189   :  { %v5406_v36 = vld [vmem:[%s8468_s3 + $0x54] sm:$0xf0] }
 0x18a   :  { %v2254_v8 = vadd.f32 %v2253_v22, %v2241_v6  ;;  %3316 = vmatpush.bf16.msra.mxu2 %v4934_v23  ;;  %v4793_v22 = vld [vmem:[%s8468_s3 + $0x1c8] sm:$0xf]  ;;  %v4870_v6 = vor.u32 %v5471_v9, %v4867_v1  ;;  %v4602_v38 = vor.u32 %v5406_v36, %v4601_v10  ;;  %v4945_v9 = vld [vmem:[%s8468_s3 + $0x300] sm:$0xf]  ;;  %v5416_v10 = vld [vmem:[%s8468_s3 + $0xac] sm:$0xf] }
 0x18b   :  { %3306 = vmatpush.bf16.msra.mxu1 %v4758_v52  ;;  %v4649_v52 = vld [vmem:[%s8468_s3 + $0xa8] sm:$0xf]  ;;  %v4794_v28 = vor.u32 %v5454_v39, %v4793_v22  ;;  %v5059_v36 = vld [vmem:[%s8468_s3 + $0x3f0] sm:$0xf0] }
 0x18c   :  { %3293 = vmatpush.bf16.msra.mxu3 %v4630_v56  ;;  %v5521_v56 = vld [vmem:[%s8468_s3 + $0x3ec] sm:$0xf0]  ;;  %v4650_v14 = vor.u32 %v5418_v55, %v4649_v52  ;;  %v4569_v52 = vld [vmem:[%s8468_s3 + $0x8] sm:$0xf] }
 0x18d   :  { %v5058_v13 = vor.u32 %v5521_v56, %v5057_v3  ;;  %v5467_v3 = vld [vmem:[%s8468_s3 + $0x244] sm:$0xf]  ;;  %v4851_v56 = vld [vmem:[%s8468_s3 + $0x250] sm:$0xf0]  ;;  %v4713_v39 = vld [vmem:[%s8468_s3 + $0x128] sm:$0xf] }
 0x18e   :  { %v2266_v45 = vpop.f32.mrf.mxu3  ;;  %3317 = vmatpush.bf16.msra.mxu2 %v4918_v49  ;;  %v4729_v49 = vld [vmem:[%s8468_s3 + $0x148] sm:$0xf] }
 0x18f   :  { %3307 = vmatpush.bf16.msra.mxu1 %v4742_v41  ;;  %v2267_v63 = vadd.f32 %v2266_v45, %v2254_v8  ;;  %3277 = vmatpush.bf16.msrb.mxu0 %v5058_v13  ;;  %v4854_v8 = vor.u32 %v5467_v3, %v4851_v56  ;;  %v4993_v13 = vld [vmem:[%s8468_s3 + $0x360] sm:$0xf]  ;;  %v5505_v45 = vld [vmem:[%s8468_s3 + $0x36c] sm:$0xf0]  ;;  %v5412_v3 = vld [vmem:[%s8468_s3 + $0x8c] sm:$0xf] }
 0x190   :  { %3294 = vmatpush.bf16.msra.mxu3 %v4614_v2  ;;  %v5041_v2 = vld [vmem:[%s8468_s3 + $0x3c0] sm:$0xf]  ;;  %v4994_v55 = vor.u32 %v5505_v45, %v4993_v13  ;;  %v5452_v13 = vld [vmem:[%s8468_s3 + $0x1cc] sm:$0xf]  ;;  %v4795_v45 = vld [vmem:[%s8468_s3 + $0x1d8] sm:$0xf0] }
 0x191   :  { %v2453_v58 = vmax.f32 %v2267_v63, 0.0  ;;  %v5042_v41 = vor.u32 %v5517_v7, %v5041_v2  ;;  %v5438_v2 = vld [vmem:[%s8468_s3 + $0x154] sm:$0xf0]  ;;  %v4835_v7 = vld [vmem:[%s8468_s3 + $0x230] sm:$0xf0] }
 0x192   :  { %v4730_v22 = vor.u32 %v5438_v2, %v4729_v49  ;;  %v5408_v49 = vld [vmem:[%s8468_s3 + $0x6c] sm:$0xf] }
 0x193   :  { %3308 = vmatpush.bf16.msra.mxu1 %v4726_v27  ;;  %v7828_v0 = vpack.c.bf16 %v2453_v58, %v2453_v58  ;;  %3278 = vmatpush.bf16.msrb.mxu0 %v5042_v41  ;;  %v4634_v27 = vor.u32 %v5414_v20, %v4633_v4  ;;  %v4683_v58 = vld [vmem:[%s8468_s3 + $0xf8] sm:$0xf0]  ;;  %v4570_v20 = vor.u32 %v5398_v48, %v4569_v52 }
 0x194   :  { %3295 = vmatpush.bf16.msra.mxu3 %v4598_v19  ;;  %v4902_v19 = vor.u32 %v5479_v53, %v4899_v51  ;;  %v5424_v53 = vld [vmem:[%s8468_s3 + $0xec] sm:$0xf]  ;;  %v5463_v51 = vld [vmem:[%s8468_s3 + $0x224] sm:$0xf]  ;;  %v4798_v48 = vor.u32 %v5452_v13, %v4795_v45  ;;  %v4715_v45 = vld [vmem:[%s8468_s3 + $0x138] sm:$0xf0] }
 0x195   :  { %3259 = vmatmul.bf16.vlgmr.msrb.gmra.mxu1 %v7828_v0  ;;  %v4838_v41 = vor.u32 %v5463_v51, %v4835_v7  ;;  %v5448_v51 = vld [vmem:[%s8468_s3 + $0x1ac] sm:$0xf]  ;;  %v4779_v7 = vld [vmem:[%s8468_s3 + $0x1b8] sm:$0xf0] }
 0x196   :  { %v2268_v5 = vpop.f32.mrf.mxu3  ;;  %3318 = vmatpush.bf16.msra.mxu2 %v4902_v19  ;;  %v5432_v13 = vld [vmem:[%s8468_s3 + $0x12c] sm:$0xf] }
 0x197   :  { %3309 = vmatpush.bf16.msra.mxu1 %v4710_v47  ;;  %v7855_v34 = vpop.f32.mrf.mxu1  ;;  %v7875_v47 = vpop.f32.mrf.mxu0  ;;  %3279 = vmatpush.bf16.msrb.mxu0 %v5026_v25  ;;  %v4686_v5 = vor.u32 %v5424_v53, %v4683_v58  ;;  %v4619_v53 = vld [vmem:[%s8468_s3 + $0x78] sm:$0xf0] }
 0x198   :  { %3296 = vmatpush.bf16.msra.mxu3 %v4582_v18  ;;  %v4777_v18 = vld [vmem:[%s8468_s3 + $0x1a8] sm:$0xf] }
 0x199   :  { %v4778_v37 = vor.u32 %v5450_v12, %v4777_v18  ;;  %v5420_v18 = vld [vmem:[%s8468_s3 + $0xcc] sm:$0xf]  ;;  %v4667_v12 = vld [vmem:[%s8468_s3 + $0xd8] sm:$0xf0] }
 0x19a   :  { %3319 = vmatpush.bf16.msra.mxu2 %v4886_v60  ;;  %v4962_v60 = vor.u32 %v5497_v40, %v4961_v17  ;;  %v5400_v17 = vld [vmem:[%s8468_s3 + $0x2c] sm:$0xf]  ;;  %v4587_v40 = vld [vmem:[%s8468_s3 + $0x38] sm:$0xf0] }
 0x19b   :  { %3310 = vmatpush.bf16.msra.mxu1 %v4694_v43  ;;  %3280 = vmatpush.bf16.msrb.mxu0 %v5010_v62  ;;  %v4585_v43 = vld [vmem:[%s8468_s3 + $0x28] sm:$0xf]  ;;  %v5519_v62 = vld [vmem:[%s8468_s3 + $0x3e4] sm:$0xf] }
 0x19c   :  { %3297 = vmatpush.bf16.msra.mxu3 %v4566_v50  ;;  %v4586_v63 = vor.u32 %v5402_v44, %v4585_v43  ;;  %v5062_v43 = vor.u32 %v5519_v62, %v5059_v36  ;;  %v4698_v44 = vor.u32 %v5430_v61, %v4697_v30  ;;  %v4995_v30 = vld [vmem:[%s8468_s3 + $0x370] sm:$0xf0]  ;;  %v4590_v36 = vor.u32 %v5400_v17, %v4587_v40 }
 0x19d   :  { %v4979_v62 = vld [vmem:[%s8468_s3 + $0x350] sm:$0xf0] }
 0x19e   :  { %v7903_v23 = vpop.f32.mrf.mxu2  ;;  %3320 = vmatpush.bf16.msra.mxu2 %v4870_v6  ;;  %v5456_v6 = vld [vmem:[%s8468_s3 + $0x1ec] sm:$0xf] }
 0x19f   :  { %3298 = vmatmul.bf16.vlgmr.msra.gmra.mxu3 %v7650_v16  ;;  %3355 = vmatpush.bf16.msrb.mxu1 %v4810_v42  ;;  %v2281_v54 = vpop.f32.mrf.mxu1  ;;  %v5501_v42 = vld [vmem:[%s8468_s3 + $0x34c] sm:$0xf0] }
 0x1a0   :  { %3342 = vmatpush.bf16.msrb.mxu3 %v4682_v29  ;;  %v4762_v29 = vor.u32 %v5446_v59, %v4761_v46  ;;  %3281 = vmatpush.bf16.msrb.mxu0 %v4994_v55  ;;  %v2280_v46 = vadd.f32 %v7855_v34, %v918_v21  ;;  %v4651_v59 = vld [vmem:[%s8468_s3 + $0xb8] sm:$0xf0]  ;;  %v5515_v34 = vld [vmem:[%s8468_s3 + $0x3c4] sm:$0xf]  ;;  %v5027_v55 = vld [vmem:[%s8468_s3 + $0x3b0] sm:$0xf0] }
 0x1a1   :  { %v4654_v11 = vor.u32 %v5416_v10, %v4651_v59  ;;  %v5046_v52 = vor.u32 %v5515_v34, %v5043_v35  ;;  %v5499_v10 = vld [vmem:[%s8468_s3 + $0x344] sm:$0xf]  ;;  %v4571_v59 = vld [vmem:[%s8468_s3 + $0x18] sm:$0xf0] }
 0x1a2   :  { %v7892_v50 = vpop.f32.mrf.mxu3  ;;  %3321 = vmatpush.bf16.msra.mxu2 %v4854_v8  ;;  %v4635_v8 = vld [vmem:[%s8468_s3 + $0x98] sm:$0xf0]  ;;  %v4982_v34 = vor.u32 %v5499_v10, %v4979_v62 }
 0x1a3   :  { %3356 = vmatpush.bf16.msrb.mxu1 %v4794_v28  ;;  %v2293_v56 = vadd.f32 %v7892_v50, %v2280_v46  ;;  %v5511_v50 = vld [vmem:[%s8468_s3 + $0x3a4] sm:$0xf] }
 0x1a4   :  { %3343 = vmatpush.bf16.msrb.mxu3 %v4666_v15  ;;  %v2307_v15 = vpop.f32.mrf.mxu0  ;;  %v5030_v58 = vor.u32 %v5511_v50, %v5027_v55  ;;  %v4905_v50 = vld [vmem:[%s8468_s3 + $0x2a8] sm:$0xf]  ;;  %v5495_v55 = vld [vmem:[%s8468_s3 + $0x324] sm:$0xf] }
 0x1a5   :  { %3311 = vmatmul.bf16.vlgmr.msra.gmra.mxu1 %v7828_v0  ;;  %v2306_v2 = vadd.f32 %v7875_v47, %v2293_v56  ;;  %v5507_v47 = vld [vmem:[%s8468_s3 + $0x384] sm:$0xf] }
 0x1a6   :  { %v2320_v28 = vpop.f32.mrf.mxu2  ;;  %3322 = vmatpush.bf16.msra.mxu2 %v4838_v41  ;;  %v5011_v41 = vld [vmem:[%s8468_s3 + $0x390] sm:$0xf0] }
 0x1a7   :  { %3357 = vmatpush.bf16.msrb.mxu1 %v4778_v37  ;;  %v4670_v37 = vor.u32 %v5420_v18, %v4667_v12  ;;  %v5014_v26 = vor.u32 %v5507_v47, %v5011_v41  ;;  %v5440_v18 = vld [vmem:[%s8468_s3 + $0x16c] sm:$0xf]  ;;  %v4747_v12 = vld [vmem:[%s8468_s3 + $0x178] sm:$0xf0]  ;;  %v4889_v41 = vld [vmem:[%s8468_s3 + $0x288] sm:$0xf] }
 0x1a8   :  { %3344 = vmatpush.bf16.msrb.mxu3 %v4650_v14  ;;  %v4977_v14 = vld [vmem:[%s8468_s3 + $0x340] sm:$0xf]  ;;  %v4750_v46 = vor.u32 %v5440_v18, %v4747_v12 }
 0x1a9   :  { %v4978_v4 = vor.u32 %v5501_v42, %v4977_v14  ;;  %v4622_v14 = vor.u32 %v5408_v49, %v4619_v53  ;;  %v4782_v42 = vor.u32 %v5448_v51, %v4779_v7  ;;  %v5491_v49 = vld [vmem:[%s8468_s3 + $0x304] sm:$0xf]  ;;  %v4718_v53 = vor.u32 %v5432_v13, %v4715_v45  ;;  %v5428_v51 = vld [vmem:[%s8468_s3 + $0x10c] sm:$0xf]  ;;  %v4699_v7 = vld [vmem:[%s8468_s3 + $0x118] sm:$0xf0] }
 0x1aa   :  { %v2294_v19 = vpop.f32.mrf.mxu3  ;;  %3323 = vmatpush.bf16.msra.mxu2 %v4822_v33  ;;  %v5518_v13 = vld [vmem:[%s8468_s3 + $0x3d4] sm:$0xf0] }
 0x1ab   :  { %3358 = vmatpush.bf16.msrb.mxu1 %v4762_v29  ;;  %3282 = vmatpush.bf16.msrb.mxu0 %v4978_v4  ;;  %v5404_v4 = vld [vmem:[%s8468_s3 + $0x4c] sm:$0xf]  ;;  %v4763_v19 = vld [vmem:[%s8468_s3 + $0x198] sm:$0xf0] }
 0x1ac   :  { %3345 = vmatpush.bf16.msrb.mxu3 %v4634_v27  ;;  %v5434_v27 = vld [vmem:[%s8468_s3 + $0x134] sm:$0xf0]  ;;  %v7976_v25 = vpop.f32.mrf.mxu0 }
 0x1ad   :  { %v4714_v1 = vor.u32 %v5434_v27, %v4713_v39  ;;  %v5444_v39 = vld [vmem:[%s8468_s3 + $0x18c] sm:$0xf] }
 0x1ae   :  { %v4766_v28 = vor.u32 %v5444_v39, %v4763_v19 }
 0x1af   :  { %3359 = vmatpush.bf16.msrb.mxu1 %v4746_v57  ;;  %3283 = vmatpush.bf16.msrb.mxu0 %v4962_v60  ;;  %v4638_v57 = vor.u32 %v5412_v3, %v4635_v8 }
 0x1b0   :  { %3346 = vmatpush.bf16.msrb.mxu3 %v4618_v32  ;;  %v5493_v32 = vld [vmem:[%s8468_s3 + $0x30c] sm:$0xf0] }
 0x1b1   :  { %v4946_v29 = vor.u32 %v5493_v32, %v4945_v9  ;;  %v5503_v9 = vld [vmem:[%s8468_s3 + $0x364] sm:$0xf]  ;;  %v5490_v32 = vld [vmem:[%s8468_s3 + $0x2f4] sm:$0xf0] }
 0x1b3   :  { %3360 = vmatpush.bf16.msrb.mxu1 %v4730_v22  ;;  %3284 = vmatpush.bf16.msrb.mxu0 %v4946_v29  ;;  %v4603_v22 = vld [vmem:[%s8468_s3 + $0x58] sm:$0xf0] }
 0x1b4   :  { %3347 = vmatpush.bf16.msrb.mxu3 %v4602_v38  ;;  %v4811_v38 = vld [vmem:[%s8468_s3 + $0x1f8] sm:$0xf0]  ;;  %v2359_v15 = vpop.f32.mrf.mxu0  ;;  %v4606_v27 = vor.u32 %v5404_v4, %v4603_v22  ;;  %v919_v4 = vperm.slane %v7481_v31, 3  ;;  %v4873_v22 = vld [vmem:[%s8468_s3 + $0x268] sm:$0xf] }
 0x1b5   :  { %v4814_v54 = vor.u32 %v5456_v6, %v4811_v38  ;;  %v5436_v38 = vld [vmem:[%s8468_s3 + $0x14c] sm:$0xf]  ;;  %v4731_v29 = vld [vmem:[%s8468_s3 + $0x158] sm:$0xf0]  ;;  %v4857_v31 = vld [vmem:[%s8468_s3 + $0x248] sm:$0xf] }
 0x1b6   :  { %v4734_v56 = vor.u32 %v5436_v38, %v4731_v29  ;;  %v5065_v38 = vld [vmem:[%s8468_s3 + $0x3e8] sm:$0xf]  ;;  %v5522_v29 = vld [vmem:[%s8468_s3 + $0x3f4] sm:$0xf0] }
 0x1b7   :  { %3361 = vmatpush.bf16.msrb.mxu1 %v4714_v1  ;;  %3329 = vmatpush.bf16.msra.mxu0 %v5062_v43  ;;  %v4937_v1 = vld [vmem:[%s8468_s3 + $0x2e8] sm:$0xf] }
 0x1b8   :  { %3348 = vmatpush.bf16.msrb.mxu3 %v4586_v63  ;;  %v2331_v63 = vpop.f32.mrf.mxu1  ;;  %v4938_v43 = vor.u32 %v5490_v32, %v4937_v1  ;;  %v5488_v1 = vld [vmem:[%s8468_s3 + $0x2ec] sm:$0xf] }
 0x1bb   :  { %3362 = vmatpush.bf16.msrb.mxu1 %v4698_v44  ;;  %3330 = vmatpush.bf16.msra.mxu0 %v5046_v52 }
 0x1bc   :  { %3349 = vmatpush.bf16.msrb.mxu3 %v4570_v20  ;;  %v2319_v20 = vadd.f32 %v7903_v23, %v2306_v2  ;;  %v8068_v24 = vpop.f32.mrf.mxu0  ;;  %v4947_v2 = vld [vmem:[%s8468_s3 + $0x310] sm:$0xf0] }
 0x1bd   :  { %v4950_v47 = vor.u32 %v5491_v49, %v4947_v2  ;;  %v5472_v49 = vld [vmem:[%s8468_s3 + $0x26c] sm:$0xf]  ;;  %v4875_v2 = vld [vmem:[%s8468_s3 + $0x278] sm:$0xf0] }
 0x1be   :  { %3363 = vmatmul.bf16.vlgmr.msrb.gmra.mxu1 %v7828_v0  ;;  %v8082_v60 = vpop.f32.mrf.mxu2 }
 0x1bf   :  { %3350 = vmatmul.bf16.vlgmr.msrb.gmra.mxu3 %v7650_v16  ;;  %3407 = vmatpush.bf16.msra.mxu1 %v4814_v54  ;;  %v5486_v54 = vld [vmem:[%s8468_s3 + $0x2d4] sm:$0xf0]  ;;  %v2371_v39 = vadd.f32 %v8082_v60, %v919_v4  ;;  %v4825_v60 = vld [vmem:[%s8468_s3 + $0x208] sm:$0xf] }
 0x1c0   :  { %3394 = vmatpush.bf16.msra.mxu3 %v4686_v5  ;;  %3331 = vmatpush.bf16.msra.mxu0 %v5030_v58  ;;  %v2332_v5 = vadd.f32 %v2331_v63, %v2319_v20  ;;  %v2333_v33 = vpop.f32.mrf.mxu1  ;;  %v4963_v63 = vld [vmem:[%s8468_s3 + $0x330] sm:$0xf0]  ;;  %v5506_v4 = vld [vmem:[%s8468_s3 + $0x374] sm:$0xf0] }
 0x1c1   :  { %v4841_v33 = vld [vmem:[%s8468_s3 + $0x228] sm:$0xf] }
 0x1c2   :  { %v2344_v23 = vpop.f32.mrf.mxu3 }
 0x1c3   :  { %3408 = vmatpush.bf16.msra.mxu1 %v4798_v48  ;;  %v2345_v21 = vadd.f32 %v2344_v23, %v2332_v5  ;;  %v4966_v48 = vor.u32 %v5495_v55, %v4963_v63  ;;  %v5470_v5 = vld [vmem:[%s8468_s3 + $0x254] sm:$0xf0]  ;;  %v2384_v23 = vadd.f32 %v8068_v24, %v2371_v39  ;;  %v5033_v63 = vld [vmem:[%s8468_s3 + $0x3a8] sm:$0xf] }
 0x1c4   :  { %3395 = vmatpush.bf16.msra.mxu3 %v4670_v37  ;;  %3332 = vmatpush.bf16.msra.mxu0 %v5014_v26  ;;  %v4998_v37 = vor.u32 %v5503_v9, %v4995_v30  ;;  %v2385_v44 = vpop.f32.mrf.mxu0  ;;  %v5462_v9 = vld [vmem:[%s8468_s3 + $0x214] sm:$0xf0]  ;;  %v4939_v30 = vld [vmem:[%s8468_s3 + $0x2f8] sm:$0xf0] }
 0x1c5   :  { %v2358_v61 = vadd.f32 %v7976_v25, %v2345_v21  ;;  %v5396_v25 = vld [vmem:[%s8468_s3 + $0xc] sm:$0xf]  ;;  %v4826_v32 = vor.u32 %v5462_v9, %v4825_v60  ;;  %v4942_v62 = vor.u32 %v5488_v1, %v4939_v30  ;;  %v5067_v60 = vld [vmem:[%s8468_s3 + $0x3f8] sm:$0xf0] }
 0x1c6   :  { %v4574_v3 = vor.u32 %v5396_v25, %v4571_v59  ;;  %v2372_v15 = vpop.f32.mrf.mxu2  ;;  %v5516_v30 = vld [vmem:[%s8468_s3 + $0x3cc] sm:$0xf] }
 0x1c7   :  { %3409 = vmatpush.bf16.msra.mxu1 %v4782_v42  ;;  %v2454_v6 = vmax.f32 %v2358_v61, 0.0  ;;  %v4702_v42 = vor.u32 %v5428_v51, %v4699_v7  ;;  %v5476_v15 = vld [vmem:[%s8468_s3 + $0x28c] sm:$0xf]  ;;  %v5017_v51 = vld [vmem:[%s8468_s3 + $0x388] sm:$0xf] }
 0x1c8   :  { %3396 = vmatpush.bf16.msra.mxu3 %v4654_v11  ;;  %3333 = vmatpush.bf16.msra.mxu0 %v4998_v37  ;;  %v4921_v11 = vld [vmem:[%s8468_s3 + $0x2c8] sm:$0xf]  ;;  %v5510_v7 = vld [vmem:[%s8468_s3 + $0x394] sm:$0xf0] }
 0x1c9   :  { %v8115_v35 = vpack.c.bf16 %v2454_v6, %v2454_v6  ;;  %v4922_v52 = vor.u32 %v5486_v54, %v4921_v11  ;;  %v5480_v11 = vld [vmem:[%s8468_s3 + $0x2ac] sm:$0xf]  ;;  %v4907_v54 = vld [vmem:[%s8468_s3 + $0x2b8] sm:$0xf0] }
 0x1ca   :  { %v2346_v8 = vpop.f32.mrf.mxu3  ;;  %v4910_v45 = vor.u32 %v5480_v11, %v4907_v54  ;;  %v4987_v11 = vld [vmem:[%s8468_s3 + $0x358] sm:$0xf0] }
 0x1cb   :  { %3410 = vmatpush.bf16.msra.mxu1 %v4766_v28  ;;  %3272 = vmatmul.bf16.vlgmr.msrb.gmra.mxu2 %v8115_v35  ;;  %v5049_v8 = vld [vmem:[%s8468_s3 + $0x3c8] sm:$0xf] }
 0x1cc   :  { %3397 = vmatpush.bf16.msra.mxu3 %v4638_v57  ;;  %3368 = vmatpush.bf16.msrb.mxu2 %v4938_v43  ;;  %v5482_v57 = vld [vmem:[%s8468_s3 + $0x2b4] sm:$0xf0]  ;;  %v5050_v55 = vor.u32 %v5518_v13, %v5049_v8  ;;  %v5496_v13 = vld [vmem:[%s8468_s3 + $0x32c] sm:$0xf] }
 0x1cd   :  { %3334 = vmatpush.bf16.msra.mxu0 %v4982_v34  ;;  %v4906_v58 = vor.u32 %v5482_v57, %v4905_v50  ;;  %v5514_v57 = vld [vmem:[%s8468_s3 + $0x3b4] sm:$0xf0] }
 0x1cf   :  { %3411 = vmatpush.bf16.msra.mxu1 %v4750_v46  ;;  %v4923_v46 = vld [vmem:[%s8468_s3 + $0x2d8] sm:$0xf0] }
 0x1d0   :  { %3398 = vmatpush.bf16.msra.mxu3 %v4622_v14  ;;  %3369 = vmatpush.bf16.msrb.mxu2 %v4922_v52  ;;  %v5478_v14 = vld [vmem:[%s8468_s3 + $0x294] sm:$0xf0]  ;;  %v4891_v52 = vld [vmem:[%s8468_s3 + $0x298] sm:$0xf0] }
 0x1d1   :  { %3335 = vmatpush.bf16.msra.mxu0 %v4966_v48  ;;  %v4890_v20 = vor.u32 %v5478_v14, %v4889_v41  ;;  %v4894_v48 = vor.u32 %v5476_v15, %v4891_v52  ;;  %v4859_v41 = vld [vmem:[%s8468_s3 + $0x258] sm:$0xf0]  ;;  %v5018_v14 = vor.u32 %v5510_v7, %v5017_v51 }
 0x1d2   :  { %v5530_v51 = vld [vmem:[%s8470_s5 + $0x38] sm:$0xff] }
 0x1d3   :  { %3412 = vmatpush.bf16.msra.mxu1 %v4734_v56 }
 0x1d4   :  { %3399 = vmatpush.bf16.msra.mxu3 %v4606_v27  ;;  %3370 = vmatpush.bf16.msrb.mxu2 %v4906_v58  ;;  %v4858_v27 = vor.u32 %v5470_v5, %v4857_v31  ;;  %v4878_v58 = vor.u32 %v5472_v49, %v4875_v2 }
 0x1d5   :  { %3336 = vmatpush.bf16.msra.mxu0 %v4950_v47  ;;  %v5468_v47 = vld [vmem:[%s8468_s3 + $0x24c] sm:$0xf] }
 0x1d7   :  { %3413 = vmatpush.bf16.msra.mxu1 %v4718_v53  ;;  %v2396_v19 = vpop.f32.mrf.mxu1  ;;  %v5034_v53 = vor.u32 %v5514_v57, %v5033_v63 }
 0x1d8   :  { %3400 = vmatpush.bf16.msra.mxu3 %v4590_v36  ;;  %3371 = vmatpush.bf16.msrb.mxu2 %v4890_v20  ;;  %v2397_v17 = vadd.f32 %v2396_v19, %v2384_v23  ;;  %v5484_v36 = vld [vmem:[%s8468_s3 + $0x2cc] sm:$0xf]  ;;  %v4862_v20 = vor.u32 %v5468_v47, %v4859_v41  ;;  %v4985_v19 = vld [vmem:[%s8468_s3 + $0x348] sm:$0xf]  ;;  %v5529_v41 = vld [vmem:[%s8470_s5 + $0x30] sm:$0xff] }
 0x1d9   :  { %v4926_v44 = vor.u32 %v5484_v36, %v4923_v46  ;;  %v5460_v23 = vld [vmem:[%s8468_s3 + $0x20c] sm:$0xf]  ;;  %v5019_v46 = vld [vmem:[%s8468_s3 + $0x398] sm:$0xf0] }
 0x1da   :  { %v2435_v28 = vpop.f32.mrf.mxu0  ;;  %v5508_v36 = vld [vmem:[%s8468_s3 + $0x38c] sm:$0xf] }
 0x1db   :  { %3414 = vmatpush.bf16.msra.mxu1 %v4702_v42  ;;  %3324 = vmatmul.bf16.vlgmr.msra.gmra.mxu2 %v8115_v35  ;;  %v5001_v42 = vld [vmem:[%s8468_s3 + $0x368] sm:$0xf] }
 0x1dc   :  { %3401 = vmatpush.bf16.msra.mxu3 %v4574_v3  ;;  %v5066_v3 = vor.u32 %v5522_v29, %v5065_v38  ;;  %v5002_v39 = vor.u32 %v5506_v4, %v5001_v42  ;;  %v5003_v38 = vld [vmem:[%s8468_s3 + $0x378] sm:$0xf0] }
 0x1de   :  { %3415 = vmatmul.bf16.vlgmr.msra.gmra.mxu1 %v7828_v0  ;;  %v5466_v0 = vld [vmem:[%s8468_s3 + $0x234] sm:$0xf0]  ;;  %v2422_v24 = vpop.f32.mrf.mxu2 }
 0x1df   :  { %3402 = vmatmul.bf16.vlgmr.msra.gmra.mxu3 %v7650_v16  ;;  %v5474_v16 = vld [vmem:[%s8468_s3 + $0x274] sm:$0xf0]  ;;  %v2398_v40 = vpop.f32.mrf.mxu1  ;;  %v4842_v18 = vor.u32 %v5466_v0, %v4841_v33  ;;  %v4969_v33 = vld [vmem:[%s8468_s3 + $0x328] sm:$0xf] }
 0x1e0   :  { %v4874_v26 = vor.u32 %v5474_v16, %v4873_v22  ;;  %v5464_v22 = vld [vmem:[%s8468_s3 + $0x22c] sm:$0xf]  ;;  %v4843_v16 = vld [vmem:[%s8468_s3 + $0x238] sm:$0xf0]  ;;  %v5498_v0 = vld [vmem:[%s8468_s3 + $0x334] sm:$0xf0]  ;;  %3714 = vmatpush.bf16.msrb.mxu3 %v5530_v51 }
 0x1e1   :  { %v4846_v5 = vor.u32 %v5464_v22, %v4843_v16  ;;  %v4970_v40 = vor.u32 %v5498_v0, %v4969_v33  ;;  %v5527_v22 = vld [vmem:[%s8470_s5 + $0x20] sm:$0xff]  ;;  %v5538_v16 = vld [vmem:[%s8470_s5 + $0x78] sm:$0xff] }
 0x1e2   :  { %3372 = vmatpush.bf16.msrb.mxu2 %v4874_v26  ;;  %v2409_v21 = vpop.f32.mrf.mxu3  ;;  %v2437_v37 = vpop.f32.mrf.mxu0  ;;  %v5502_v26 = vld [vmem:[%s8468_s3 + $0x354] sm:$0xf0]  ;;  %3727 = vmatpush.bf16.msrb.mxu1 %v5538_v16  ;;  %v5523_v33 = vld [vmem:[%s8470_s5] sm:$0xff] }
 0x1e3   :  { %v2410_v12 = vadd.f32 %v2409_v21, %v2397_v17  ;;  %v4953_v21 = vld [vmem:[%s8468_s3 + $0x308] sm:$0xf]  ;;  %v5512_v37 = vld [vmem:[%s8468_s3 + $0x3ac] sm:$0xf]  ;;  %v5535_v0 = vld [vmem:[%s8470_s5 + $0x60] sm:$0xff] }
 0x1e4   :  { %3715 = vmatpush.bf16.msrb.mxu3 %v5529_v41  ;;  %v5547_v41 = vld [vmem:[%s8470_s5 + $0xc0] sm:$0xff] }
 0x1e5   :  { %v2423_v61 = vadd.f32 %v2422_v24, %v2410_v12  ;;  %v5520_v24 = vld [vmem:[%s8468_s3 + $0x3ec] sm:$0xf] }
 0x1e6   :  { %3373 = vmatpush.bf16.msrb.mxu2 %v4858_v27  ;;  %v2424_v43 = vpop.f32.mrf.mxu2  ;;  %v4827_v27 = vld [vmem:[%s8468_s3 + $0x218] sm:$0xf0]  ;;  %v5070_v1 = vor.u32 %v5520_v24, %v5067_v60  ;;  %v5545_v60 = vld [vmem:[%s8470_s5 + $0xb0] sm:$0xff] }
 0x1e7   :  { %v2436_v10 = vadd.f32 %v2435_v28, %v2423_v61  ;;  %v2448_v25 = vpop.f32.mrf.mxu1  ;;  %v4986_v28 = vor.u32 %v5502_v26, %v4985_v19  ;;  %v4830_v17 = vor.u32 %v5460_v23, %v4827_v27  ;;  %v5051_v61 = vld [vmem:[%s8468_s3 + $0x3d8] sm:$0xf0]  ;;  %v5525_v26 = vld [vmem:[%s8470_s5 + $0x10] sm:$0xff]  ;;  %v5524_v23 = vld [vmem:[%s8470_s5 + $0x8] sm:$0xff] }
 0x1e8   :  { %v5526_v19 = vld [vmem:[%s8470_s5 + $0x18] sm:$0xff]  ;;  %v5536_v27 = vld [vmem:[%s8470_s5 + $0x68] sm:$0xff] }
 0x1e9   :  { %v2449_v59 = vadd.f32 %v2448_v25, %v2436_v10 }
 0x1ea   :  { %3374 = vmatpush.bf16.msrb.mxu2 %v4842_v18  ;;  %v2411_v6 = vpop.f32.mrf.mxu3  ;;  %v5494_v18 = vld [vmem:[%s8468_s3 + $0x314] sm:$0xf0] }
 0x1eb   :  { %v2455_v34 = vmax.f32 %v2449_v59, 0.0  ;;  %v4954_v9 = vor.u32 %v5494_v18, %v4953_v21  ;;  %v5022_v59 = vor.u32 %v5508_v36, %v5019_v46  ;;  %v5504_v6 = vld [vmem:[%s8468_s3 + $0x36c] sm:$0xf]  ;;  %v5534_v18 = vld [vmem:[%s8470_s5 + $0x58] sm:$0xff] }
 0x1ec   :  { %v5006_v43 = vor.u32 %v5504_v6, %v5003_v38  ;;  %v5542_v36 = vld [vmem:[%s8470_s5 + $0x98] sm:$0xff] }
 0x1ed   :  { %v8215_v56 = vpack.c.bf16 %v2455_v34, %v2455_v34  ;;  %v5500_v34 = vld [vmem:[%s8468_s3 + $0x34c] sm:$0xf] }
 0x1ee   :  { %3375 = vmatpush.bf16.msrb.mxu2 %v4826_v32  ;;  %v5054_v32 = vor.u32 %v5516_v30, %v5051_v61  ;;  %v4990_v8 = vor.u32 %v5500_v34, %v4987_v11  ;;  %v5554_v11 = vld [vmem:[%s8470_s5 + $0xf8] sm:$0xff] }
 0x1ef   :  { %3285 = vmatmul.bf16.vlgmr.msrb.gmra.mxu0 %v8215_v56  ;;  %v2450_v50 = vpop.f32.mrf.mxu1 }
 0x1f0   :  { %3381 = vmatpush.bf16.msrb.mxu0 %v5066_v3  ;;  %v5492_v50 = vld [vmem:[%s8468_s3 + $0x30c] sm:$0xf] }
 0x1f1   :  { %3376 = vmatmul.bf16.vlgmr.msrb.gmra.mxu2 %v8115_v35 }
 0x1f2   :  { %3420 = vmatpush.bf16.msra.mxu2 %v4942_v62  ;;  %v8314_v62 = vld [vmem:[%s8469_s4] sm:$0xf] }
 0x1f3   :  { %v2590_v25 = vperm.slane %v8314_v62, 0  ;;  %v2591_v57 = vperm.slane %v8314_v62, 1 }
 0x1f4   :  { %3382 = vmatpush.bf16.msrb.mxu0 %v5050_v55  ;;  %v4955_v55 = vld [vmem:[%s8468_s3 + $0x318] sm:$0xf0] }
 0x1f6   :  { %3421 = vmatpush.bf16.msra.mxu2 %v4926_v44 }
 0x1f8   :  { %3383 = vmatpush.bf16.msrb.mxu0 %v5034_v53 }
 0x1fa   :  { %3422 = vmatpush.bf16.msra.mxu2 %v4910_v45  ;;  %v4971_v45 = vld [vmem:[%s8468_s3 + $0x338] sm:$0xf0] }
 0x1fb   :  { %v4974_v15 = vor.u32 %v5496_v13, %v4971_v45  ;;  %v5552_v45 = vld [vmem:[%s8470_s5 + $0xe8] sm:$0xff] }
 0x1fc   :  { %3384 = vmatpush.bf16.msrb.mxu0 %v5018_v14 }
 0x1fe   :  { %3423 = vmatpush.bf16.msra.mxu2 %v4894_v48  ;;  %v4958_v48 = vor.u32 %v5492_v50, %v4955_v55 }
 0x1ff   :  { %3337 = vmatmul.bf16.vlgmr.msra.gmra.mxu0 %v8215_v56 }
 0x200   :  { %3385 = vmatpush.bf16.msrb.mxu0 %v5002_v39 }
 0x202   :  { %3424 = vmatpush.bf16.msra.mxu2 %v4878_v58  ;;  %v3247_v31 = vpop.f32.mrf.mxu3  ;;  %v2592_v58 = vperm.slane %v8314_v62, 2 }
 0x203   :  { %v3248_v29 = vadd.f32 %v3247_v31, %v2590_v25  ;;  %v5537_v31 = vld [vmem:[%s8470_s5 + $0x70] sm:$0xff] }
 0x204   :  { %3386 = vmatpush.bf16.msrb.mxu0 %v4986_v28  ;;  %3728 = vmatpush.bf16.msrb.mxu1 %v5537_v31  ;;  %v2593_v28 = vperm.slane %v8314_v62, 3  ;;  %v5543_v62 = vld [vmem:[%s8470_s5 + $0xa0] sm:$0xff]  ;;  %v5541_v25 = vld [vmem:[%s8470_s5 + $0x90] sm:$0xff] }
 0x206   :  { %3425 = vmatpush.bf16.msra.mxu2 %v4862_v20 }
 0x208   :  { %3387 = vmatpush.bf16.msrb.mxu0 %v4970_v40  ;;  %3729 = vmatpush.bf16.msrb.mxu1 %v5536_v27 }
 0x20a   :  { %3426 = vmatpush.bf16.msra.mxu2 %v4846_v5  ;;  %v3249_v12 = vpop.f32.mrf.mxu3 }
 0x20c   :  { %3388 = vmatpush.bf16.msrb.mxu0 %v4954_v9  ;;  %3730 = vmatpush.bf16.msrb.mxu1 %v5535_v0  ;;  %v5555_v0 = vld [vmem:[%s8471_s6] ss:$0 sm:$0xff] }
 0x20e   :  { %3427 = vmatpush.bf16.msra.mxu2 %v4830_v17  ;;  %v5546_v17 = vld [vmem:[%s8470_s5 + $0xb8] sm:$0xff] }
 0x20f   :  { %3389 = vmatmul.bf16.vlgmr.msrb.gmra.mxu0 %v8215_v56 }
 0x210   :  { %3433 = vmatpush.bf16.msra.mxu0 %v5070_v1  ;;  %3731 = vmatpush.bf16.msrb.mxu1 %v5534_v18  ;;  %v5533_v1 = vld [vmem:[%s8470_s5 + $0x50] sm:$0xff] }
 0x211   :  { %3428 = vmatmul.bf16.vlgmr.msra.gmra.mxu2 %v8115_v35  ;;  %v5035_v35 = vld [vmem:[%s8468_s3 + $0x3b8] sm:$0xf0] }
 0x212   :  { %v5038_v10 = vor.u32 %v5512_v37, %v5035_v35  ;;  %v3260_v44 = vpop.f32.mrf.mxu1  ;;  %3740 = vmatpush.bf16.msrb.mxu2 %v5546_v17  ;;  %v5532_v37 = vld [vmem:[%s8470_s5 + $0x48] sm:$0xff] }
 0x213   :  { %v8335_v54 = vadd.f32 %v3260_v44, %v3248_v29  ;;  %v5544_v35 = vld [vmem:[%s8470_s5 + $0xa8] sm:$0xff] }
 0x214   :  { %3434 = vmatpush.bf16.msra.mxu0 %v5054_v32  ;;  %3732 = vmatpush.bf16.msrb.mxu1 %v5533_v1  ;;  %v5540_v44 = vld [vmem:[%s8470_s5 + $0x88] sm:$0xff] }
 0x216   :  { %3741 = vmatpush.bf16.msrb.mxu2 %v5545_v60 }
 0x218   :  { %3435 = vmatpush.bf16.msra.mxu0 %v5038_v10  ;;  %3733 = vmatpush.bf16.msrb.mxu1 %v5532_v37  ;;  %v5531_v10 = vld [vmem:[%s8470_s5 + $0x40] sm:$0xff] }
 0x21a   :  { %v3262_v52 = vpop.f32.mrf.mxu1  ;;  %3742 = vmatpush.bf16.msrb.mxu2 %v5544_v35 }
 0x21b   :  { %v5551_v52 = vld [vmem:[%s8470_s5 + $0xe0] sm:$0xff] }
 0x21c   :  { %3436 = vmatpush.bf16.msra.mxu0 %v5022_v59  ;;  %3734 = vmatpush.bf16.msrb.mxu1 %v5531_v10 }
 0x21e   :  { %3743 = vmatpush.bf16.msrb.mxu2 %v5543_v62 }
 0x220   :  { %3437 = vmatpush.bf16.msra.mxu0 %v5006_v43 }
 0x222   :  { %v3299_v3 = vpop.f32.mrf.mxu3  ;;  %v3312_v2 = vpop.f32.mrf.mxu1  ;;  %3744 = vmatpush.bf16.msrb.mxu2 %v5542_v36 }
 0x223   :  { %v3300_v49 = vadd.f32 %v3299_v3, %v2591_v57  ;;  %v5539_v3 = vld [vmem:[%s8470_s5 + $0x80] sm:$0xff]  ;;  %v5550_v57 = vld [vmem:[%s8470_s5 + $0xd8] sm:$0xff] }
 0x224   :  { %3438 = vmatpush.bf16.msra.mxu0 %v4990_v8  ;;  %v5553_v8 = vld [vmem:[%s8470_s5 + $0xf0] sm:$0xff] }
 0x225   :  { %v8350_v53 = vadd.f32 %v3312_v2, %v3300_v49  ;;  %v5549_v49 = vld [vmem:[%s8470_s5 + $0xd0] sm:$0xff] }
 0x226   :  { %3745 = vmatpush.bf16.msrb.mxu2 %v5541_v25 }
 0x228   :  { %3439 = vmatpush.bf16.msra.mxu0 %v4974_v15 }
 0x22a   :  { %v3301_v63 = vpop.f32.mrf.mxu3  ;;  %v3314_v7 = vpop.f32.mrf.mxu1  ;;  %3746 = vmatpush.bf16.msrb.mxu2 %v5540_v44 }
 0x22c   :  { %3440 = vmatpush.bf16.msra.mxu0 %v4958_v48 }
 0x22e   :  { %3747 = vmatpush.bf16.msrb.mxu2 %v5539_v3 }
 0x22f   :  { %3441 = vmatmul.bf16.vlgmr.msra.gmra.mxu0 %v8215_v56  ;;  %v5528_v56 = vld [vmem:[%s8470_s5 + $0x28] sm:$0xff] }
 0x230   :  { %3716 = vmatpush.bf16.msrb.mxu3 %v5528_v56  ;;  %3753 = vmatpush.bf16.msrb.mxu0 %v5554_v11 }
 0x234   :  { %3717 = vmatpush.bf16.msrb.mxu3 %v5527_v22  ;;  %3754 = vmatpush.bf16.msrb.mxu0 %v5553_v8 }
 0x238   :  { %3718 = vmatpush.bf16.msrb.mxu3 %v5526_v19  ;;  %3755 = vmatpush.bf16.msrb.mxu0 %v5552_v45 }
 0x23b   :  { %v3364_v42 = vpop.f32.mrf.mxu1 }
 0x23c   :  { %3719 = vmatpush.bf16.msrb.mxu3 %v5525_v26  ;;  %3756 = vmatpush.bf16.msrb.mxu0 %v5551_v52 }
 0x240   :  { %3720 = vmatpush.bf16.msrb.mxu3 %v5524_v23  ;;  %3757 = vmatpush.bf16.msrb.mxu0 %v5550_v57 }
 0x242   :  { %v3351_v47 = vpop.f32.mrf.mxu3 }
 0x243   :  { %v3352_v14 = vadd.f32 %v3351_v47, %v2592_v58  ;;  %v3366_v39 = vpop.f32.mrf.mxu1  ;;  %v5548_v58 = vld [vmem:[%s8470_s5 + $0xc8] sm:$0xff] }
 0x244   :  { %3721 = vmatpush.bf16.msrb.mxu3 %v5523_v33  ;;  %3758 = vmatpush.bf16.msrb.mxu0 %v5549_v49 }
 0x245   :  { %v8363_v4 = vadd.f32 %v3364_v42, %v3352_v14 }
 0x248   :  { %3759 = vmatpush.bf16.msrb.mxu0 %v5548_v58 }
 0x24a   :  { %v3353_v20 = vpop.f32.mrf.mxu3 }
 0x24c   :  { %3760 = vmatpush.bf16.msrb.mxu0 %v5547_v41 }
 0x24e   :  { %v3273_v5 = vpop.f32.mrf.mxu2 }
 0x24f   :  { %v3274_v59 = vadd.f32 %v3273_v5, %v8335_v54 }
 0x256   :  { %v3275_v24 = vpop.f32.mrf.mxu2 }
 0x25b   :  { %v3416_v12 = vpop.f32.mrf.mxu1 }
 0x25e   :  { %v3325_v32 = vpop.f32.mrf.mxu2 }
 0x25f   :  { %v3326_v15 = vadd.f32 %v3325_v32, %v8350_v53 }
 0x262   :  { %v3403_v40 = vpop.f32.mrf.mxu3 }
 0x263   :  { %v3404_v21 = vadd.f32 %v3403_v40, %v2593_v28  ;;  %v3418_v61 = vpop.f32.mrf.mxu1 }
 0x265   :  { %v8402_v9 = vadd.f32 %v3416_v12, %v3404_v21 }
 0x266   :  { %v3327_v46 = vpop.f32.mrf.mxu2 }
 0x26a   :  { %v3405_v30 = vpop.f32.mrf.mxu3 }
 0x26c   :  { %v3286_v6 = vpop.f32.mrf.mxu0 }
 0x26d   :  { %v3287_v38 = vadd.f32 %v3286_v6, %v3274_v59 }
 0x26f   :  { %v3446_v29 = vmax.f32 %v3287_v38, 0.0 }
 0x271   :  { %v3450_v34 = vpack.c.bf16 %v3446_v29, %v3446_v29 }
 0x273   :  { %3722 = vmatmul.bf16.vlgmr.msrb.gmra.mxu3 %v3450_v34 }
 0x274   :  { %v3377_v43 = vpop.f32.mrf.mxu2  ;;  %v3288_v54 = vpop.f32.mrf.mxu0 }
 0x275   :  { %v3378_v53 = vadd.f32 %v3377_v43, %v8363_v4 }
 0x27c   :  { %v3379_v13 = vpop.f32.mrf.mxu2  ;;  %v3338_v50 = vpop.f32.mrf.mxu0 }
 0x27d   :  { %v3339_v55 = vadd.f32 %v3338_v50, %v3326_v15 }
 0x27f   :  { %v3447_v63 = vmax.f32 %v3339_v55, 0.0 }
 0x281   :  { %v3451_v48 = vpack.c.bf16 %v3447_v63, %v3447_v63 }
 0x283   :  { %3735 = vmatmul.bf16.vlgmr.msrb.gmra.mxu1 %v3451_v48 }
 0x284   :  { %v3340_v2 = vpop.f32.mrf.mxu0 }
 0x28c   :  { %v3390_v51 = vpop.f32.mrf.mxu0 }
 0x28d   :  { %v3391_v47 = vadd.f32 %v3390_v51, %v3378_v53 }
 0x28f   :  { %v3448_v14 = vmax.f32 %v3391_v47, 0.0 }
 0x291   :  { %v3452_v42 = vpack.c.bf16 %v3448_v14, %v3448_v14 }
 0x293   :  { %3748 = vmatmul.bf16.vlgmr.msrb.gmra.mxu2 %v3452_v42 }
 0x294   :  { %v3429_v7 = vpop.f32.mrf.mxu2  ;;  %v3392_v56 = vpop.f32.mrf.mxu0 }
 0x295   :  { %v3430_v4 = vadd.f32 %v3429_v7, %v8402_v9 }
 0x29c   :  { %v3431_v20 = vpop.f32.mrf.mxu2 }
 0x2ac   :  { %v3442_v22 = vpop.f32.mrf.mxu0 }
 0x2ad   :  { %v3443_v16 = vadd.f32 %v3442_v22, %v3430_v4 }
 0x2af   :  { %v3449_v39 = vmax.f32 %v3443_v16, 0.0 }
 0x2b1   :  { %v3453_v19 = vpack.c.bf16 %v3449_v39, %v3449_v39 }
 0x2b3   :  { %3761 = vmatmul.bf16.vlgmr.msrb.gmra.mxu0 %v3453_v19 }
 0x2b4   :  { %v3444_v26 = vpop.f32.mrf.mxu0 }
 0x2f6   :  { %v3723_v31 = vpop.f32.mrf.mxu3 }
 0x2f7   :  { %v3724_v17 = vadd.f32 %v5555_v0, %v3723_v31 }
 0x2fe   :  { %v3725_v5 = vpop.f32.mrf.mxu3 }
 0x300   :  { %v3736_v23 = vpop.f32.mrf.mxu1 }
 0x301   :  { %v3737_v40 = vadd.f32 %v3736_v23, %v3724_v17 }
 0x308   :  { %v3738_v27 = vpop.f32.mrf.mxu1 }
 0x316   :  { %v3749_v28 = vpop.f32.mrf.mxu2 }
 0x317   :  { %v3750_v21 = vadd.f32 %v3749_v28, %v3737_v40 }
 0x31e   :  { %v3751_v33 = vpop.f32.mrf.mxu2 }
 0x330   :  { %v3762_v18 = vpop.f32.mrf.mxu0 }
 0x331   :  { %v3763_v12 = vadd.f32 %v3762_v18, %v3750_v21 }
 0x333   :  { %3766 = vst [vmem:[%s8472_s7] sm:$0xff] %v3763_v12 }
 0x338   :  { %v3764_v24 = vpop.f32.mrf.mxu0 }

</bundles_post_ra>
